<compile_context>
chip_gen: v6e
topology: v6e:2x2x1
jax: 0.10.0
libtpu: 0.0.40
codegen_flags: <defaults>
</compile_context>

<pallas_src>
import numpy as np
import jax
import jax.numpy as jnp
from jax.experimental import pallas as pl
from jax.experimental.pallas import tpu as pltpu

# ----------------------------- configuration -----------------------------
IMG_H, IMG_W = 16, 16
PATCH = 4
IN_CH = 2
HISTORY = 2
IN_TOTAL = IN_CH * HISTORY          # in_channels * history = 4
OUT_CH = 3
EMBED = 128
DEPTH = 2
DEC_DEPTH = 2
HEADS = 4
MLP_RATIO = 4.0
HEAD_DIM = EMBED // HEADS
HIDDEN = int(EMBED * MLP_RATIO)
GRID_H, GRID_W = IMG_H // PATCH, IMG_W // PATCH
NUM_PATCHES = GRID_H * GRID_W
LN_EPS = 1e-5                       # nn.LayerNorm default
K_PATCH = IN_TOTAL * PATCH * PATCH  # im2col row width = 64
OUT_DIM = OUT_CH * PATCH * PATCH    # 48
OUT_PAD = ((OUT_DIM + 127) // 128) * 128   # lane-dense padded head output = 128


# --------------------------- in-kernel helpers ---------------------------
def _ln(x, w, b):
    """LayerNorm over last axis, f32 math (matches nn.LayerNorm eps=1e-5)."""
    mean = jnp.mean(x, axis=-1, keepdims=True)
    xc = x - mean
    var = jnp.mean(xc * xc, axis=-1, keepdims=True)
    return xc * jax.lax.rsqrt(var + LN_EPS) * w + b


def _gelu(x):
    """Exact erf GELU (torch.nn.GELU default), f32 math."""
    return 0.5 * x * (1.0 + jax.lax.erf(x * float(1.0 / np.sqrt(2.0))))


def _mm(x, w):
    """bf16 MXU inputs, f32 accumulation."""
    return jnp.dot(x.astype(jnp.bfloat16), w, preferred_element_type=jnp.float32)


# ------------------------------ fused kernel ------------------------------
def _vit_kernel(xp_ref, pos_ref, pw_ref, pb_ref,
                ln1w_ref, ln1b_ref, qkvw_ref, qkvb_ref,
                projw_ref, projb_ref, ln2w_ref, ln2b_ref,
                fc1w_ref, fc1b_ref, fc2w_ref, fc2b_ref,
                nw_ref, nb_ref, hw_ref, hb_ref, ow_ref, ob_ref,
                o_ref):
    scale = float(HEAD_DIM) ** -0.5

    # patch embed (im2col matmul) + bias + sincos pos embed; pos_drop = identity
    t = _mm(xp_ref[0], pw_ref[...]) + pb_ref[...] + pos_ref[...]      # (L, D) f32

    for d in range(DEPTH):
        # ---- attention sub-block: x = x + proj(attn(LN1(x))) ----
        xn = _ln(t, ln1w_ref[d], ln1b_ref[d])
        qkv = _mm(xn, qkvw_ref[d]) + qkvb_ref[d]                      # (L, 3D) f32
        heads = []
        for h in range(HEADS):
            q = qkv[:, h * HEAD_DIM:(h + 1) * HEAD_DIM]
            k = qkv[:, EMBED + h * HEAD_DIM:EMBED + (h + 1) * HEAD_DIM]
            v = qkv[:, 2 * EMBED + h * HEAD_DIM:2 * EMBED + (h + 1) * HEAD_DIM]
            s = jax.lax.dot_general(q, k, (((1,), (1,)), ((), ())),
                                    preferred_element_type=jnp.float32) * scale
            s = s - jnp.max(s, axis=-1, keepdims=True)
            p = jnp.exp(s)
            p = p / jnp.sum(p, axis=-1, keepdims=True)                # f32 softmax
            heads.append(jnp.dot(p, v, preferred_element_type=jnp.float32))
        att = jnp.concatenate(heads, axis=-1)                         # (L, D)
        t = t + _mm(att, projw_ref[d]) + projb_ref[d]                 # drop_path = id

        # ---- MLP sub-block: x = x + fc2(GELU(fc1(LN2(x)))) ----
        xn = _ln(t, ln2w_ref[d], ln2b_ref[d])
        m = _gelu(_mm(xn, fc1w_ref[d]) + fc1b_ref[d])
        t = t + _mm(m, fc2w_ref[d]) + fc2b_ref[d]

    # final encoder norm
    t = _ln(t, nw_ref[...], nb_ref[...])

    # decoder head: (Linear + GELU) * DEC_DEPTH, then final Linear (128-padded)
    for d in range(DEC_DEPTH):
        t = _gelu(_mm(t, hw_ref[d]) + hb_ref[d])
    y = _mm(t, ow_ref[...]) + ob_ref[...]                             # (L, OUT_PAD)
    o_ref[0] = y.astype(o_ref.dtype)


# -------------------------- sincos position embed --------------------------
def _get_1d_sincos(embed_dim, pos):
    omega = np.arange(embed_dim // 2, dtype=np.float64) / (embed_dim / 2.0)
    omega = 1.0 / 10000 ** omega
    out = np.einsum("m,d->md", pos.reshape(-1).astype(np.float64), omega)
    return np.concatenate([np.sin(out), np.cos(out)], axis=1)


def get_2d_sincos_pos_embed(embed_dim, grid_h, grid_w):
    gh = np.arange(grid_h, dtype=np.float32)
    gw = np.arange(grid_w, dtype=np.float32)
    grid = np.meshgrid(gw, gh)                      # w goes first (MAE convention)
    grid = np.stack(grid, axis=0).reshape(2, 1, grid_h, grid_w)
    emb_h = _get_1d_sincos(embed_dim // 2, grid[0])
    emb_w = _get_1d_sincos(embed_dim // 2, grid[1])
    return np.concatenate([emb_h, emb_w], axis=1).astype(np.float32)  # (L, D)


# ------------------------------ parameters ------------------------------
def init_params(key):
    n_rand = 1 + 4 * DEPTH + DEC_DEPTH + 1
    keys = iter(jax.random.split(key, n_rand))
    bf16 = jnp.bfloat16

    def trunc(shape, std=0.02):
        return jax.random.truncated_normal(next(keys), -2.0, 2.0, shape,
                                           jnp.float32) * std

    def stack(maker, n=DEPTH):
        return jnp.stack([maker() for _ in range(n)])

    params = {
        "pos": jnp.asarray(get_2d_sincos_pos_embed(EMBED, GRID_H, GRID_W)),  # (L, D)
        # patch-embed conv (k=stride=p) as an im2col matmul
        "patch_w": trunc((K_PATCH, EMBED)).astype(bf16),
        "patch_b": jnp.zeros((1, EMBED), jnp.float32),
        # stacked per-block weights (leading DEPTH axis, indexed statically in-kernel)
        "ln1_w": jnp.ones((DEPTH, 1, EMBED), jnp.float32),
        "ln1_b": jnp.zeros((DEPTH, 1, EMBED), jnp.float32),
        "qkv_w": stack(lambda: trunc((EMBED, 3 * EMBED))).astype(bf16),
        "qkv_b": jnp.zeros((DEPTH, 1, 3 * EMBED), jnp.float32),
        "proj_w": stack(lambda: trunc((EMBED, EMBED))).astype(bf16),
        "proj_b": jnp.zeros((DEPTH, 1, EMBED), jnp.float32),
        "ln2_w": jnp.ones((DEPTH, 1, EMBED), jnp.float32),
        "ln2_b": jnp.zeros((DEPTH, 1, EMBED), jnp.float32),
        "fc1_w": stack(lambda: trunc((EMBED, HIDDEN))).astype(bf16),
        "fc1_b": jnp.zeros((DEPTH, 1, HIDDEN), jnp.float32),
        "fc2_w": stack(lambda: trunc((HIDDEN, EMBED))).astype(bf16),
        "fc2_b": jnp.zeros((DEPTH, 1, EMBED), jnp.float32),
        "norm_w": jnp.ones((1, EMBED), jnp.float32),
        "norm_b": jnp.zeros((1, EMBED), jnp.float32),
        "head_w": stack(lambda: trunc((EMBED, EMBED)), DEC_DEPTH).astype(bf16),
        "head_b": jnp.zeros((DEC_DEPTH, 1, EMBED), jnp.float32),
    }
    # final head Linear, zero-padded from 48 -> 128 output columns (lane-dense stores)
    ow = trunc((EMBED, OUT_DIM))
    params["out_w"] = jnp.pad(ow, ((0, 0), (0, OUT_PAD - OUT_DIM))).astype(bf16)
    params["out_b"] = jnp.zeros((1, OUT_PAD), jnp.float32)
    return params


# ------------------------------ forward pass ------------------------------
def vit_forward(x, params):
    if x.ndim == 5:                                  # (B, C, T, H, W) -> flatten(1,2)
        x = x.reshape(x.shape[0], -1, x.shape[-2], x.shape[-1])
    B, C, H, W = x.shape
    p = PATCH
    h, w = H // p, W // p
    L = h * w

    # im2col for Conv2d(kernel=stride=p): (B, L, C*p*p)
    xp = (x.reshape(B, C, h, p, w, p)
            .transpose(0, 2, 4, 1, 3, 5)
            .reshape(B, L, C * p * p))

    def cspec(arr):
        nd = arr.ndim
        return pl.BlockSpec(arr.shape, lambda b, _nd=nd: (0,) * _nd)

    weights = (params["pos"], params["patch_w"], params["patch_b"],
               params["ln1_w"], params["ln1_b"], params["qkv_w"], params["qkv_b"],
               params["proj_w"], params["proj_b"], params["ln2_w"], params["ln2_b"],
               params["fc1_w"], params["fc1_b"], params["fc2_w"], params["fc2_b"],
               params["norm_w"], params["norm_b"],
               params["head_w"], params["head_b"],
               params["out_w"], params["out_b"])

    out = pl.pallas_call(
        _vit_kernel,
        out_shape=jax.ShapeDtypeStruct((B, L, OUT_PAD), jnp.float32),
        grid=(B,),
        in_specs=[pl.BlockSpec((1, L, C * p * p), lambda b: (b, 0, 0))]
                 + [cspec(a) for a in weights],
        out_specs=pl.BlockSpec((1, L, OUT_PAD), lambda b: (b, 0, 0)),
        compiler_params=pltpu.CompilerParams(dimension_semantics=("parallel",)),
    )(xp, *weights)

    # drop padding, then unpatchify: (B, L, V*p*p) -> (B, V, H, W)
    y = out[:, :, :OUT_CH * p * p]
    y = y.reshape(B, h, w, p, p, OUT_CH)
    y = jnp.einsum("nhwpqc->nchpwq", y)
    return y.reshape(B, OUT_CH, h * p, w * p)


# ---------------------------------- main ----------------------------------
if __name__ == "__main__":
    root = jax.random.PRNGKey(0)
    pkey, xkey = jax.random.split(root)
    params = init_params(pkey)
    # 5-D input (B, in_channels, history, H, W), flattened like the torch forward
    x = jax.random.normal(xkey, (2, IN_CH, HISTORY, IMG_H, IMG_W), jnp.float32)

    out = jax.jit(vit_forward)(x, params)
    out = jax.block_until_ready(out)
    assert out.shape == (2, OUT_CH, IMG_H, IMG_W), out.shape
    assert bool(jnp.all(jnp.isfinite(out)))
    print("KERNEL_OK")
</pallas_src>

<mosaic_0001>
module attributes {stable_mosaic.version = 11 : i64} {
  func.func @_vit_kernel(%arg0: i32, %arg1: memref<1x16x64xf32, #tpu.memory_space<vmem>>, %arg2: memref<16x128xf32, #tpu.memory_space<vmem>>, %arg3: memref<64x128xbf16, #tpu.memory_space<vmem>>, %arg4: memref<1x128xf32, #tpu.memory_space<vmem>>, %arg5: memref<2x1x128xf32, #tpu.memory_space<vmem>>, %arg6: memref<2x1x128xf32, #tpu.memory_space<vmem>>, %arg7: memref<2x128x384xbf16, #tpu.memory_space<vmem>>, %arg8: memref<2x1x384xf32, #tpu.memory_space<vmem>>, %arg9: memref<2x128x128xbf16, #tpu.memory_space<vmem>>, %arg10: memref<2x1x128xf32, #tpu.memory_space<vmem>>, %arg11: memref<2x1x128xf32, #tpu.memory_space<vmem>>, %arg12: memref<2x1x128xf32, #tpu.memory_space<vmem>>, %arg13: memref<2x128x512xbf16, #tpu.memory_space<vmem>>, %arg14: memref<2x1x512xf32, #tpu.memory_space<vmem>>, %arg15: memref<2x512x128xbf16, #tpu.memory_space<vmem>>, %arg16: memref<2x1x128xf32, #tpu.memory_space<vmem>>, %arg17: memref<1x128xf32, #tpu.memory_space<vmem>>, %arg18: memref<1x128xf32, #tpu.memory_space<vmem>>, %arg19: memref<2x128x128xbf16, #tpu.memory_space<vmem>>, %arg20: memref<2x1x128xf32, #tpu.memory_space<vmem>>, %arg21: memref<128x128xbf16, #tpu.memory_space<vmem>>, %arg22: memref<1x128xf32, #tpu.memory_space<vmem>>, %arg23: memref<1x16x128xf32, #tpu.memory_space<vmem>>) attributes {dimension_semantics = [#tpu.dimension_semantics<parallel>], iteration_bounds = array<i64: 2>, scalar_prefetch = 0 : i64, scratch_operands = 0 : i64, tpu.core_type = #tpu.core_type<tc>, window_params = [{transform_indices = @transform_0, window_bounds = array<i64: 1, 16, 64>}, {pipeline_mode = #tpu.pipeline_mode<synchronous>, transform_indices = @transform_1, window_bounds = array<i64: 16, 128>}, {pipeline_mode = #tpu.pipeline_mode<synchronous>, transform_indices = @transform_2, window_bounds = array<i64: 64, 128>}, {pipeline_mode = #tpu.pipeline_mode<synchronous>, transform_indices = @transform_3, window_bounds = array<i64: 1, 128>}, {pipeline_mode = #tpu.pipeline_mode<synchronous>, transform_indices = @transform_4, window_bounds = array<i64: 2, 1, 128>}, {pipeline_mode = #tpu.pipeline_mode<synchronous>, transform_indices = @transform_5, window_bounds = array<i64: 2, 1, 128>}, {pipeline_mode = #tpu.pipeline_mode<synchronous>, transform_indices = @transform_6, window_bounds = array<i64: 2, 128, 384>}, {pipeline_mode = #tpu.pipeline_mode<synchronous>, transform_indices = @transform_7, window_bounds = array<i64: 2, 1, 384>}, {pipeline_mode = #tpu.pipeline_mode<synchronous>, transform_indices = @transform_8, window_bounds = array<i64: 2, 128, 128>}, {pipeline_mode = #tpu.pipeline_mode<synchronous>, transform_indices = @transform_9, window_bounds = array<i64: 2, 1, 128>}, {pipeline_mode = #tpu.pipeline_mode<synchronous>, transform_indices = @transform_10, window_bounds = array<i64: 2, 1, 128>}, {pipeline_mode = #tpu.pipeline_mode<synchronous>, transform_indices = @transform_11, window_bounds = array<i64: 2, 1, 128>}, {pipeline_mode = #tpu.pipeline_mode<synchronous>, transform_indices = @transform_12, window_bounds = array<i64: 2, 128, 512>}, {pipeline_mode = #tpu.pipeline_mode<synchronous>, transform_indices = @transform_13, window_bounds = array<i64: 2, 1, 512>}, {pipeline_mode = #tpu.pipeline_mode<synchronous>, transform_indices = @transform_14, window_bounds = array<i64: 2, 512, 128>}, {pipeline_mode = #tpu.pipeline_mode<synchronous>, transform_indices = @transform_15, window_bounds = array<i64: 2, 1, 128>}, {pipeline_mode = #tpu.pipeline_mode<synchronous>, transform_indices = @transform_16, window_bounds = array<i64: 1, 128>}, {pipeline_mode = #tpu.pipeline_mode<synchronous>, transform_indices = @transform_17, window_bounds = array<i64: 1, 128>}, {pipeline_mode = #tpu.pipeline_mode<synchronous>, transform_indices = @transform_18, window_bounds = array<i64: 2, 128, 128>}, {pipeline_mode = #tpu.pipeline_mode<synchronous>, transform_indices = @transform_19, window_bounds = array<i64: 2, 1, 128>}, {pipeline_mode = #tpu.pipeline_mode<synchronous>, transform_indices = @transform_20, window_bounds = array<i64: 128, 128>}, {pipeline_mode = #tpu.pipeline_mode<synchronous>, transform_indices = @transform_21, window_bounds = array<i64: 1, 128>}, {transform_indices = @transform_22, window_bounds = array<i64: 1, 16, 128>}]} {
    %c0 = arith.constant 0 : index
    %c0_0 = arith.constant 0 : index
    %c0_1 = arith.constant 0 : index
    %0 = vector.load %arg1[%c0, %c0_0, %c0_1] : memref<1x16x64xf32, #tpu.memory_space<vmem>>, vector<1x16x64xf32>
    %1 = vector.shape_cast %0 : vector<1x16x64xf32> to vector<16x64xf32>
    %c0_2 = arith.constant 0 : index
    %c0_3 = arith.constant 0 : index
    %2 = vector.load %arg3[%c0_2, %c0_3] : memref<64x128xbf16, #tpu.memory_space<vmem>>, vector<64x128xbf16>
    %3 = arith.truncf %1 : vector<16x64xf32> to vector<16x64xbf16>
    %cst = arith.constant dense<0.000000e+00> : vector<16x128xf32>
    %4 = tpu.matmul %3, %2, %cst {dimension_numbers = #tpu.dot_dimension_numbers<[1], [0], [0], [1], [0, 0, 1, 1], [], []>} : vector<16x64xbf16>, vector<64x128xbf16>, vector<16x128xf32> -> vector<16x128xf32>
    %c0_4 = arith.constant 0 : index
    %c0_5 = arith.constant 0 : index
    %5 = vector.load %arg4[%c0_4, %c0_5] : memref<1x128xf32, #tpu.memory_space<vmem>>, vector<1x128xf32>
    %6 = vector.broadcast %5 : vector<1x128xf32> to vector<16x128xf32>
    %7 = arith.addf %4, %6 : vector<16x128xf32>
    %c0_6 = arith.constant 0 : index
    %c0_7 = arith.constant 0 : index
    %8 = vector.load %arg2[%c0_6, %c0_7] : memref<16x128xf32, #tpu.memory_space<vmem>>, vector<16x128xf32>
    %9 = arith.addf %7, %8 : vector<16x128xf32>
    %c0_8 = arith.constant 0 : index
    %c0_9 = arith.constant 0 : index
    %c0_10 = arith.constant 0 : index
    %10 = vector.load %arg5[%c0_8, %c0_9, %c0_10] : memref<2x1x128xf32, #tpu.memory_space<vmem>>, vector<1x1x128xf32>
    %11 = vector.shape_cast %10 : vector<1x1x128xf32> to vector<1x128xf32>
    %c0_11 = arith.constant 0 : index
    %c0_12 = arith.constant 0 : index
    %c0_13 = arith.constant 0 : index
    %12 = vector.load %arg6[%c0_11, %c0_12, %c0_13] : memref<2x1x128xf32, #tpu.memory_space<vmem>>, vector<1x1x128xf32>
    %13 = vector.shape_cast %12 : vector<1x1x128xf32> to vector<1x128xf32>
    %cst_14 = arith.constant dense<0.000000e+00> : vector<16xf32>
    %14 = vector.multi_reduction <add>, %9, %cst_14 [1] : vector<16x128xf32> to vector<16xf32>
    %15 = vector.shape_cast %14 : vector<16xf32> to vector<16x1xf32>
    %cst_15 = arith.constant 1.280000e+02 : f32
    %16 = vector.broadcast %cst_15 : f32 to vector<16x1xf32>
    %17 = arith.divf %15, %16 : vector<16x1xf32>
    %18 = vector.broadcast %17 : vector<16x1xf32> to vector<16x128xf32>
    %19 = arith.subf %9, %18 : vector<16x128xf32>
    %20 = arith.mulf %19, %19 : vector<16x128xf32>
    %cst_16 = arith.constant dense<0.000000e+00> : vector<16xf32>
    %21 = vector.multi_reduction <add>, %20, %cst_16 [1] : vector<16x128xf32> to vector<16xf32>
    %22 = vector.shape_cast %21 : vector<16xf32> to vector<16x1xf32>
    %cst_17 = arith.constant 1.280000e+02 : f32
    %23 = vector.broadcast %cst_17 : f32 to vector<16x1xf32>
    %24 = arith.divf %22, %23 : vector<16x1xf32>
    %cst_18 = arith.constant 9.99999974E-6 : f32
    %25 = vector.broadcast %cst_18 : f32 to vector<16x1xf32>
    %26 = arith.addf %24, %25 : vector<16x1xf32>
    %27 = math.rsqrt %26 : vector<16x1xf32>
    %28 = vector.broadcast %27 : vector<16x1xf32> to vector<16x128xf32>
    %29 = arith.mulf %19, %28 : vector<16x128xf32>
    %30 = vector.broadcast %11 : vector<1x128xf32> to vector<16x128xf32>
    %31 = arith.mulf %29, %30 : vector<16x128xf32>
    %32 = vector.broadcast %13 : vector<1x128xf32> to vector<16x128xf32>
    %33 = arith.addf %31, %32 : vector<16x128xf32>
    %c0_19 = arith.constant 0 : index
    %c0_20 = arith.constant 0 : index
    %c0_21 = arith.constant 0 : index
    %34 = vector.load %arg7[%c0_19, %c0_20, %c0_21] : memref<2x128x384xbf16, #tpu.memory_space<vmem>>, vector<1x128x384xbf16>
    %35 = vector.shape_cast %34 : vector<1x128x384xbf16> to vector<128x384xbf16>
    %36 = arith.truncf %33 : vector<16x128xf32> to vector<16x128xbf16>
    %cst_22 = arith.constant dense<0.000000e+00> : vector<16x384xf32>
    %37 = tpu.matmul %36, %35, %cst_22 {dimension_numbers = #tpu.dot_dimension_numbers<[1], [0], [0], [1], [0, 0, 1, 1], [], []>} : vector<16x128xbf16>, vector<128x384xbf16>, vector<16x384xf32> -> vector<16x384xf32>
    %c0_23 = arith.constant 0 : index
    %c0_24 = arith.constant 0 : index
    %c0_25 = arith.constant 0 : index
    %38 = vector.load %arg8[%c0_23, %c0_24, %c0_25] : memref<2x1x384xf32, #tpu.memory_space<vmem>>, vector<1x1x384xf32>
    %39 = vector.shape_cast %38 : vector<1x1x384xf32> to vector<1x384xf32>
    %40 = vector.broadcast %39 : vector<1x384xf32> to vector<16x384xf32>
    %41 = arith.addf %37, %40 : vector<16x384xf32>
    %42 = vector.extract_strided_slice %41 {offsets = [0, 0], sizes = [16, 32], strides = [1, 1]} : vector<16x384xf32> to vector<16x32xf32>
    %43 = vector.extract_strided_slice %41 {offsets = [0, 128], sizes = [16, 32], strides = [1, 1]} : vector<16x384xf32> to vector<16x32xf32>
    %44 = vector.extract_strided_slice %41 {offsets = [0, 256], sizes = [16, 32], strides = [1, 1]} : vector<16x384xf32> to vector<16x32xf32>
    %cst_26 = arith.constant dense<0.000000e+00> : vector<16x16xf32>
    %45 = tpu.matmul %42, %43, %cst_26 {dimension_numbers = #tpu.dot_dimension_numbers<[1], [1], [0], [0], [0, 0, 1, 0], [], []>} : vector<16x32xf32>, vector<16x32xf32>, vector<16x16xf32> -> vector<16x16xf32>
    %cst_27 = arith.constant 0.176776692 : f32
    %46 = vector.broadcast %cst_27 : f32 to vector<16x16xf32>
    %47 = arith.mulf %45, %46 : vector<16x16xf32>
    %cst_28 = arith.constant dense<0xFF800000> : vector<16xf32>
    %48 = vector.multi_reduction <maximumf>, %47, %cst_28 [1] : vector<16x16xf32> to vector<16xf32>
    %49 = vector.shape_cast %48 : vector<16xf32> to vector<16x1xf32>
    %50 = vector.broadcast %49 : vector<16x1xf32> to vector<16x16xf32>
    %51 = arith.subf %47, %50 : vector<16x16xf32>
    %52 = math.exp %51 : vector<16x16xf32>
    %cst_29 = arith.constant dense<0.000000e+00> : vector<16xf32>
    %53 = vector.multi_reduction <add>, %52, %cst_29 [1] : vector<16x16xf32> to vector<16xf32>
    %54 = vector.shape_cast %53 : vector<16xf32> to vector<16x1xf32>
    %55 = vector.broadcast %54 : vector<16x1xf32> to vector<16x16xf32>
    %56 = arith.divf %52, %55 : vector<16x16xf32>
    %cst_30 = arith.constant dense<0.000000e+00> : vector<16x32xf32>
    %57 = tpu.matmul %56, %44, %cst_30 {dimension_numbers = #tpu.dot_dimension_numbers<[1], [0], [0], [1], [0, 0, 1, 1], [], []>} : vector<16x16xf32>, vector<16x32xf32>, vector<16x32xf32> -> vector<16x32xf32>
    %58 = vector.extract_strided_slice %41 {offsets = [0, 32], sizes = [16, 32], strides = [1, 1]} : vector<16x384xf32> to vector<16x32xf32>
    %59 = vector.extract_strided_slice %41 {offsets = [0, 160], sizes = [16, 32], strides = [1, 1]} : vector<16x384xf32> to vector<16x32xf32>
    %60 = vector.extract_strided_slice %41 {offsets = [0, 288], sizes = [16, 32], strides = [1, 1]} : vector<16x384xf32> to vector<16x32xf32>
    %cst_31 = arith.constant dense<0.000000e+00> : vector<16x16xf32>
    %61 = tpu.matmul %58, %59, %cst_31 {dimension_numbers = #tpu.dot_dimension_numbers<[1], [1], [0], [0], [0, 0, 1, 0], [], []>} : vector<16x32xf32>, vector<16x32xf32>, vector<16x16xf32> -> vector<16x16xf32>
    %cst_32 = arith.constant 0.176776692 : f32
    %62 = vector.broadcast %cst_32 : f32 to vector<16x16xf32>
    %63 = arith.mulf %61, %62 : vector<16x16xf32>
    %cst_33 = arith.constant dense<0xFF800000> : vector<16xf32>
    %64 = vector.multi_reduction <maximumf>, %63, %cst_33 [1] : vector<16x16xf32> to vector<16xf32>
    %65 = vector.shape_cast %64 : vector<16xf32> to vector<16x1xf32>
    %66 = vector.broadcast %65 : vector<16x1xf32> to vector<16x16xf32>
    %67 = arith.subf %63, %66 : vector<16x16xf32>
    %68 = math.exp %67 : vector<16x16xf32>
    %cst_34 = arith.constant dense<0.000000e+00> : vector<16xf32>
    %69 = vector.multi_reduction <add>, %68, %cst_34 [1] : vector<16x16xf32> to vector<16xf32>
    %70 = vector.shape_cast %69 : vector<16xf32> to vector<16x1xf32>
    %71 = vector.broadcast %70 : vector<16x1xf32> to vector<16x16xf32>
    %72 = arith.divf %68, %71 : vector<16x16xf32>
    %cst_35 = arith.constant dense<0.000000e+00> : vector<16x32xf32>
    %73 = tpu.matmul %72, %60, %cst_35 {dimension_numbers = #tpu.dot_dimension_numbers<[1], [0], [0], [1], [0, 0, 1, 1], [], []>} : vector<16x16xf32>, vector<16x32xf32>, vector<16x32xf32> -> vector<16x32xf32>
    %74 = vector.extract_strided_slice %41 {offsets = [0, 64], sizes = [16, 32], strides = [1, 1]} : vector<16x384xf32> to vector<16x32xf32>
    %75 = vector.extract_strided_slice %41 {offsets = [0, 192], sizes = [16, 32], strides = [1, 1]} : vector<16x384xf32> to vector<16x32xf32>
    %76 = vector.extract_strided_slice %41 {offsets = [0, 320], sizes = [16, 32], strides = [1, 1]} : vector<16x384xf32> to vector<16x32xf32>
    %cst_36 = arith.constant dense<0.000000e+00> : vector<16x16xf32>
    %77 = tpu.matmul %74, %75, %cst_36 {dimension_numbers = #tpu.dot_dimension_numbers<[1], [1], [0], [0], [0, 0, 1, 0], [], []>} : vector<16x32xf32>, vector<16x32xf32>, vector<16x16xf32> -> vector<16x16xf32>
    %cst_37 = arith.constant 0.176776692 : f32
    %78 = vector.broadcast %cst_37 : f32 to vector<16x16xf32>
    %79 = arith.mulf %77, %78 : vector<16x16xf32>
    %cst_38 = arith.constant dense<0xFF800000> : vector<16xf32>
    %80 = vector.multi_reduction <maximumf>, %79, %cst_38 [1] : vector<16x16xf32> to vector<16xf32>
    %81 = vector.shape_cast %80 : vector<16xf32> to vector<16x1xf32>
    %82 = vector.broadcast %81 : vector<16x1xf32> to vector<16x16xf32>
    %83 = arith.subf %79, %82 : vector<16x16xf32>
    %84 = math.exp %83 : vector<16x16xf32>
    %cst_39 = arith.constant dense<0.000000e+00> : vector<16xf32>
    %85 = vector.multi_reduction <add>, %84, %cst_39 [1] : vector<16x16xf32> to vector<16xf32>
    %86 = vector.shape_cast %85 : vector<16xf32> to vector<16x1xf32>
    %87 = vector.broadcast %86 : vector<16x1xf32> to vector<16x16xf32>
    %88 = arith.divf %84, %87 : vector<16x16xf32>
    %cst_40 = arith.constant dense<0.000000e+00> : vector<16x32xf32>
    %89 = tpu.matmul %88, %76, %cst_40 {dimension_numbers = #tpu.dot_dimension_numbers<[1], [0], [0], [1], [0, 0, 1, 1], [], []>} : vector<16x16xf32>, vector<16x32xf32>, vector<16x32xf32> -> vector<16x32xf32>
    %90 = vector.extract_strided_slice %41 {offsets = [0, 96], sizes = [16, 32], strides = [1, 1]} : vector<16x384xf32> to vector<16x32xf32>
    %91 = vector.extract_strided_slice %41 {offsets = [0, 224], sizes = [16, 32], strides = [1, 1]} : vector<16x384xf32> to vector<16x32xf32>
    %92 = vector.extract_strided_slice %41 {offsets = [0, 352], sizes = [16, 32], strides = [1, 1]} : vector<16x384xf32> to vector<16x32xf32>
    %cst_41 = arith.constant dense<0.000000e+00> : vector<16x16xf32>
    %93 = tpu.matmul %90, %91, %cst_41 {dimension_numbers = #tpu.dot_dimension_numbers<[1], [1], [0], [0], [0, 0, 1, 0], [], []>} : vector<16x32xf32>, vector<16x32xf32>, vector<16x16xf32> -> vector<16x16xf32>
    %cst_42 = arith.constant 0.176776692 : f32
    %94 = vector.broadcast %cst_42 : f32 to vector<16x16xf32>
    %95 = arith.mulf %93, %94 : vector<16x16xf32>
    %cst_43 = arith.constant dense<0xFF800000> : vector<16xf32>
    %96 = vector.multi_reduction <maximumf>, %95, %cst_43 [1] : vector<16x16xf32> to vector<16xf32>
    %97 = vector.shape_cast %96 : vector<16xf32> to vector<16x1xf32>
    %98 = vector.broadcast %97 : vector<16x1xf32> to vector<16x16xf32>
    %99 = arith.subf %95, %98 : vector<16x16xf32>
    %100 = math.exp %99 : vector<16x16xf32>
    %cst_44 = arith.constant dense<0.000000e+00> : vector<16xf32>
    %101 = vector.multi_reduction <add>, %100, %cst_44 [1] : vector<16x16xf32> to vector<16xf32>
    %102 = vector.shape_cast %101 : vector<16xf32> to vector<16x1xf32>
    %103 = vector.broadcast %102 : vector<16x1xf32> to vector<16x16xf32>
    %104 = arith.divf %100, %103 : vector<16x16xf32>
    %cst_45 = arith.constant dense<0.000000e+00> : vector<16x32xf32>
    %105 = tpu.matmul %104, %92, %cst_45 {dimension_numbers = #tpu.dot_dimension_numbers<[1], [0], [0], [1], [0, 0, 1, 1], [], []>} : vector<16x16xf32>, vector<16x32xf32>, vector<16x32xf32> -> vector<16x32xf32>
    %106 = tpu.concatenate %57, %73, %89, %105 in 1 : vector<16x32xf32>, vector<16x32xf32>, vector<16x32xf32>, vector<16x32xf32> -> vector<16x128xf32>
    %c0_46 = arith.constant 0 : index
    %c0_47 = arith.constant 0 : index
    %c0_48 = arith.constant 0 : index
    %107 = vector.load %arg9[%c0_46, %c0_47, %c0_48] : memref<2x128x128xbf16, #tpu.memory_space<vmem>>, vector<1x128x128xbf16>
    %108 = vector.shape_cast %107 : vector<1x128x128xbf16> to vector<128x128xbf16>
    %109 = arith.truncf %106 : vector<16x128xf32> to vector<16x128xbf16>
    %cst_49 = arith.constant dense<0.000000e+00> : vector<16x128xf32>
    %110 = tpu.matmul %109, %108, %cst_49 {dimension_numbers = #tpu.dot_dimension_numbers<[1], [0], [0], [1], [0, 0, 1, 1], [], []>} : vector<16x128xbf16>, vector<128x128xbf16>, vector<16x128xf32> -> vector<16x128xf32>
    %111 = arith.addf %9, %110 : vector<16x128xf32>
    %c0_50 = arith.constant 0 : index
    %c0_51 = arith.constant 0 : index
    %c0_52 = arith.constant 0 : index
    %112 = vector.load %arg10[%c0_50, %c0_51, %c0_52] : memref<2x1x128xf32, #tpu.memory_space<vmem>>, vector<1x1x128xf32>
    %113 = vector.shape_cast %112 : vector<1x1x128xf32> to vector<1x128xf32>
    %114 = vector.broadcast %113 : vector<1x128xf32> to vector<16x128xf32>
    %115 = arith.addf %111, %114 : vector<16x128xf32>
    %c0_53 = arith.constant 0 : index
    %c0_54 = arith.constant 0 : index
    %c0_55 = arith.constant 0 : index
    %116 = vector.load %arg11[%c0_53, %c0_54, %c0_55] : memref<2x1x128xf32, #tpu.memory_space<vmem>>, vector<1x1x128xf32>
    %117 = vector.shape_cast %116 : vector<1x1x128xf32> to vector<1x128xf32>
    %c0_56 = arith.constant 0 : index
    %c0_57 = arith.constant 0 : index
    %c0_58 = arith.constant 0 : index
    %118 = vector.load %arg12[%c0_56, %c0_57, %c0_58] : memref<2x1x128xf32, #tpu.memory_space<vmem>>, vector<1x1x128xf32>
    %119 = vector.shape_cast %118 : vector<1x1x128xf32> to vector<1x128xf32>
    %cst_59 = arith.constant dense<0.000000e+00> : vector<16xf32>
    %120 = vector.multi_reduction <add>, %115, %cst_59 [1] : vector<16x128xf32> to vector<16xf32>
    %121 = vector.shape_cast %120 : vector<16xf32> to vector<16x1xf32>
    %cst_60 = arith.constant 1.280000e+02 : f32
    %122 = vector.broadcast %cst_60 : f32 to vector<16x1xf32>
    %123 = arith.divf %121, %122 : vector<16x1xf32>
    %124 = vector.broadcast %123 : vector<16x1xf32> to vector<16x128xf32>
    %125 = arith.subf %115, %124 : vector<16x128xf32>
    %126 = arith.mulf %125, %125 : vector<16x128xf32>
    %cst_61 = arith.constant dense<0.000000e+00> : vector<16xf32>
    %127 = vector.multi_reduction <add>, %126, %cst_61 [1] : vector<16x128xf32> to vector<16xf32>
    %128 = vector.shape_cast %127 : vector<16xf32> to vector<16x1xf32>
    %cst_62 = arith.constant 1.280000e+02 : f32
    %129 = vector.broadcast %cst_62 : f32 to vector<16x1xf32>
    %130 = arith.divf %128, %129 : vector<16x1xf32>
    %cst_63 = arith.constant 9.99999974E-6 : f32
    %131 = vector.broadcast %cst_63 : f32 to vector<16x1xf32>
    %132 = arith.addf %130, %131 : vector<16x1xf32>
    %133 = math.rsqrt %132 : vector<16x1xf32>
    %134 = vector.broadcast %133 : vector<16x1xf32> to vector<16x128xf32>
    %135 = arith.mulf %125, %134 : vector<16x128xf32>
    %136 = vector.broadcast %117 : vector<1x128xf32> to vector<16x128xf32>
    %137 = arith.mulf %135, %136 : vector<16x128xf32>
    %138 = vector.broadcast %119 : vector<1x128xf32> to vector<16x128xf32>
    %139 = arith.addf %137, %138 : vector<16x128xf32>
    %c0_64 = arith.constant 0 : index
    %c0_65 = arith.constant 0 : index
    %c0_66 = arith.constant 0 : index
    %140 = vector.load %arg13[%c0_64, %c0_65, %c0_66] : memref<2x128x512xbf16, #tpu.memory_space<vmem>>, vector<1x128x512xbf16>
    %141 = vector.shape_cast %140 : vector<1x128x512xbf16> to vector<128x512xbf16>
    %142 = arith.truncf %139 : vector<16x128xf32> to vector<16x128xbf16>
    %cst_67 = arith.constant dense<0.000000e+00> : vector<16x512xf32>
    %143 = tpu.matmul %142, %141, %cst_67 {dimension_numbers = #tpu.dot_dimension_numbers<[1], [0], [0], [1], [0, 0, 1, 1], [], []>} : vector<16x128xbf16>, vector<128x512xbf16>, vector<16x512xf32> -> vector<16x512xf32>
    %c0_68 = arith.constant 0 : index
    %c0_69 = arith.constant 0 : index
    %c0_70 = arith.constant 0 : index
    %144 = vector.load %arg14[%c0_68, %c0_69, %c0_70] : memref<2x1x512xf32, #tpu.memory_space<vmem>>, vector<1x1x512xf32>
    %145 = vector.shape_cast %144 : vector<1x1x512xf32> to vector<1x512xf32>
    %146 = vector.broadcast %145 : vector<1x512xf32> to vector<16x512xf32>
    %147 = arith.addf %143, %146 : vector<16x512xf32>
    %cst_71 = arith.constant 5.000000e-01 : f32
    %148 = vector.broadcast %cst_71 : f32 to vector<16x512xf32>
    %149 = arith.mulf %148, %147 : vector<16x512xf32>
    %cst_72 = arith.constant 0.707106769 : f32
    %150 = vector.broadcast %cst_72 : f32 to vector<16x512xf32>
    %151 = arith.mulf %147, %150 : vector<16x512xf32>
    %152 = math.erf %151 : vector<16x512xf32>
    %cst_73 = arith.constant 1.000000e+00 : f32
    %153 = vector.broadcast %cst_73 : f32 to vector<16x512xf32>
    %154 = arith.addf %153, %152 : vector<16x512xf32>
    %155 = arith.mulf %149, %154 : vector<16x512xf32>
    %c0_74 = arith.constant 0 : index
    %c0_75 = arith.constant 0 : index
    %c0_76 = arith.constant 0 : index
    %156 = vector.load %arg15[%c0_74, %c0_75, %c0_76] : memref<2x512x128xbf16, #tpu.memory_space<vmem>>, vector<1x512x128xbf16>
    %157 = vector.shape_cast %156 : vector<1x512x128xbf16> to vector<512x128xbf16>
    %158 = arith.truncf %155 : vector<16x512xf32> to vector<16x512xbf16>
    %cst_77 = arith.constant dense<0.000000e+00> : vector<16x128xf32>
    %159 = tpu.matmul %158, %157, %cst_77 {dimension_numbers = #tpu.dot_dimension_numbers<[1], [0], [0], [1], [0, 0, 1, 1], [], []>} : vector<16x512xbf16>, vector<512x128xbf16>, vector<16x128xf32> -> vector<16x128xf32>
    %160 = arith.addf %115, %159 : vector<16x128xf32>
    %c0_78 = arith.constant 0 : index
    %c0_79 = arith.constant 0 : index
    %c0_80 = arith.constant 0 : index
    %161 = vector.load %arg16[%c0_78, %c0_79, %c0_80] : memref<2x1x128xf32, #tpu.memory_space<vmem>>, vector<1x1x128xf32>
    %162 = vector.shape_cast %161 : vector<1x1x128xf32> to vector<1x128xf32>
    %163 = vector.broadcast %162 : vector<1x128xf32> to vector<16x128xf32>
    %164 = arith.addf %160, %163 : vector<16x128xf32>
    %c1 = arith.constant 1 : index
    %c0_81 = arith.constant 0 : index
    %c0_82 = arith.constant 0 : index
    %165 = vector.load %arg5[%c1, %c0_81, %c0_82] : memref<2x1x128xf32, #tpu.memory_space<vmem>>, vector<1x1x128xf32>
    %166 = vector.shape_cast %165 : vector<1x1x128xf32> to vector<1x128xf32>
    %c1_83 = arith.constant 1 : index
    %c0_84 = arith.constant 0 : index
    %c0_85 = arith.constant 0 : index
    %167 = vector.load %arg6[%c1_83, %c0_84, %c0_85] : memref<2x1x128xf32, #tpu.memory_space<vmem>>, vector<1x1x128xf32>
    %168 = vector.shape_cast %167 : vector<1x1x128xf32> to vector<1x128xf32>
    %cst_86 = arith.constant dense<0.000000e+00> : vector<16xf32>
    %169 = vector.multi_reduction <add>, %164, %cst_86 [1] : vector<16x128xf32> to vector<16xf32>
    %170 = vector.shape_cast %169 : vector<16xf32> to vector<16x1xf32>
    %cst_87 = arith.constant 1.280000e+02 : f32
    %171 = vector.broadcast %cst_87 : f32 to vector<16x1xf32>
    %172 = arith.divf %170, %171 : vector<16x1xf32>
    %173 = vector.broadcast %172 : vector<16x1xf32> to vector<16x128xf32>
    %174 = arith.subf %164, %173 : vector<16x128xf32>
    %175 = arith.mulf %174, %174 : vector<16x128xf32>
    %cst_88 = arith.constant dense<0.000000e+00> : vector<16xf32>
    %176 = vector.multi_reduction <add>, %175, %cst_88 [1] : vector<16x128xf32> to vector<16xf32>
    %177 = vector.shape_cast %176 : vector<16xf32> to vector<16x1xf32>
    %cst_89 = arith.constant 1.280000e+02 : f32
    %178 = vector.broadcast %cst_89 : f32 to vector<16x1xf32>
    %179 = arith.divf %177, %178 : vector<16x1xf32>
    %cst_90 = arith.constant 9.99999974E-6 : f32
    %180 = vector.broadcast %cst_90 : f32 to vector<16x1xf32>
    %181 = arith.addf %179, %180 : vector<16x1xf32>
    %182 = math.rsqrt %181 : vector<16x1xf32>
    %183 = vector.broadcast %182 : vector<16x1xf32> to vector<16x128xf32>
    %184 = arith.mulf %174, %183 : vector<16x128xf32>
    %185 = vector.broadcast %166 : vector<1x128xf32> to vector<16x128xf32>
    %186 = arith.mulf %184, %185 : vector<16x128xf32>
    %187 = vector.broadcast %168 : vector<1x128xf32> to vector<16x128xf32>
    %188 = arith.addf %186, %187 : vector<16x128xf32>
    %c1_91 = arith.constant 1 : index
    %c0_92 = arith.constant 0 : index
    %c0_93 = arith.constant 0 : index
    %189 = vector.load %arg7[%c1_91, %c0_92, %c0_93] : memref<2x128x384xbf16, #tpu.memory_space<vmem>>, vector<1x128x384xbf16>
    %190 = vector.shape_cast %189 : vector<1x128x384xbf16> to vector<128x384xbf16>
    %191 = arith.truncf %188 : vector<16x128xf32> to vector<16x128xbf16>
    %cst_94 = arith.constant dense<0.000000e+00> : vector<16x384xf32>
    %192 = tpu.matmul %191, %190, %cst_94 {dimension_numbers = #tpu.dot_dimension_numbers<[1], [0], [0], [1], [0, 0, 1, 1], [], []>} : vector<16x128xbf16>, vector<128x384xbf16>, vector<16x384xf32> -> vector<16x384xf32>
    %c1_95 = arith.constant 1 : index
    %c0_96 = arith.constant 0 : index
    %c0_97 = arith.constant 0 : index
    %193 = vector.load %arg8[%c1_95, %c0_96, %c0_97] : memref<2x1x384xf32, #tpu.memory_space<vmem>>, vector<1x1x384xf32>
    %194 = vector.shape_cast %193 : vector<1x1x384xf32> to vector<1x384xf32>
    %195 = vector.broadcast %194 : vector<1x384xf32> to vector<16x384xf32>
    %196 = arith.addf %192, %195 : vector<16x384xf32>
    %197 = vector.extract_strided_slice %196 {offsets = [0, 0], sizes = [16, 32], strides = [1, 1]} : vector<16x384xf32> to vector<16x32xf32>
    %198 = vector.extract_strided_slice %196 {offsets = [0, 128], sizes = [16, 32], strides = [1, 1]} : vector<16x384xf32> to vector<16x32xf32>
    %199 = vector.extract_strided_slice %196 {offsets = [0, 256], sizes = [16, 32], strides = [1, 1]} : vector<16x384xf32> to vector<16x32xf32>
    %cst_98 = arith.constant dense<0.000000e+00> : vector<16x16xf32>
    %200 = tpu.matmul %197, %198, %cst_98 {dimension_numbers = #tpu.dot_dimension_numbers<[1], [1], [0], [0], [0, 0, 1, 0], [], []>} : vector<16x32xf32>, vector<16x32xf32>, vector<16x16xf32> -> vector<16x16xf32>
    %cst_99 = arith.constant 0.176776692 : f32
    %201 = vector.broadcast %cst_99 : f32 to vector<16x16xf32>
    %202 = arith.mulf %200, %201 : vector<16x16xf32>
    %cst_100 = arith.constant dense<0xFF800000> : vector<16xf32>
    %203 = vector.multi_reduction <maximumf>, %202, %cst_100 [1] : vector<16x16xf32> to vector<16xf32>
    %204 = vector.shape_cast %203 : vector<16xf32> to vector<16x1xf32>
    %205 = vector.broadcast %204 : vector<16x1xf32> to vector<16x16xf32>
    %206 = arith.subf %202, %205 : vector<16x16xf32>
    %207 = math.exp %206 : vector<16x16xf32>
    %cst_101 = arith.constant dense<0.000000e+00> : vector<16xf32>
    %208 = vector.multi_reduction <add>, %207, %cst_101 [1] : vector<16x16xf32> to vector<16xf32>
    %209 = vector.shape_cast %208 : vector<16xf32> to vector<16x1xf32>
    %210 = vector.broadcast %209 : vector<16x1xf32> to vector<16x16xf32>
    %211 = arith.divf %207, %210 : vector<16x16xf32>
    %cst_102 = arith.constant dense<0.000000e+00> : vector<16x32xf32>
    %212 = tpu.matmul %211, %199, %cst_102 {dimension_numbers = #tpu.dot_dimension_numbers<[1], [0], [0], [1], [0, 0, 1, 1], [], []>} : vector<16x16xf32>, vector<16x32xf32>, vector<16x32xf32> -> vector<16x32xf32>
    %213 = vector.extract_strided_slice %196 {offsets = [0, 32], sizes = [16, 32], strides = [1, 1]} : vector<16x384xf32> to vector<16x32xf32>
    %214 = vector.extract_strided_slice %196 {offsets = [0, 160], sizes = [16, 32], strides = [1, 1]} : vector<16x384xf32> to vector<16x32xf32>
    %215 = vector.extract_strided_slice %196 {offsets = [0, 288], sizes = [16, 32], strides = [1, 1]} : vector<16x384xf32> to vector<16x32xf32>
    %cst_103 = arith.constant dense<0.000000e+00> : vector<16x16xf32>
    %216 = tpu.matmul %213, %214, %cst_103 {dimension_numbers = #tpu.dot_dimension_numbers<[1], [1], [0], [0], [0, 0, 1, 0], [], []>} : vector<16x32xf32>, vector<16x32xf32>, vector<16x16xf32> -> vector<16x16xf32>
    %cst_104 = arith.constant 0.176776692 : f32
    %217 = vector.broadcast %cst_104 : f32 to vector<16x16xf32>
    %218 = arith.mulf %216, %217 : vector<16x16xf32>
    %cst_105 = arith.constant dense<0xFF800000> : vector<16xf32>
    %219 = vector.multi_reduction <maximumf>, %218, %cst_105 [1] : vector<16x16xf32> to vector<16xf32>
    %220 = vector.shape_cast %219 : vector<16xf32> to vector<16x1xf32>
    %221 = vector.broadcast %220 : vector<16x1xf32> to vector<16x16xf32>
    %222 = arith.subf %218, %221 : vector<16x16xf32>
    %223 = math.exp %222 : vector<16x16xf32>
    %cst_106 = arith.constant dense<0.000000e+00> : vector<16xf32>
    %224 = vector.multi_reduction <add>, %223, %cst_106 [1] : vector<16x16xf32> to vector<16xf32>
    %225 = vector.shape_cast %224 : vector<16xf32> to vector<16x1xf32>
    %226 = vector.broadcast %225 : vector<16x1xf32> to vector<16x16xf32>
    %227 = arith.divf %223, %226 : vector<16x16xf32>
    %cst_107 = arith.constant dense<0.000000e+00> : vector<16x32xf32>
    %228 = tpu.matmul %227, %215, %cst_107 {dimension_numbers = #tpu.dot_dimension_numbers<[1], [0], [0], [1], [0, 0, 1, 1], [], []>} : vector<16x16xf32>, vector<16x32xf32>, vector<16x32xf32> -> vector<16x32xf32>
    %229 = vector.extract_strided_slice %196 {offsets = [0, 64], sizes = [16, 32], strides = [1, 1]} : vector<16x384xf32> to vector<16x32xf32>
    %230 = vector.extract_strided_slice %196 {offsets = [0, 192], sizes = [16, 32], strides = [1, 1]} : vector<16x384xf32> to vector<16x32xf32>
    %231 = vector.extract_strided_slice %196 {offsets = [0, 320], sizes = [16, 32], strides = [1, 1]} : vector<16x384xf32> to vector<16x32xf32>
    %cst_108 = arith.constant dense<0.000000e+00> : vector<16x16xf32>
    %232 = tpu.matmul %229, %230, %cst_108 {dimension_numbers = #tpu.dot_dimension_numbers<[1], [1], [0], [0], [0, 0, 1, 0], [], []>} : vector<16x32xf32>, vector<16x32xf32>, vector<16x16xf32> -> vector<16x16xf32>
    %cst_109 = arith.constant 0.176776692 : f32
    %233 = vector.broadcast %cst_109 : f32 to vector<16x16xf32>
    %234 = arith.mulf %232, %233 : vector<16x16xf32>
    %cst_110 = arith.constant dense<0xFF800000> : vector<16xf32>
    %235 = vector.multi_reduction <maximumf>, %234, %cst_110 [1] : vector<16x16xf32> to vector<16xf32>
    %236 = vector.shape_cast %235 : vector<16xf32> to vector<16x1xf32>
    %237 = vector.broadcast %236 : vector<16x1xf32> to vector<16x16xf32>
    %238 = arith.subf %234, %237 : vector<16x16xf32>
    %239 = math.exp %238 : vector<16x16xf32>
    %cst_111 = arith.constant dense<0.000000e+00> : vector<16xf32>
    %240 = vector.multi_reduction <add>, %239, %cst_111 [1] : vector<16x16xf32> to vector<16xf32>
    %241 = vector.shape_cast %240 : vector<16xf32> to vector<16x1xf32>
    %242 = vector.broadcast %241 : vector<16x1xf32> to vector<16x16xf32>
    %243 = arith.divf %239, %242 : vector<16x16xf32>
    %cst_112 = arith.constant dense<0.000000e+00> : vector<16x32xf32>
    %244 = tpu.matmul %243, %231, %cst_112 {dimension_numbers = #tpu.dot_dimension_numbers<[1], [0], [0], [1], [0, 0, 1, 1], [], []>} : vector<16x16xf32>, vector<16x32xf32>, vector<16x32xf32> -> vector<16x32xf32>
    %245 = vector.extract_strided_slice %196 {offsets = [0, 96], sizes = [16, 32], strides = [1, 1]} : vector<16x384xf32> to vector<16x32xf32>
    %246 = vector.extract_strided_slice %196 {offsets = [0, 224], sizes = [16, 32], strides = [1, 1]} : vector<16x384xf32> to vector<16x32xf32>
    %247 = vector.extract_strided_slice %196 {offsets = [0, 352], sizes = [16, 32], strides = [1, 1]} : vector<16x384xf32> to vector<16x32xf32>
    %cst_113 = arith.constant dense<0.000000e+00> : vector<16x16xf32>
    %248 = tpu.matmul %245, %246, %cst_113 {dimension_numbers = #tpu.dot_dimension_numbers<[1], [1], [0], [0], [0, 0, 1, 0], [], []>} : vector<16x32xf32>, vector<16x32xf32>, vector<16x16xf32> -> vector<16x16xf32>
    %cst_114 = arith.constant 0.176776692 : f32
    %249 = vector.broadcast %cst_114 : f32 to vector<16x16xf32>
    %250 = arith.mulf %248, %249 : vector<16x16xf32>
    %cst_115 = arith.constant dense<0xFF800000> : vector<16xf32>
    %251 = vector.multi_reduction <maximumf>, %250, %cst_115 [1] : vector<16x16xf32> to vector<16xf32>
    %252 = vector.shape_cast %251 : vector<16xf32> to vector<16x1xf32>
    %253 = vector.broadcast %252 : vector<16x1xf32> to vector<16x16xf32>
    %254 = arith.subf %250, %253 : vector<16x16xf32>
    %255 = math.exp %254 : vector<16x16xf32>
    %cst_116 = arith.constant dense<0.000000e+00> : vector<16xf32>
    %256 = vector.multi_reduction <add>, %255, %cst_116 [1] : vector<16x16xf32> to vector<16xf32>
    %257 = vector.shape_cast %256 : vector<16xf32> to vector<16x1xf32>
    %258 = vector.broadcast %257 : vector<16x1xf32> to vector<16x16xf32>
    %259 = arith.divf %255, %258 : vector<16x16xf32>
    %cst_117 = arith.constant dense<0.000000e+00> : vector<16x32xf32>
    %260 = tpu.matmul %259, %247, %cst_117 {dimension_numbers = #tpu.dot_dimension_numbers<[1], [0], [0], [1], [0, 0, 1, 1], [], []>} : vector<16x16xf32>, vector<16x32xf32>, vector<16x32xf32> -> vector<16x32xf32>
    %261 = tpu.concatenate %212, %228, %244, %260 in 1 : vector<16x32xf32>, vector<16x32xf32>, vector<16x32xf32>, vector<16x32xf32> -> vector<16x128xf32>
    %c1_118 = arith.constant 1 : index
    %c0_119 = arith.constant 0 : index
    %c0_120 = arith.constant 0 : index
    %262 = vector.load %arg9[%c1_118, %c0_119, %c0_120] : memref<2x128x128xbf16, #tpu.memory_space<vmem>>, vector<1x128x128xbf16>
    %263 = vector.shape_cast %262 : vector<1x128x128xbf16> to vector<128x128xbf16>
    %264 = arith.truncf %261 : vector<16x128xf32> to vector<16x128xbf16>
    %cst_121 = arith.constant dense<0.000000e+00> : vector<16x128xf32>
    %265 = tpu.matmul %264, %263, %cst_121 {dimension_numbers = #tpu.dot_dimension_numbers<[1], [0], [0], [1], [0, 0, 1, 1], [], []>} : vector<16x128xbf16>, vector<128x128xbf16>, vector<16x128xf32> -> vector<16x128xf32>
    %266 = arith.addf %164, %265 : vector<16x128xf32>
    %c1_122 = arith.constant 1 : index
    %c0_123 = arith.constant 0 : index
    %c0_124 = arith.constant 0 : index
    %267 = vector.load %arg10[%c1_122, %c0_123, %c0_124] : memref<2x1x128xf32, #tpu.memory_space<vmem>>, vector<1x1x128xf32>
    %268 = vector.shape_cast %267 : vector<1x1x128xf32> to vector<1x128xf32>
    %269 = vector.broadcast %268 : vector<1x128xf32> to vector<16x128xf32>
    %270 = arith.addf %266, %269 : vector<16x128xf32>
    %c1_125 = arith.constant 1 : index
    %c0_126 = arith.constant 0 : index
    %c0_127 = arith.constant 0 : index
    %271 = vector.load %arg11[%c1_125, %c0_126, %c0_127] : memref<2x1x128xf32, #tpu.memory_space<vmem>>, vector<1x1x128xf32>
    %272 = vector.shape_cast %271 : vector<1x1x128xf32> to vector<1x128xf32>
    %c1_128 = arith.constant 1 : index
    %c0_129 = arith.constant 0 : index
    %c0_130 = arith.constant 0 : index
    %273 = vector.load %arg12[%c1_128, %c0_129, %c0_130] : memref<2x1x128xf32, #tpu.memory_space<vmem>>, vector<1x1x128xf32>
    %274 = vector.shape_cast %273 : vector<1x1x128xf32> to vector<1x128xf32>
    %cst_131 = arith.constant dense<0.000000e+00> : vector<16xf32>
    %275 = vector.multi_reduction <add>, %270, %cst_131 [1] : vector<16x128xf32> to vector<16xf32>
    %276 = vector.shape_cast %275 : vector<16xf32> to vector<16x1xf32>
    %cst_132 = arith.constant 1.280000e+02 : f32
    %277 = vector.broadcast %cst_132 : f32 to vector<16x1xf32>
    %278 = arith.divf %276, %277 : vector<16x1xf32>
    %279 = vector.broadcast %278 : vector<16x1xf32> to vector<16x128xf32>
    %280 = arith.subf %270, %279 : vector<16x128xf32>
    %281 = arith.mulf %280, %280 : vector<16x128xf32>
    %cst_133 = arith.constant dense<0.000000e+00> : vector<16xf32>
    %282 = vector.multi_reduction <add>, %281, %cst_133 [1] : vector<16x128xf32> to vector<16xf32>
    %283 = vector.shape_cast %282 : vector<16xf32> to vector<16x1xf32>
    %cst_134 = arith.constant 1.280000e+02 : f32
    %284 = vector.broadcast %cst_134 : f32 to vector<16x1xf32>
    %285 = arith.divf %283, %284 : vector<16x1xf32>
    %cst_135 = arith.constant 9.99999974E-6 : f32
    %286 = vector.broadcast %cst_135 : f32 to vector<16x1xf32>
    %287 = arith.addf %285, %286 : vector<16x1xf32>
    %288 = math.rsqrt %287 : vector<16x1xf32>
    %289 = vector.broadcast %288 : vector<16x1xf32> to vector<16x128xf32>
    %290 = arith.mulf %280, %289 : vector<16x128xf32>
    %291 = vector.broadcast %272 : vector<1x128xf32> to vector<16x128xf32>
    %292 = arith.mulf %290, %291 : vector<16x128xf32>
    %293 = vector.broadcast %274 : vector<1x128xf32> to vector<16x128xf32>
    %294 = arith.addf %292, %293 : vector<16x128xf32>
    %c1_136 = arith.constant 1 : index
    %c0_137 = arith.constant 0 : index
    %c0_138 = arith.constant 0 : index
    %295 = vector.load %arg13[%c1_136, %c0_137, %c0_138] : memref<2x128x512xbf16, #tpu.memory_space<vmem>>, vector<1x128x512xbf16>
    %296 = vector.shape_cast %295 : vector<1x128x512xbf16> to vector<128x512xbf16>
    %297 = arith.truncf %294 : vector<16x128xf32> to vector<16x128xbf16>
    %cst_139 = arith.constant dense<0.000000e+00> : vector<16x512xf32>
    %298 = tpu.matmul %297, %296, %cst_139 {dimension_numbers = #tpu.dot_dimension_numbers<[1], [0], [0], [1], [0, 0, 1, 1], [], []>} : vector<16x128xbf16>, vector<128x512xbf16>, vector<16x512xf32> -> vector<16x512xf32>
    %c1_140 = arith.constant 1 : index
    %c0_141 = arith.constant 0 : index
    %c0_142 = arith.constant 0 : index
    %299 = vector.load %arg14[%c1_140, %c0_141, %c0_142] : memref<2x1x512xf32, #tpu.memory_space<vmem>>, vector<1x1x512xf32>
    %300 = vector.shape_cast %299 : vector<1x1x512xf32> to vector<1x512xf32>
    %301 = vector.broadcast %300 : vector<1x512xf32> to vector<16x512xf32>
    %302 = arith.addf %298, %301 : vector<16x512xf32>
    %cst_143 = arith.constant 5.000000e-01 : f32
    %303 = vector.broadcast %cst_143 : f32 to vector<16x512xf32>
    %304 = arith.mulf %303, %302 : vector<16x512xf32>
    %cst_144 = arith.constant 0.707106769 : f32
    %305 = vector.broadcast %cst_144 : f32 to vector<16x512xf32>
    %306 = arith.mulf %302, %305 : vector<16x512xf32>
    %307 = math.erf %306 : vector<16x512xf32>
    %cst_145 = arith.constant 1.000000e+00 : f32
    %308 = vector.broadcast %cst_145 : f32 to vector<16x512xf32>
    %309 = arith.addf %308, %307 : vector<16x512xf32>
    %310 = arith.mulf %304, %309 : vector<16x512xf32>
    %c1_146 = arith.constant 1 : index
    %c0_147 = arith.constant 0 : index
    %c0_148 = arith.constant 0 : index
    %311 = vector.load %arg15[%c1_146, %c0_147, %c0_148] : memref<2x512x128xbf16, #tpu.memory_space<vmem>>, vector<1x512x128xbf16>
    %312 = vector.shape_cast %311 : vector<1x512x128xbf16> to vector<512x128xbf16>
    %313 = arith.truncf %310 : vector<16x512xf32> to vector<16x512xbf16>
    %cst_149 = arith.constant dense<0.000000e+00> : vector<16x128xf32>
    %314 = tpu.matmul %313, %312, %cst_149 {dimension_numbers = #tpu.dot_dimension_numbers<[1], [0], [0], [1], [0, 0, 1, 1], [], []>} : vector<16x512xbf16>, vector<512x128xbf16>, vector<16x128xf32> -> vector<16x128xf32>
    %315 = arith.addf %270, %314 : vector<16x128xf32>
    %c1_150 = arith.constant 1 : index
    %c0_151 = arith.constant 0 : index
    %c0_152 = arith.constant 0 : index
    %316 = vector.load %arg16[%c1_150, %c0_151, %c0_152] : memref<2x1x128xf32, #tpu.memory_space<vmem>>, vector<1x1x128xf32>
    %317 = vector.shape_cast %316 : vector<1x1x128xf32> to vector<1x128xf32>
    %318 = vector.broadcast %317 : vector<1x128xf32> to vector<16x128xf32>
    %319 = arith.addf %315, %318 : vector<16x128xf32>
    %c0_153 = arith.constant 0 : index
    %c0_154 = arith.constant 0 : index
    %320 = vector.load %arg17[%c0_153, %c0_154] : memref<1x128xf32, #tpu.memory_space<vmem>>, vector<1x128xf32>
    %c0_155 = arith.constant 0 : index
    %c0_156 = arith.constant 0 : index
    %321 = vector.load %arg18[%c0_155, %c0_156] : memref<1x128xf32, #tpu.memory_space<vmem>>, vector<1x128xf32>
    %cst_157 = arith.constant dense<0.000000e+00> : vector<16xf32>
    %322 = vector.multi_reduction <add>, %319, %cst_157 [1] : vector<16x128xf32> to vector<16xf32>
    %323 = vector.shape_cast %322 : vector<16xf32> to vector<16x1xf32>
    %cst_158 = arith.constant 1.280000e+02 : f32
    %324 = vector.broadcast %cst_158 : f32 to vector<16x1xf32>
    %325 = arith.divf %323, %324 : vector<16x1xf32>
    %326 = vector.broadcast %325 : vector<16x1xf32> to vector<16x128xf32>
    %327 = arith.subf %319, %326 : vector<16x128xf32>
    %328 = arith.mulf %327, %327 : vector<16x128xf32>
    %cst_159 = arith.constant dense<0.000000e+00> : vector<16xf32>
    %329 = vector.multi_reduction <add>, %328, %cst_159 [1] : vector<16x128xf32> to vector<16xf32>
    %330 = vector.shape_cast %329 : vector<16xf32> to vector<16x1xf32>
    %cst_160 = arith.constant 1.280000e+02 : f32
    %331 = vector.broadcast %cst_160 : f32 to vector<16x1xf32>
    %332 = arith.divf %330, %331 : vector<16x1xf32>
    %cst_161 = arith.constant 9.99999974E-6 : f32
    %333 = vector.broadcast %cst_161 : f32 to vector<16x1xf32>
    %334 = arith.addf %332, %333 : vector<16x1xf32>
    %335 = math.rsqrt %334 : vector<16x1xf32>
    %336 = vector.broadcast %335 : vector<16x1xf32> to vector<16x128xf32>
    %337 = arith.mulf %327, %336 : vector<16x128xf32>
    %338 = vector.broadcast %320 : vector<1x128xf32> to vector<16x128xf32>
    %339 = arith.mulf %337, %338 : vector<16x128xf32>
    %340 = vector.broadcast %321 : vector<1x128xf32> to vector<16x128xf32>
    %341 = arith.addf %339, %340 : vector<16x128xf32>
    %c0_162 = arith.constant 0 : index
    %c0_163 = arith.constant 0 : index
    %c0_164 = arith.constant 0 : index
    %342 = vector.load %arg19[%c0_162, %c0_163, %c0_164] : memref<2x128x128xbf16, #tpu.memory_space<vmem>>, vector<1x128x128xbf16>
    %343 = vector.shape_cast %342 : vector<1x128x128xbf16> to vector<128x128xbf16>
    %344 = arith.truncf %341 : vector<16x128xf32> to vector<16x128xbf16>
    %cst_165 = arith.constant dense<0.000000e+00> : vector<16x128xf32>
    %345 = tpu.matmul %344, %343, %cst_165 {dimension_numbers = #tpu.dot_dimension_numbers<[1], [0], [0], [1], [0, 0, 1, 1], [], []>} : vector<16x128xbf16>, vector<128x128xbf16>, vector<16x128xf32> -> vector<16x128xf32>
    %c0_166 = arith.constant 0 : index
    %c0_167 = arith.constant 0 : index
    %c0_168 = arith.constant 0 : index
    %346 = vector.load %arg20[%c0_166, %c0_167, %c0_168] : memref<2x1x128xf32, #tpu.memory_space<vmem>>, vector<1x1x128xf32>
    %347 = vector.shape_cast %346 : vector<1x1x128xf32> to vector<1x128xf32>
    %348 = vector.broadcast %347 : vector<1x128xf32> to vector<16x128xf32>
    %349 = arith.addf %345, %348 : vector<16x128xf32>
    %cst_169 = arith.constant 5.000000e-01 : f32
    %350 = vector.broadcast %cst_169 : f32 to vector<16x128xf32>
    %351 = arith.mulf %350, %349 : vector<16x128xf32>
    %cst_170 = arith.constant 0.707106769 : f32
    %352 = vector.broadcast %cst_170 : f32 to vector<16x128xf32>
    %353 = arith.mulf %349, %352 : vector<16x128xf32>
    %354 = math.erf %353 : vector<16x128xf32>
    %cst_171 = arith.constant 1.000000e+00 : f32
    %355 = vector.broadcast %cst_171 : f32 to vector<16x128xf32>
    %356 = arith.addf %355, %354 : vector<16x128xf32>
    %357 = arith.mulf %351, %356 : vector<16x128xf32>
    %c1_172 = arith.constant 1 : index
    %c0_173 = arith.constant 0 : index
    %c0_174 = arith.constant 0 : index
    %358 = vector.load %arg19[%c1_172, %c0_173, %c0_174] : memref<2x128x128xbf16, #tpu.memory_space<vmem>>, vector<1x128x128xbf16>
    %359 = vector.shape_cast %358 : vector<1x128x128xbf16> to vector<128x128xbf16>
    %360 = arith.truncf %357 : vector<16x128xf32> to vector<16x128xbf16>
    %cst_175 = arith.constant dense<0.000000e+00> : vector<16x128xf32>
    %361 = tpu.matmul %360, %359, %cst_175 {dimension_numbers = #tpu.dot_dimension_numbers<[1], [0], [0], [1], [0, 0, 1, 1], [], []>} : vector<16x128xbf16>, vector<128x128xbf16>, vector<16x128xf32> -> vector<16x128xf32>
    %c1_176 = arith.constant 1 : index
    %c0_177 = arith.constant 0 : index
    %c0_178 = arith.constant 0 : index
    %362 = vector.load %arg20[%c1_176, %c0_177, %c0_178] : memref<2x1x128xf32, #tpu.memory_space<vmem>>, vector<1x1x128xf32>
    %363 = vector.shape_cast %362 : vector<1x1x128xf32> to vector<1x128xf32>
    %364 = vector.broadcast %363 : vector<1x128xf32> to vector<16x128xf32>
    %365 = arith.addf %361, %364 : vector<16x128xf32>
    %cst_179 = arith.constant 5.000000e-01 : f32
    %366 = vector.broadcast %cst_179 : f32 to vector<16x128xf32>
    %367 = arith.mulf %366, %365 : vector<16x128xf32>
    %cst_180 = arith.constant 0.707106769 : f32
    %368 = vector.broadcast %cst_180 : f32 to vector<16x128xf32>
    %369 = arith.mulf %365, %368 : vector<16x128xf32>
    %370 = math.erf %369 : vector<16x128xf32>
    %cst_181 = arith.constant 1.000000e+00 : f32
    %371 = vector.broadcast %cst_181 : f32 to vector<16x128xf32>
    %372 = arith.addf %371, %370 : vector<16x128xf32>
    %373 = arith.mulf %367, %372 : vector<16x128xf32>
    %c0_182 = arith.constant 0 : index
    %c0_183 = arith.constant 0 : index
    %374 = vector.load %arg21[%c0_182, %c0_183] : memref<128x128xbf16, #tpu.memory_space<vmem>>, vector<128x128xbf16>
    %375 = arith.truncf %373 : vector<16x128xf32> to vector<16x128xbf16>
    %cst_184 = arith.constant dense<0.000000e+00> : vector<16x128xf32>
    %376 = tpu.matmul %375, %374, %cst_184 {dimension_numbers = #tpu.dot_dimension_numbers<[1], [0], [0], [1], [0, 0, 1, 1], [], []>} : vector<16x128xbf16>, vector<128x128xbf16>, vector<16x128xf32> -> vector<16x128xf32>
    %c0_185 = arith.constant 0 : index
    %c0_186 = arith.constant 0 : index
    %377 = vector.load %arg22[%c0_185, %c0_186] : memref<1x128xf32, #tpu.memory_space<vmem>>, vector<1x128xf32>
    %378 = vector.broadcast %377 : vector<1x128xf32> to vector<16x128xf32>
    %379 = arith.addf %376, %378 : vector<16x128xf32>
    %c0_187 = arith.constant 0 : index
    %c0_188 = arith.constant 0 : index
    %c0_189 = arith.constant 0 : index
    %380 = vector.load %arg23[%c0_187, %c0_188, %c0_189] : memref<1x16x128xf32, #tpu.memory_space<vmem>>, vector<1x16x128xf32>
    %381 = vector.shape_cast %380 : vector<1x16x128xf32> to vector<16x128xf32>
    %382 = vector.shape_cast %379 : vector<16x128xf32> to vector<1x16x128xf32>
    tpu.vector_store %arg23[%c0_187, %c0_188, %c0_189], %382 {strides = array<i32>} : memref<1x16x128xf32, #tpu.memory_space<vmem>>, vector<1x16x128xf32>,
    return
  }
  func.func @transform_0(%arg0: i32) -> (i32, i32, i32) {
    %c0_i32 = arith.constant 0 : i32
    %c0_i32_0 = arith.constant 0 : i32
    %c0_i32_1 = arith.constant 0 : i32
    return %arg0, %c0_i32, %c0_i32_0 : i32, i32, i32
  }
  func.func @transform_1(%arg0: i32) -> (i32, i32) {
    %c0_i32 = arith.constant 0 : i32
    %c0_i32_0 = arith.constant 0 : i32
    %c0_i32_1 = arith.constant 0 : i32
    return %c0_i32, %c0_i32_0 : i32, i32
  }
  func.func @transform_2(%arg0: i32) -> (i32, i32) {
    %c0_i32 = arith.constant 0 : i32
    %c0_i32_0 = arith.constant 0 : i32
    %c0_i32_1 = arith.constant 0 : i32
    return %c0_i32, %c0_i32_0 : i32, i32
  }
  func.func @transform_3(%arg0: i32) -> (i32, i32) {
    %c0_i32 = arith.constant 0 : i32
    %c0_i32_0 = arith.constant 0 : i32
    %c0_i32_1 = arith.constant 0 : i32
    return %c0_i32, %c0_i32_0 : i32, i32
  }
  func.func @transform_4(%arg0: i32) -> (i32, i32, i32) {
    %c0_i32 = arith.constant 0 : i32
    %c0_i32_0 = arith.constant 0 : i32
    %c0_i32_1 = arith.constant 0 : i32
    %c0_i32_2 = arith.constant 0 : i32
    return %c0_i32, %c0_i32_0, %c0_i32_1 : i32, i32, i32
  }
  func.func @transform_5(%arg0: i32) -> (i32, i32, i32) {
    %c0_i32 = arith.constant 0 : i32
    %c0_i32_0 = arith.constant 0 : i32
    %c0_i32_1 = arith.constant 0 : i32
    %c0_i32_2 = arith.constant 0 : i32
    return %c0_i32, %c0_i32_0, %c0_i32_1 : i32, i32, i32
  }
  func.func @transform_6(%arg0: i32) -> (i32, i32, i32) {
    %c0_i32 = arith.constant 0 : i32
    %c0_i32_0 = arith.constant 0 : i32
    %c0_i32_1 = arith.constant 0 : i32
    %c0_i32_2 = arith.constant 0 : i32
    return %c0_i32, %c0_i32_0, %c0_i32_1 : i32, i32, i32
  }
  func.func @transform_7(%arg0: i32) -> (i32, i32, i32) {
    %c0_i32 = arith.constant 0 : i32
    %c0_i32_0 = arith.constant 0 : i32
    %c0_i32_1 = arith.constant 0 : i32
    %c0_i32_2 = arith.constant 0 : i32
    return %c0_i32, %c0_i32_0, %c0_i32_1 : i32, i32, i32
  }
  func.func @transform_8(%arg0: i32) -> (i32, i32, i32) {
    %c0_i32 = arith.constant 0 : i32
    %c0_i32_0 = arith.constant 0 : i32
    %c0_i32_1 = arith.constant 0 : i32
    %c0_i32_2 = arith.constant 0 : i32
    return %c0_i32, %c0_i32_0, %c0_i32_1 : i32, i32, i32
  }
  func.func @transform_9(%arg0: i32) -> (i32, i32, i32) {
    %c0_i32 = arith.constant 0 : i32
    %c0_i32_0 = arith.constant 0 : i32
    %c0_i32_1 = arith.constant 0 : i32
    %c0_i32_2 = arith.constant 0 : i32
    return %c0_i32, %c0_i32_0, %c0_i32_1 : i32, i32, i32
  }
  func.func @transform_10(%arg0: i32) -> (i32, i32, i32) {
    %c0_i32 = arith.constant 0 : i32
    %c0_i32_0 = arith.constant 0 : i32
    %c0_i32_1 = arith.constant 0 : i32
    %c0_i32_2 = arith.constant 0 : i32
    return %c0_i32, %c0_i32_0, %c0_i32_1 : i32, i32, i32
  }
  func.func @transform_11(%arg0: i32) -> (i32, i32, i32) {
    %c0_i32 = arith.constant 0 : i32
    %c0_i32_0 = arith.constant 0 : i32
    %c0_i32_1 = arith.constant 0 : i32
    %c0_i32_2 = arith.constant 0 : i32
    return %c0_i32, %c0_i32_0, %c0_i32_1 : i32, i32, i32
  }
  func.func @transform_12(%arg0: i32) -> (i32, i32, i32) {
    %c0_i32 = arith.constant 0 : i32
    %c0_i32_0 = arith.constant 0 : i32
    %c0_i32_1 = arith.constant 0 : i32
    %c0_i32_2 = arith.constant 0 : i32
    return %c0_i32, %c0_i32_0, %c0_i32_1 : i32, i32, i32
  }
  func.func @transform_13(%arg0: i32) -> (i32, i32, i32) {
    %c0_i32 = arith.constant 0 : i32
    %c0_i32_0 = arith.constant 0 : i32
    %c0_i32_1 = arith.constant 0 : i32
    %c0_i32_2 = arith.constant 0 : i32
    return %c0_i32, %c0_i32_0, %c0_i32_1 : i32, i32, i32
  }
  func.func @transform_14(%arg0: i32) -> (i32, i32, i32) {
    %c0_i32 = arith.constant 0 : i32
    %c0_i32_0 = arith.constant 0 : i32
    %c0_i32_1 = arith.constant 0 : i32
    %c0_i32_2 = arith.constant 0 : i32
    return %c0_i32, %c0_i32_0, %c0_i32_1 : i32, i32, i32
  }
  func.func @transform_15(%arg0: i32) -> (i32, i32, i32) {
    %c0_i32 = arith.constant 0 : i32
    %c0_i32_0 = arith.constant 0 : i32
    %c0_i32_1 = arith.constant 0 : i32
    %c0_i32_2 = arith.constant 0 : i32
    return %c0_i32, %c0_i32_0, %c0_i32_1 : i32, i32, i32
  }
  func.func @transform_16(%arg0: i32) -> (i32, i32) {
    %c0_i32 = arith.constant 0 : i32
    %c0_i32_0 = arith.constant 0 : i32
    %c0_i32_1 = arith.constant 0 : i32
    return %c0_i32, %c0_i32_0 : i32, i32
  }
  func.func @transform_17(%arg0: i32) -> (i32, i32) {
    %c0_i32 = arith.constant 0 : i32
    %c0_i32_0 = arith.constant 0 : i32
    %c0_i32_1 = arith.constant 0 : i32
    return %c0_i32, %c0_i32_0 : i32, i32
  }
  func.func @transform_18(%arg0: i32) -> (i32, i32, i32) {
    %c0_i32 = arith.constant 0 : i32
    %c0_i32_0 = arith.constant 0 : i32
    %c0_i32_1 = arith.constant 0 : i32
    %c0_i32_2 = arith.constant 0 : i32
    return %c0_i32, %c0_i32_0, %c0_i32_1 : i32, i32, i32
  }
  func.func @transform_19(%arg0: i32) -> (i32, i32, i32) {
    %c0_i32 = arith.constant 0 : i32
    %c0_i32_0 = arith.constant 0 : i32
    %c0_i32_1 = arith.constant 0 : i32
    %c0_i32_2 = arith.constant 0 : i32
    return %c0_i32, %c0_i32_0, %c0_i32_1 : i32, i32, i32
  }
  func.func @transform_20(%arg0: i32) -> (i32, i32) {
    %c0_i32 = arith.constant 0 : i32
    %c0_i32_0 = arith.constant 0 : i32
    %c0_i32_1 = arith.constant 0 : i32
    return %c0_i32, %c0_i32_0 : i32, i32
  }
  func.func @transform_21(%arg0: i32) -> (i32, i32) {
    %c0_i32 = arith.constant 0 : i32
    %c0_i32_0 = arith.constant 0 : i32
    %c0_i32_1 = arith.constant 0 : i32
    return %c0_i32, %c0_i32_0 : i32, i32
  }
  func.func @transform_22(%arg0: i32) -> (i32, i32, i32) {
    %c0_i32 = arith.constant 0 : i32
    %c0_i32_0 = arith.constant 0 : i32
    %c0_i32_1 = arith.constant 0 : i32
    return %arg0, %c0_i32, %c0_i32_0 : i32, i32, i32
  }
}

</mosaic_0001>

<bundles_post_ra>
// kernel: vit_forward.1
= control target key start
LH: loop header
LB: loop body
LE: loop exit
PB: predicated region body
PF: predicated region fallthrough
CT: control target
= control target key end

     0   :  { %s7923_s0 = inlined_call_operand.vmem [shape: f32[2,16,64], index: 0, kind: input, shape index: {}]   ;;  %s7924_s1 = inlined_call_operand.vmem [shape: f32[16,128], index: 1, kind: input, shape index: {}]   ;;  %s7925_s2 = inlined_call_operand.vmem [shape: bf16[64,128], index: 2, kind: input, shape index: {}]   ;;  %s7926_s3 = inlined_call_operand.vmem [shape: f32[1,128], index: 3, kind: input, shape index: {}]   ;;  %s7927_s4 = inlined_call_operand.vmem [shape: f32[2,1,128], index: 4, kind: input, shape index: {}]   ;;  %s7928_s5 = inlined_call_operand.vmem [shape: f32[2,1,128], index: 5, kind: input, shape index: {}]   ;;  %s7929_s6 = inlined_call_operand.vmem [shape: bf16[2,128,384], index: 6, kind: input, shape index: {}]   ;;  %s7930_s7 = inlined_call_operand.vmem [shape: f32[2,1,384], index: 7, kind: input, shape index: {}]   ;;  %s7931_s8 = inlined_call_operand.vmem [shape: bf16[2,128,128], index: 8, kind: input, shape index: {}]   ;;  %s7932_s9 = inlined_call_operand.vmem [shape: f32[2,1,128], index: 9, kind: input, shape index: {}]   ;;  %s7933_s10 = inlined_call_operand.vmem [shape: f32[2,1,128], index: 10, kind: input, shape index: {}]   ;;  %s7934_s11 = inlined_call_operand.vmem [shape: f32[2,1,128], index: 11, kind: input, shape index: {}]   ;;  %s7935_s12 = inlined_call_operand.vmem [shape: bf16[2,128,512], index: 12, kind: input, shape index: {}]   ;;  %s7936_s13 = inlined_call_operand.vmem [shape: f32[2,1,512], index: 13, kind: input, shape index: {}]   ;;  %s7937_s14 = inlined_call_operand.vmem [shape: bf16[2,512,128], index: 14, kind: input, shape index: {}]   ;;  %s7938_s15 = inlined_call_operand.vmem [shape: f32[2,1,128], index: 15, kind: input, shape index: {}]   ;;  %s7939_s16 = inlined_call_operand.vmem [shape: f32[1,128], index: 16, kind: input, shape index: {}]   ;;  %s7940_s17 = inlined_call_operand.vmem [shape: f32[1,128], index: 17, kind: input, shape index: {}]   ;;  %s7941_s18 = inlined_call_operand.vmem [shape: bf16[2,128,128], index: 18, kind: input, shape index: {}]   ;;  %s7942_s19 = inlined_call_operand.vmem [shape: f32[2,1,128], index: 19, kind: input, shape index: {}]   ;;  %s7943_s20 = inlined_call_operand.vmem [shape: bf16[128,128], index: 20, kind: input, shape index: {}]   ;;  %s7944_s21 = inlined_call_operand.vmem [shape: f32[1,128], index: 21, kind: input, shape index: {}]   ;;  %s7945_s22 = inlined_call_operand.vmem [shape: f32[2,16,128], index: 22, kind: output, shape index: {}]  }
   0x1   :  { %7961 = sst [smem:[#allocation3_spill]] %s7923_s0 }
   0x2   :  { %7962 = sst [smem:[#allocation4_spill]] %s7924_s1 }
   0x3   :  { %7963 = sst [smem:[#allocation5_spill]] %s7925_s2 }
   0x4   :  { %7964 = sst [smem:[#allocation6_spill]] %s7926_s3  ;;  %s6734_s3 = smov 0  }
   0x5   :  { %7965 = sst [smem:[#allocation7_spill]] %s7927_s4 }
   0x6   :  { %7966 = sst [smem:[#allocation8_spill]] %s7928_s5 }
   0x7   :  { %7967 = sst [smem:[#allocation9_spill]] %s7929_s6 }
   0x8   :  { %7968 = sst [smem:[#allocation10_spill]] %s7945_s22 }
   0x9 LB: > { %7969 = sst [smem:[#allocation2_spill]] %s6611_s3  ;;  %s5216_s28 = sadd.s32 4294967295, %s6611_s3   ;;  %s6611_s3 = sphi %s6734_s3, %s32_s3  }
   0xa   : > { %p5220_p0 = scmp.ge.s32.totalorder %s6611_s3, 1  ;;  %p612_p1 = scmp.lt.s32.totalorder %s6611_s3, 3 }
   0xc   : > { %p613_p2 = pnand %p5220_p0, %p612_p1 }
   0xd   : > { %s7970_s4 = sld [smem:[#allocation5_spill]] (!%p613_p2)  ;;  %p674_p3 = scmp.lt.s32.totalorder (!%p613_p2), %s5216_s28, 1 }
   0xe   : > { %616 = sbr.rel (%p613_p2) target bundleno = 7907 (0x1ee3), region = 108  ;;  %s7971_s26 = sld [smem:[#allocation3_spill]] (!%p613_p2) }
   0xf   : > { %s7972_s23 = sld [smem:[#allocation6_spill]] (!%p613_p2)  ;;  %s7977_s27 = smov (!%p613_p2), 96  }
  0x10   : > { %s7973_s6 = sld [smem:[#allocation4_spill]] (!%p613_p2)  ;;  %s7979_s3 = smov (!%p613_p2), 32  }
  0x11   : > { %s7974_s29 = sld [smem:[#allocation9_spill]] (!%p613_p2) }
  0x12   : > { %s7975_s30 = sld [smem:[#allocation7_spill]] (!%p613_p2) }
  0x13   : > { %v6213_v0 = vld [vmem:[%s7970_s4 + $0x18] sm:$0xff]   ;;  %v6613_v1 = vmov 0.0   ;;  %v6214_v2 = vld [vmem:[%s7970_s4 + $0x10] sm:$0xff]   ;;  %vm6614_vm0 = vmmov 0   ;;  %v6215_v3 = vld [vmem:[%s7970_s4 + $0x8] sm:$0xff]   ;;  %s7984_s28 = smov (!%p674_p3, %s5216_s28), 1 }
  0x14   : > { %5905 = vmatprep.subr.bf16.mxu0 %v6613_v1  ;;  %5913 = vmatprep.mubr.msk.bf16.mxu0 %vm6614_vm0, %v6613_v1  ;;  %s7951_s24 = sshll.u32 %s7984_s28, 4  ;;  %v6216_v4 = vld [vmem:[%s7970_s4] sm:$0xff]   ;;  %vm727_vm1 = vcmask 523264   ;;  %v6615_v43 = vmov 0   ;;  %s7976_s1 = sld [smem:[#allocation8_spill]]  ;;  %vm1079_vm2 = vcmask 261120  }
  0x15   : > { %5906 = vmatpush3.bf16.msra.mxu0 %v6213_v0  ;;  %s678_s2 = scalar_lea.vmem %s7971_s26, %s7951_s24  ;;  %v5225_v8 = vld [vmem:[%s7972_s23] ss:$0 sm:$0xff]  ;;  %1027 = vmatprep.mubr.bf16.mxu1 %v6615_v43  ;;  %vm1169_vm3 = vcmask 130048   ;;  %s7956_s24 = smov 96   ;;  %vm1909_vm4 = vcmask 785408  }
  0x16   : > { %5907 = vmatprep.subr.bf16.mxu0 %v6613_v1  ;;  %v685_v5 = vld [vmem:[%s678_s2] sm:$0xff]  ;;  %v686_v6 = vld [vmem:[%s678_s2 + $0x8] sm:$0xff]  ;;  %s7954_s26 = smov 64   ;;  %s7952_s2 = smov 32  }
  0x17   : > { %v695_v7 = vpack.c.bf16 %v686_v6, %v685_v5  ;;  %v772_v10 = vld [vmem:[%s7973_s6] sm:$0xff]  ;;  %v773_v15 = vld [vmem:[%s7973_s6 + $0x8] sm:$0xff]  ;;  %v6220_v21 = vld [vmem:[%s7974_s29 + $0xb0] ss:$12 sps:$4 sm:$0xff]   ;;  %v852_v6 = vlaneseq  ;;  %s7978_s23 = smov 64   ;;  %s7980_s0 = sshll.u32 %s7984_s28, 4 }
  0x18   : > { %v6217_v19 = vld [vmem:[%s7974_s29 + $0xac] ss:$12 sps:$4 sm:$0xff]   ;;  %v6219_v20 = vld [vmem:[%s7974_s29 + $0xa8] ss:$12 sps:$4 sm:$0xff]   ;;  %v6223_v31 = vld [vmem:[%s7974_s29 + $0x90] ss:$12 sps:$4 sm:$0xff]  }
  0x19   : > { %5908 = vmatpush3.bf16.msra.mxu0 %v6214_v2  ;;  %995 = vmatprep.subr.bf16.mxu1 %v6217_v19  ;;  %v6221_v30 = vld [vmem:[%s7974_s29 + $0x94] ss:$12 sps:$4 sm:$0xff]   ;;  %v6224_v32 = vld [vmem:[%s7974_s29 + $0x98] ss:$12 sps:$4 sm:$0xff]   ;;  %v6225_v33 = vld [vmem:[%s7974_s29 + $0x7c] ss:$12 sps:$4 sm:$0xff]  }
  0x1a   : > { %5909 = vmatprep.subr.bf16.mxu0 %v6613_v1  ;;  %996 = vmatpush1.bf16.msra.mxu1 %v6219_v20  ;;  %v6227_v34 = vld [vmem:[%s7974_s29 + $0x78] ss:$12 sps:$4 sm:$0xff]   ;;  %v6228_v35 = vld [vmem:[%s7974_s29 + $0x80] ss:$12 sps:$4 sm:$0xff]   ;;  %v6232_v38 = vld [vmem:[%s7974_s29 + $0x68] ss:$12 sps:$4 sm:$0xff]  }
  0x1b   : > { %997 = vmatprep.subr.bf16.mxu1 %v6221_v30  ;;  %v6229_v36 = vld [vmem:[%s7974_s29 + $0x64] ss:$12 sps:$4 sm:$0xff]   ;;  %v6231_v37 = vld [vmem:[%s7974_s29 + $0x60] ss:$12 sps:$4 sm:$0xff]   ;;  %v6235_v40 = vld [vmem:[%s7974_s29 + $0x48] ss:$12 sps:$4 sm:$0xff]  }
  0x1c   : > { %v6233_v39 = vld [vmem:[%s7974_s29 + $0x4c] ss:$12 sps:$4 sm:$0xff]   ;;  %v6236_v41 = vld [vmem:[%s7974_s29 + $0x50] ss:$12 sps:$4 sm:$0xff]   ;;  %v6237_v42 = vld [vmem:[%s7974_s29 + $0x34] ss:$12 sps:$4 sm:$0xff]  }
  0x1d   : > { %5910 = vmatpush3.bf16.msra.mxu0 %v6215_v3  ;;  %v6239_v44 = vld [vmem:[%s7974_s29 + $0x30] ss:$12 sps:$4 sm:$0xff]   ;;  %v6240_v45 = vld [vmem:[%s7974_s29 + $0x38] ss:$12 sps:$4 sm:$0xff]   ;;  %v6244_v48 = vld [vmem:[%s7974_s29 + $0x20] ss:$12 sps:$4 sm:$0xff]  }
  0x1e   : > { %5911 = vmatprep.subr.bf16.mxu0 %v6613_v1  ;;  %998 = vmatpush1.bf16.msra.mxu1 %v6223_v31  ;;  %v6241_v46 = vld [vmem:[%s7974_s29 + $0x1c] ss:$12 sps:$4 sm:$0xff]   ;;  %v6243_v47 = vld [vmem:[%s7974_s29 + $0x18] ss:$12 sps:$4 sm:$0xff]   ;;  %v6247_v50 = vld [vmem:[%s7974_s29] ss:$12 sps:$4 sm:$0xff]  }
  0x1f   : > { %999 = vmatprep.subr.bf16.mxu1 %v6225_v33  ;;  %v6245_v49 = vld [vmem:[%s7974_s29 + $0x4] ss:$12 sps:$4 sm:$0xff]   ;;  %v6248_v51 = vld [vmem:[%s7974_s29 + $0x8] ss:$12 sps:$4 sm:$0xff]   ;;  %v5231_v60 = vld [vmem:[%s7975_s30] ss:$0 sm:$0xff] }
  0x20   : > { %v5232_v0 = vld [vmem:[%s7976_s1] ss:$0 sm:$0xff]  ;;  %s7981_s4 = sld [smem:[#allocation10_spill]] }
  0x21   : > { %5912 = vmatpush3.bf16.msra.mxu0 %v6216_v4 }
  0x22   : > { %5917 = vmatprep.subr.bf16.mxu0 %v6613_v1  ;;  %1000 = vmatpush1.bf16.msra.mxu1 %v6227_v34 }
  0x23   : > { %1001 = vmatprep.subr.bf16.mxu1 %v6229_v36 }
  0x24   : > { %5914 = vmatmul.mubr.msk.bf16.vlgmr.msra.gmra.mxu0 %vm727_vm1, %v695_v7  ;;  %v6885_v7 = vshrl.u32 %v852_v6, 7 }
  0x25   : > { %5933 = vmatprep.mubr.msk.bf16.mxu0 %vm6614_vm0, %v6613_v1  ;;  %5918 = vmatpush3.bf16.msra.mxu0 %v6220_v21 }
  0x26   : > { %5919 = vmatprep.subr.bf16.mxu0 %v6613_v1  ;;  %1002 = vmatpush1.bf16.msra.mxu1 %v6231_v37 }
  0x27   : > { %1003 = vmatprep.subr.bf16.mxu1 %v6233_v39 }
  0x29   : > { %5920 = vmatpush3.bf16.msra.mxu0 %v6224_v32 }
  0x2a   : > { %5921 = vmatprep.subr.bf16.mxu0 %v6613_v1  ;;  %1004 = vmatpush1.bf16.msra.mxu1 %v6235_v40 }
  0x2b   : > { %1005 = vmatprep.subr.bf16.mxu1 %v6237_v42 }
  0x2d   : > { %5922 = vmatpush3.bf16.msra.mxu0 %v6228_v35 }
  0x2e   : > { %5923 = vmatprep.subr.bf16.mxu0 %v6613_v1  ;;  %1006 = vmatpush1.bf16.msra.mxu1 %v6239_v44 }
  0x2f   : > { %1007 = vmatprep.subr.bf16.mxu1 %v6241_v46 }
  0x31   : > { %5924 = vmatpush3.bf16.msra.mxu0 %v6232_v38 }
  0x32   : > { %5925 = vmatprep.subr.bf16.mxu0 %v6613_v1  ;;  %1008 = vmatpush1.bf16.msra.mxu1 %v6243_v47 }
  0x33   : > { %1009 = vmatprep.subr.bf16.mxu1 %v6245_v49 }
  0x35   : > { %5926 = vmatpush3.bf16.msra.mxu0 %v6236_v41 }
  0x36   : > { %5927 = vmatprep.subr.bf16.mxu0 %v6613_v1  ;;  %1010 = vmatpush1.bf16.msra.mxu1 %v6247_v50 }
  0x39   : > { %5928 = vmatpush3.bf16.msra.mxu0 %v6240_v45 }
  0x3a   : > { %5929 = vmatprep.subr.bf16.mxu0 %v6613_v1 }
  0x3d   : > { %5930 = vmatpush3.bf16.msra.mxu0 %v6244_v48 }
  0x3e   : > { %5931 = vmatprep.subr.bf16.mxu0 %v6613_v1 }
  0x41   : > { %5932 = vmatpush3.bf16.msra.mxu0 %v6248_v51 }
  0xe4   : > { %v765_v9 = vpop.f32.mrf.mxu0 }
  0xe5   : > { %v766_v11 = vadd.f32 %v5225_v8, %v765_v9  ;;  %v850_v9 = vld [vmem:[%s7930_s7] sm:$0x7] }
  0xe6   : > { %v5915_v12 = vpop.f32.mrf.mxu0 }
  0xe7   : > { %v6778_v13 = vadd.f32 %v772_v10, %v766_v11 }
  0xe8   : > { %v768_v14 = vpop.f32.mrf.mxu0 }
  0xe9   : > { %v769_v16 = vadd.f32 %v5225_v8, %v768_v14  ;;  %778 = vadd.xlane.f32.xlu0 %v6778_v13  ;;  %v6888_v8 = vsub.s32 0, %v6885_v7 }
  0xea   : > { %v5916_v17 = vpop.f32.mrf.mxu0 }
  0xeb   : > { %v6784_v18 = vadd.f32 %v773_v15, %v769_v16  ;;  %v855_v10 = vrot.slane %v850_v9, %v6888_v8  ;;  %v6897_v15 = vsub.s32 1, %v6885_v7 }
  0xed   : > { %780 = vadd.xlane.f32.xlu0 %v6784_v18  ;;  %v859_v21 = vrot.slane %v850_v9, %v6897_v15 }
 0x172   : > { %v779_v22 = vpop.xlane.xlu0 %778 }
 0x173   : > { %v783_v23 = vmul.f32 0.0078125, %v779_v22 }
 0x175   : > { %v6798_v24 = vsub.f32 %v6778_v13, %v783_v23 }
 0x176   : > { %v781_v25 = vpop.xlane.xlu0 %780 }
 0x177   : > { %v784_v26 = vmul.f32 0.0078125, %v781_v25  ;;  %v787_v27 = vmul.f32 %v6798_v24, %v6798_v24 }
 0x179   : > { %v6803_v28 = vsub.f32 %v6784_v18, %v784_v26  ;;  %789 = vadd.xlane.f32.xlu1 %v787_v27 }
 0x17b   : > { %v788_v29 = vmul.f32 %v6803_v28, %v6803_v28 }
 0x17d   : > { %791 = vadd.xlane.f32.xlu1 %v788_v29 }
 0x202   : > { %v790_v52 = vpop.xlane.xlu1 %789 }
 0x203   : > { %v793_v53 = vmul.f32 0.0078125, %v790_v52 }
 0x205   : > { %v795_v54 = vadd.f32 1e-05, %v793_v53 }
 0x206   : > { %v792_v55 = vpop.xlane.xlu1 %791 }
 0x207   : > { %6481 = vrsqrt.f32 %v795_v54  ;;  %v794_v56 = vmul.f32 0.0078125, %v792_v55 }
 0x209   : > { %v796_v57 = vadd.f32 1e-05, %v794_v56 }
 0x20b   : > { %6483 = vrsqrt.f32 %v796_v57 }
 0x214   : > { %v6482_v58 = vpop.eup %6481 }
 0x215   : > { %v799_v59 = vmul.f32 %v6482_v58, %v6798_v24  ;;  %v6903_v24 = vsub.s32 2, %v6885_v7 }
 0x217   : > { %v807_v63 = vmul.f32 %v5231_v60, %v799_v59  ;;  %v863_v27 = vrot.slane %v850_v9, %v6903_v24 }
 0x218   : > { %v6484_v61 = vpop.eup %6483 }
 0x219   : > { %v800_v62 = vmul.f32 %v6484_v61, %v6803_v28  ;;  %v815_v3 = vadd.f32 %v5232_v0, %v807_v63 }
 0x21b   : > { %v808_v2 = vmul.f32 %v5231_v60, %v800_v62 }
 0x21d   : > { %v816_v4 = vadd.f32 %v5232_v0, %v808_v2 }
 0x21f   : > { %v849_v5 = vpack.c.bf16 %v816_v4, %v815_v3 }
 0x221   : > { %1028 = vmatmul.mubr.bf16.vlgmr.msra.gmra.mxu1 %v849_v5  ;;  %5934 = vmatmul.mubr.bf16.vlgmr.msra.gmra.mxu0 %v849_v5 }
 0x2e1   : > { %v1029_v11 = vpop.f32.mrf.mxu1  ;;  %v1072_v12 = vpop.f32.mrf.mxu0 }
 0x2e2   : > { %v6894_v14 = vadd.f32 %v1029_v11, %v855_v10  ;;  %v6923_v30 = vadd.f32 %v1072_v12, %v863_v27 }
 0x2e3   : > { %v1031_v16 = vpop.f32.mrf.mxu1  ;;  %v5935_v17 = vpop.f32.mrf.mxu0 }
 0x2e4   : > { %5941 = vmatprep.mubr.msk.f32.mxu1 %vm1079_vm2, %v6894_v14  ;;  %v6907_v26 = vadd.f32 %v1031_v16, %v859_v21 }
 0x2e5   : > { %v1033_v19 = vpop.f32.mrf.mxu1  ;;  %v1075_v20 = vpop.f32.mrf.mxu0 }
 0x2e6   : > { %v6916_v28 = vadd.f32 %v1075_v20, %v863_v27  ;;  %v6920_v29 = vadd.f32 %v1033_v19, %v855_v10 }
 0x2e7   : > { %v1035_v22 = vpop.f32.mrf.mxu1  ;;  %v5936_v23 = vpop.f32.mrf.mxu0 }
 0x2e8   : > { %v6905_v25 = vadd.f32 %v1035_v22, %v859_v21 }
 0x2ea   : > { %5937 = vmatprep.subr.msk.mxu1 %vm1079_vm2, %v6905_v25 }
 0x2eb   : > { %5938 = vmatpush3.xpose.msk.msra.mxu1 %vm1079_vm2, %v6905_v25 }
 0x2ec   : > { %5939 = vmatprep.subr.msk.mxu1 %vm1079_vm2, %v6907_v26 }
 0x2ef   : > { %5940 = vmatpush3.xpose.msk.msra.mxu1 %vm1079_vm2, %v6907_v26 }
 0x2f0   : > { %5944 = vmatprep.subr.mxu1 %v6916_v28 }
 0x2f2   : > { %5942 = vmatmul.mubr.msk.f32.vlgmr.msra.gmra.mxu1 %vm1079_vm2, %v6920_v29 }
 0x2f3   : > { %5945 = vmatpush3.msra.mxu1 %v6916_v28 }
 0x2f4   : > { %5946 = vmatprep.subr.mxu1 %v6923_v30 }
 0x2f5   : > { %5947 = vmatpush3.msra.mxu1 %v6923_v30 }
 0x3b2   : > { %v5943_v31 = vpop.f32.mrf.mxu1 }
 0x3b3   : > { %v1168_v32 = vmul.f32 0.17677669, %v5943_v31 }
 0x3b4   : > { %v1158_v33 = vpop.f32.mrf.mxu1 }
 0x3b5   : > { %v1167_v34 = vmul.f32 0.17677669, %v1158_v33  ;;  %v1173_v35 = vsel %vm1169_vm3, %v1168_v32, -inf }
 0x3b6   : > { %1174 = vmax.xlane.f32.xlu1 %v1173_v35 }
 0x3b7   : > { %v1170_v36 = vsel %vm1169_vm3, %v1167_v34, -inf }
 0x3b8   : > { %1171 = vmax.xlane.f32.xlu0 %v1170_v36 }
 0x43f   : > { %v1175_v37 = vpop.xlane.xlu1 %1174 }
 0x440   : > { %v1177_v38 = vsub.f32 %v1168_v32, %v1175_v37 }
 0x441   : > { %v1172_v39 = vpop.xlane.xlu0 %1171 }
 0x442   : > { %v1180_v40 = vmul.f32 1.442695, %v1177_v38  ;;  %v1176_v41 = vsub.f32 %v1167_v34, %v1172_v39 }
 0x444   : > { %6485 = vpow2.f32 %v1180_v40  ;;  %v1178_v42 = vmul.f32 1.442695, %v1176_v41 }
 0x446   : > { %6487 = vpow2.f32 %v1178_v42 }
 0x451   : > { %v6486_v44 = vpop.eup %6485 }
 0x452   : > { %v1185_v45 = vsel %vm1169_vm3, %v6486_v44, 0.0 }
 0x453   : > { %v6488_v46 = vpop.eup %6487  ;;  %1186 = vadd.xlane.f32.xlu1 %v1185_v45 }
 0x454   : > { %v1182_v47 = vsel %vm1169_vm3, %v6488_v46, 0.0 }
 0x455   : > { %1183 = vadd.xlane.f32.xlu0 %v1182_v47 }
 0x464   : > { %1277 = vrot.lane.b32.xlu1 %v6907_v26, %s7956_s24 }
 0x468   : > { %1273 = vrot.lane.b32.xlu1 %v6894_v14, %s7956_s24 }
 0x46b   : > { %1279 = vrot.lane.b32.xlu0 %v6905_v25, %s7956_s24 }
 0x46c   : > { %1483 = vrot.lane.b32.xlu1 %v6905_v25, %s7954_s26 }
 0x46f   : > { %1275 = vrot.lane.b32.xlu0 %v6920_v29, %s7956_s24 }
 0x470   : > { %1481 = vrot.lane.b32.xlu1 %v6907_v26, %s7954_s26 }
 0x473   : > { %1477 = vrot.lane.b32.xlu0 %v6894_v14, %s7954_s26 }
 0x474   : > { %1479 = vrot.lane.b32.xlu1 %v6920_v29, %s7954_s26 }
 0x4dc   : > { %v1187_v48 = vpop.xlane.xlu1 %1186 }
 0x4dd   : > { %6489 = vrcp.f32 %v1187_v48 }
 0x4de   : > { %v1184_v49 = vpop.xlane.xlu0 %1183 }
 0x4df   : > { %6491 = vrcp.f32 %v1184_v49 }
 0x4e0   : > { %v1278_v51 = vpop.permute.xlu1 %1277 }
 0x4e2   : > { %v1280_v50 = vpop.permute.xlu0 %1279 }
 0x4e3   : > { %5951 = vmatprep.subr.msk.mxu1 %vm1079_vm2, %v1280_v50 }
 0x4e4   : > { %v1274_v54 = vpop.permute.xlu1 %1273 }
 0x4e6   : > { %v1276_v57 = vpop.permute.xlu0 %1275 }
 0x4e8   : > { %v1484_v58 = vpop.permute.xlu1 %1483 }
 0x4ea   : > { %v6490_v52 = vpop.eup %6489  ;;  %v1478_v59 = vpop.permute.xlu0 %1477 }
 0x4eb   : > { %v1191_v56 = vmul.f32 %v6490_v52, %v6486_v44 }
 0x4ec   : > { %v6492_v53 = vpop.eup %6491  ;;  %v1482_v60 = vpop.permute.xlu1 %1481 }
 0x4ed   : > { %v1189_v55 = vmul.f32 %v6492_v53, %v6488_v46 }
 0x4ef   : > { %5948 = vmatprep.mubr.msk.f32.mxu1 %vm1169_vm3, %v1189_v55 }
 0x4f0   : > { %5949 = vmatmul.mubr.msk.f32.vlgmr.msra.gmra.mxu1 %vm1169_vm3, %v1191_v56  ;;  %v1480_v61 = vpop.permute.xlu1 %1479 }
 0x4f1   : > { %5952 = vmatpush3.xpose.msk.msra.mxu1 %vm1079_vm2, %v1280_v50  ;;  %5955 = vmatprep.mubr.msk.f32.mxu1 %vm1079_vm2, %v1274_v54 }
 0x4f2   : > { %5953 = vmatprep.subr.msk.mxu1 %vm1079_vm2, %v1278_v51 }
 0x4f5   : > { %5954 = vmatpush3.xpose.msk.msra.mxu1 %vm1079_vm2, %v1278_v51 }
 0x4f6   : > { %5965 = vmatprep.subr.msk.mxu1 %vm1079_vm2, %v1484_v58 }
 0x4f8   : > { %5956 = vmatmul.mubr.msk.f32.vlgmr.msra.gmra.mxu1 %vm1079_vm2, %v1276_v57 }
 0x4f9   : > { %5966 = vmatpush3.xpose.msk.msra.mxu1 %vm1079_vm2, %v1484_v58  ;;  %5969 = vmatprep.mubr.msk.f32.mxu1 %vm1079_vm2, %v1478_v59 }
 0x4fa   : > { %5967 = vmatprep.subr.msk.mxu1 %vm1079_vm2, %v1482_v60 }
 0x4fd   : > { %5968 = vmatpush3.xpose.msk.msra.mxu1 %vm1079_vm2, %v1482_v60 }
 0x500   : > { %5970 = vmatmul.mubr.msk.f32.vlgmr.msra.gmra.mxu1 %vm1079_vm2, %v1480_v61 }
 0x5b0   : > { %v6964_v62 = vpop.f32.mrf.mxu1 }
 0x5b2   : > { %v6966_v63 = vpop.f32.mrf.mxu1 }
 0x5b8   : > { %v5957_v0 = vpop.f32.mrf.mxu1 }
 0x5b9   : > { %v1365_v2 = vmul.f32 0.17677669, %v5957_v0 }
 0x5ba   : > { %v1355_v3 = vpop.f32.mrf.mxu1 }
 0x5bb   : > { %v1364_v4 = vmul.f32 0.17677669, %v1355_v3  ;;  %v1369_v5 = vsel %vm1169_vm3, %v1365_v2, -inf }
 0x5bc   : > { %1370 = vmax.xlane.f32.xlu1 %v1369_v5 }
 0x5bd   : > { %v1366_v6 = vsel %vm1169_vm3, %v1364_v4, -inf }
 0x5be   : > { %1367 = vmax.xlane.f32.xlu0 %v1366_v6 }
 0x5c0   : > { %v5971_v9 = vpop.f32.mrf.mxu1 }
 0x5c1   : > { %v1569_v12 = vmul.f32 0.17677669, %v5971_v9 }
 0x5c2   : > { %v1559_v10 = vpop.f32.mrf.mxu1 }
 0x5c3   : > { %v1568_v11 = vmul.f32 0.17677669, %v1559_v10  ;;  %v1573_v17 = vsel %vm1169_vm3, %v1569_v12, -inf }
 0x5c5   : > { %v1570_v16 = vsel %vm1169_vm3, %v1568_v11, -inf }
 0x5c6   : > { %1571 = vmax.xlane.f32.xlu0 %v1570_v16 }
 0x5ca   : > { %1574 = vmax.xlane.f32.xlu0 %v1573_v17 }
 0x5cd   : > { %1390 = vrot.lane.b32.xlu1 %v6923_v30, %s7956_s24 }
 0x5d1   : > { %1594 = vrot.lane.b32.xlu1 %v6916_v28, %s7954_s26 }
 0x5d5   : > { %1592 = vrot.lane.b32.xlu1 %v6923_v30, %s7954_s26 }
 0x5e0   : > { %1392 = vrot.lane.b32.xlu0 %v6916_v28, %s7956_s24 }
 0x645   : > { %v1371_v19 = vpop.xlane.xlu1 %1370 }
 0x646   : > { %v1373_v20 = vsub.f32 %v1365_v2, %v1371_v19 }
 0x647   : > { %v1368_v21 = vpop.xlane.xlu0 %1367 }
 0x648   : > { %v1376_v22 = vmul.f32 1.442695, %v1373_v20  ;;  %v1372_v23 = vsub.f32 %v1364_v4, %v1368_v21 }
 0x649   : > { %v1391_v36 = vpop.permute.xlu1 %1390 }
 0x64a   : > { %6493 = vpow2.f32 %v1376_v22  ;;  %v1374_v27 = vmul.f32 1.442695, %v1372_v23 }
 0x64c   : > { %6495 = vpow2.f32 %v1374_v27 }
 0x64d   : > { %v1595_v44 = vpop.permute.xlu1 %1594 }
 0x64f   : > { %v1572_v31 = vpop.xlane.xlu0 %1571 }
 0x650   : > { %v1576_v32 = vsub.f32 %v1568_v11, %v1572_v31 }
 0x651   : > { %v1593_v49 = vpop.permute.xlu1 %1592 }
 0x652   : > { %v1578_v33 = vmul.f32 1.442695, %v1576_v32 }
 0x653   : > { %v1575_v34 = vpop.xlane.xlu0 %1574 }
 0x654   : > { %6497 = vpow2.f32 %v1578_v33  ;;  %v1577_v35 = vsub.f32 %v1569_v12, %v1575_v34 }
 0x656   : > { %v1580_v37 = vmul.f32 1.442695, %v1577_v35 }
 0x657   : > { %v6494_v38 = vpop.eup %6493  ;;  %v1393_v39 = vpop.permute.xlu0 %1392 }
 0x658   : > { %6499 = vpow2.f32 %v1580_v37  ;;  %5958 = vmatprep.subr.mxu0 %v1393_v39  ;;  %v1381_v40 = vsel %vm1169_vm3, %v6494_v38, 0.0 }
 0x659   : > { %v6496_v41 = vpop.eup %6495  ;;  %1382 = vadd.xlane.f32.xlu1 %v1381_v40  ;;  %5959 = vmatpush3.msra.mxu0 %v1393_v39 }
 0x65a   : > { %5960 = vmatprep.subr.mxu0 %v1391_v36  ;;  %v1378_v42 = vsel %vm1169_vm3, %v6496_v41, 0.0 }
 0x65b   : > { %1379 = vadd.xlane.f32.xlu0 %v1378_v42  ;;  %5961 = vmatpush3.msra.mxu0 %v1391_v36  ;;  %v6250_v42 = vld [vmem:[%s7931_s8 + $0x30] sm:$0xff]  }
 0x65c   : > { %5972 = vmatprep.subr.mxu0 %v1595_v44 }
 0x661   : > { %v6498_v45 = vpop.eup %6497 }
 0x662   : > { %v1582_v46 = vsel %vm1169_vm3, %v6498_v45, 0.0 }
 0x663   : > { %1583 = vadd.xlane.f32.xlu0 %v1582_v46  ;;  %v6253_v46 = vld [vmem:[%s7931_s8 + $0x18] sm:$0xff]  }
 0x665   : > { %v6500_v47 = vpop.eup %6499 }
 0x666   : > { %v1585_v48 = vsel %vm1169_vm3, %v6500_v47, 0.0 }
 0x667   : > { %1586 = vadd.xlane.f32.xlu1 %v1585_v48  ;;  %v6255_v48 = vld [vmem:[%s7931_s8 + $0x8] sm:$0xff]  }
 0x678   : > { %1683 = vrot.lane.b32.xlu1 %v6907_v26, %s7952_s2 }
 0x679   : > { %1685 = vrot.lane.b32.xlu0 %v6905_v25, %s7952_s2 }
 0x67c   : > { %1681 = vrot.lane.b32.xlu1 %v6920_v29, %s7952_s2 }
 0x67d   : > { %1679 = vrot.lane.b32.xlu0 %v6894_v14, %s7952_s2 }
 0x6e2   : > { %v1383_v50 = vpop.xlane.xlu1 %1382 }
 0x6e3   : > { %6501 = vrcp.f32 %v1383_v50 }
 0x6e4   : > { %v1380_v51 = vpop.xlane.xlu0 %1379 }
 0x6e5   : > { %6503 = vrcp.f32 %v1380_v51 }
 0x6ec   : > { %v1584_v52 = vpop.xlane.xlu0 %1583 }
 0x6ed   : > { %6505 = vrcp.f32 %v1584_v52 }
 0x6f0   : > { %v1587_v53 = vpop.xlane.xlu1 %1586  ;;  %v6502_v54 = vpop.eup %6501 }
 0x6f1   : > { %6507 = vrcp.f32 %v1587_v53  ;;  %v1387_v56 = vmul.f32 %v6502_v54, %v6494_v38  ;;  %v1686_v14 = vpop.permute.xlu0 %1685 }
 0x6f2   : > { %v6504_v26 = vpop.eup %6503 }
 0x6f3   : > { %v1385_v55 = vmul.f32 %v6504_v26, %v6496_v41 }
 0x6f4   : > { %v1684_v60 = vpop.permute.xlu1 %1683 }
 0x6f5   : > { %5962 = vmatprep.mubr.msk.f32.mxu0 %vm1169_vm3, %v1385_v55  ;;  %v1680_v59 = vpop.permute.xlu0 %1679 }
 0x6f6   : > { %5963 = vmatmul.mubr.msk.f32.vlgmr.msra.gmra.mxu0 %vm1169_vm3, %v1387_v56 }
 0x6f7   : > { %5973 = vmatpush3.msra.mxu0 %v1595_v44  ;;  %v6251_v44 = vld [vmem:[%s7931_s8 + $0x28] sm:$0xff]  }
 0x6f8   : > { %5974 = vmatprep.subr.mxu0 %v1593_v49  ;;  %v1682_v61 = vpop.permute.xlu1 %1681 }
 0x6f9   : > { %5975 = vmatpush3.msra.mxu0 %v1593_v49  ;;  %v6256_v49 = vld [vmem:[%s7931_s8] sm:$0xff]  }
 0x6fa   : > { %v6506_v25 = vpop.eup %6505  ;;  %5979 = vmatprep.subr.msk.mxu0 %vm1079_vm2, %v1686_v14 }
 0x6fb   : > { %v1589_v29 = vmul.f32 %v6506_v25, %v6498_v45  ;;  %v6252_v45 = vld [vmem:[%s7931_s8 + $0x20] sm:$0xff]  }
 0x6fd   : > { %5976 = vmatprep.mubr.msk.f32.mxu0 %vm1169_vm3, %v1589_v29 }
 0x6fe   : > { %v6508_v57 = vpop.eup %6507 }
 0x6ff   : > { %v1591_v58 = vmul.f32 %v6508_v57, %v6500_v47  ;;  %v6254_v47 = vld [vmem:[%s7931_s8 + $0x10] sm:$0xff]  }
 0x701   : > { %5977 = vmatmul.mubr.msk.f32.vlgmr.msra.gmra.mxu0 %vm1169_vm3, %v1591_v58 }
 0x702   : > { %5980 = vmatpush3.xpose.msk.msra.mxu0 %vm1079_vm2, %v1686_v14  ;;  %5983 = vmatprep.mubr.msk.f32.mxu0 %vm1079_vm2, %v1680_v59 }
 0x703   : > { %5981 = vmatprep.subr.msk.mxu0 %vm1079_vm2, %v1684_v60 }
 0x706   : > { %5982 = vmatpush3.xpose.msk.msra.mxu0 %vm1079_vm2, %v1684_v60 }
 0x709   : > { %5984 = vmatmul.mubr.msk.f32.vlgmr.msra.gmra.mxu0 %vm1079_vm2, %v1682_v61 }
 0x70a   : > { %2316 = vmatprep.mubr.bf16.mxu0 %v6615_v43 }
 0x7b6   : > { %v5964_v0 = vpop.f32.mrf.mxu0 }
 0x7b8   : > { %v1468_v2 = vpop.f32.mrf.mxu0 }
 0x7b9   : > { %v6183_v16 = vpack.i.bf16 %v5964_v0, %v1468_v2 }
 0x7c1   : > { %v5978_v3 = vpop.f32.mrf.mxu0 }
 0x7c3   : > { %v1670_v4 = vpop.f32.mrf.mxu0 }
 0x7c4   : > { %v6188_v17 = vpack.i.bf16 %v5978_v3, %v1670_v4 }
 0x7c9   : > { %v5985_v5 = vpop.f32.mrf.mxu0 }
 0x7ca   : > { %v1771_v6 = vmul.f32 0.17677669, %v5985_v5 }
 0x7cb   : > { %v1761_v9 = vpop.f32.mrf.mxu0 }
 0x7cc   : > { %v1770_v10 = vmul.f32 0.17677669, %v1761_v9  ;;  %v1775_v11 = vsel %vm1169_vm3, %v1771_v6, -inf }
 0x7cd   : > { %1776 = vmax.xlane.f32.xlu1 %v1775_v11 }
 0x7ce   : > { %v1772_v12 = vsel %vm1169_vm3, %v1770_v10, -inf }
 0x7cf   : > { %1773 = vmax.xlane.f32.xlu0 %v1772_v12 }
 0x7de   : > { %1794 = vrot.lane.b32.xlu1 %v6923_v30, %s7952_s2 }
 0x7e2   : > { %6184 = vrot.lane.b32.xlu1 %v6183_v16, %s7952_s2  ;;  %v6257_v16 = vld [vmem:[%s7935_s12 + $0xe0] ss:$16 sps:$4 sm:$0xff]  }
 0x7e6   : > { %6189 = vrot.lane.b32.xlu1 %v6188_v17, %s7954_s26  ;;  %v6260_v17 = vld [vmem:[%s7935_s12 + $0xe8] ss:$16 sps:$4 sm:$0xff]  }
 0x856   : > { %v1777_v19 = vpop.xlane.xlu1 %1776 }
 0x857   : > { %v1779_v20 = vsub.f32 %v1771_v6, %v1777_v19 }
 0x858   : > { %v1774_v21 = vpop.xlane.xlu0 %1773 }
 0x859   : > { %v1782_v22 = vmul.f32 1.442695, %v1779_v20  ;;  %v1778_v23 = vsub.f32 %v1770_v10, %v1774_v21 }
 0x85a   : > { %v1795_v37 = vpop.permute.xlu1 %1794 }
 0x85b   : > { %6509 = vpow2.f32 %v1782_v22  ;;  %v1780_v27 = vmul.f32 1.442695, %v1778_v23 }
 0x85d   : > { %6511 = vpow2.f32 %v1780_v27 }
 0x85e   : > { %v6185_v53 = vpop.permute.xlu1 %6184 }
 0x85f   : > { %v6187_v26 = vunpack.i.h.bf16 %v6185_v53  ;;  %v6186_v55 = vunpack.i.l.bf16 %v6185_v53  ;;  %v6298_v53 = vld [vmem:[%s7935_s12 + $0x2c] ss:$16 sps:$4 sm:$0xff]  }
 0x861   : > { %v1906_v29 = vsel %vm1079_vm2, %v6964_v62, %v6187_v26  ;;  %v1905_v57 = vsel %vm1079_vm2, %v6966_v63, %v6186_v55  ;;  %v5289_v62 = vld [vmem:[%s7932_s9] ss:$0 sm:$0xff]  ;;  %v6296_v26 = vld [vmem:[%s7935_s12 + $0x28] ss:$16 sps:$4 sm:$0xff]   ;;  %v6301_v55 = vld [vmem:[%s7935_s12 + $0x4] ss:$16 sps:$4 sm:$0xff]  }
 0x862   : > { %v6190_v54 = vpop.permute.xlu1 %6189 }
 0x863   : > { %v6192_v56 = vunpack.i.h.bf16 %v6190_v54  ;;  %v6191_v14 = vunpack.i.l.bf16 %v6190_v54  ;;  %v6293_v54 = vld [vmem:[%s7935_s12 + $0x20] ss:$16 sps:$4 sm:$0xff]  }
 0x865   : > { %v1907_v60 = vsel %vm727_vm1, %v1905_v57, %v6191_v14  ;;  %v1908_v61 = vsel %vm727_vm1, %v1906_v29, %v6192_v56  ;;  %v6304_v56 = vld [vmem:[%s7935_s12 + $0xc] ss:$16 sps:$4 sm:$0xff]   ;;  %v6299_v14 = vld [vmem:[%s7935_s12] ss:$16 sps:$4 sm:$0xff]  }
 0x868   : > { %v6510_v31 = vpop.eup %6509 }
 0x869   : > { %v1787_v32 = vsel %vm1169_vm3, %v6510_v31, 0.0 }
 0x86a   : > { %v6512_v33 = vpop.eup %6511  ;;  %1788 = vadd.xlane.f32.xlu0 %v1787_v32 }
 0x86b   : > { %v1784_v30 = vsel %vm1169_vm3, %v6512_v33, 0.0 }
 0x86e   : > { %1785 = vadd.xlane.f32.xlu0 %v1784_v30  ;;  %v6268_v30 = vld [vmem:[%s7935_s12 + $0xcc] ss:$16 sps:$4 sm:$0xff]  }
 0x884   : > { %1796 = vrot.lane.b32.xlu0 %v6916_v28, %s7952_s2  ;;  %v6249_v28 = vld [vmem:[%s7931_s8 + $0x38] sm:$0xff]   ;;  %s683_s2 = scalar_lea.vmem %s7981_s4, %s7980_s0 }
 0x8f3   : > { %v1789_v34 = vpop.xlane.xlu0 %1788 }
 0x8f4   : > { %6513 = vrcp.f32 %v1789_v34  ;;  %v6263_v34 = vld [vmem:[%s7935_s12 + $0xc0] ss:$16 sps:$4 sm:$0xff]  }
 0x8f7   : > { %v1786_v35 = vpop.xlane.xlu0 %1785 }
 0x8f8   : > { %6515 = vrcp.f32 %v1786_v35  ;;  %v6266_v35 = vld [vmem:[%s7935_s12 + $0xc8] ss:$16 sps:$4 sm:$0xff]  }
 0x8fb   : > { %v1797_v36 = vpop.permute.xlu0 %1796 }
 0x8fc   : > { %5986 = vmatprep.subr.mxu1 %v1797_v36 }
 0x8fd   : > { %5987 = vmatpush3.msra.mxu1 %v1797_v36  ;;  %v6271_v36 = vld [vmem:[%s7935_s12 + $0xa4] ss:$16 sps:$4 sm:$0xff]  }
 0x8fe   : > { %5988 = vmatprep.subr.mxu1 %v1795_v37 }
 0x8ff   : > { %5989 = vmatpush3.msra.mxu1 %v1795_v37  ;;  %v6274_v37 = vld [vmem:[%s7935_s12 + $0xac] ss:$16 sps:$4 sm:$0xff]  }
 0x900   : > { %5993 = vmatprep.subr.bf16.mxu1 %v6613_v1 }
 0x901   : > { %v6514_v38 = vpop.eup %6513 }
 0x902   : > { %v1793_v41 = vmul.f32 %v6514_v38, %v6510_v31  ;;  %v6269_v38 = vld [vmem:[%s7935_s12 + $0xa0] ss:$16 sps:$4 sm:$0xff]  }
 0x905   : > { %v6516_v39 = vpop.eup %6515 }
 0x906   : > { %v1791_v40 = vmul.f32 %v6516_v39, %v6512_v33  ;;  %v6265_v33 = vld [vmem:[%s7935_s12 + $0xc4] ss:$16 sps:$4 sm:$0xff]   ;;  %v6272_v39 = vld [vmem:[%s7935_s12 + $0xa8] ss:$16 sps:$4 sm:$0xff]  }
 0x908   : > { %5990 = vmatprep.mubr.msk.f32.mxu1 %vm1169_vm3, %v1791_v40  ;;  %v6275_v40 = vld [vmem:[%s7935_s12 + $0x80] ss:$16 sps:$4 sm:$0xff]  }
 0x909   : > { %5991 = vmatmul.mubr.msk.f32.vlgmr.msra.gmra.mxu1 %vm1169_vm3, %v1793_v41  ;;  %v6277_v41 = vld [vmem:[%s7935_s12 + $0x84] ss:$16 sps:$4 sm:$0xff]  }
 0x90a   : > { %6009 = vmatprep.mubr.msk.bf16.mxu1 %vm6614_vm0, %v6613_v1  ;;  %5994 = vmatpush3.bf16.msra.mxu1 %v6249_v28  ;;  %v6278_v28 = vld [vmem:[%s7935_s12 + $0x88] ss:$16 sps:$4 sm:$0xff]  }
 0x90b   : > { %5995 = vmatprep.subr.bf16.mxu1 %v6613_v1 }
 0x90e   : > { %5996 = vmatpush3.bf16.msra.mxu1 %v6250_v42  ;;  %v6280_v42 = vld [vmem:[%s7935_s12 + $0x8c] ss:$16 sps:$4 sm:$0xff]  }
 0x90f   : > { %5997 = vmatprep.subr.bf16.mxu1 %v6613_v1 }
 0x912   : > { %5998 = vmatpush3.bf16.msra.mxu1 %v6251_v44  ;;  %v6283_v44 = vld [vmem:[%s7935_s12 + $0x64] ss:$16 sps:$4 sm:$0xff]  }
 0x913   : > { %5999 = vmatprep.subr.bf16.mxu1 %v6613_v1 }
 0x916   : > { %6000 = vmatpush3.bf16.msra.mxu1 %v6252_v45  ;;  %v6286_v45 = vld [vmem:[%s7935_s12 + $0x6c] ss:$16 sps:$4 sm:$0xff]  }
 0x917   : > { %6001 = vmatprep.subr.bf16.mxu1 %v6613_v1 }
 0x91a   : > { %6002 = vmatpush3.bf16.msra.mxu1 %v6253_v46  ;;  %v6281_v46 = vld [vmem:[%s7935_s12 + $0x60] ss:$16 sps:$4 sm:$0xff]  }
 0x91b   : > { %6003 = vmatprep.subr.bf16.mxu1 %v6613_v1 }
 0x91e   : > { %6004 = vmatpush3.bf16.msra.mxu1 %v6254_v47  ;;  %v6284_v47 = vld [vmem:[%s7935_s12 + $0x68] ss:$16 sps:$4 sm:$0xff]  }
 0x91f   : > { %6005 = vmatprep.subr.bf16.mxu1 %v6613_v1 }
 0x922   : > { %6006 = vmatpush3.bf16.msra.mxu1 %v6255_v48  ;;  %v6289_v48 = vld [vmem:[%s7935_s12 + $0x44] ss:$16 sps:$4 sm:$0xff]  }
 0x923   : > { %6007 = vmatprep.subr.bf16.mxu1 %v6613_v1 }
 0x926   : > { %6008 = vmatpush3.bf16.msra.mxu1 %v6256_v49  ;;  %v6292_v49 = vld [vmem:[%s7935_s12 + $0x4c] ss:$16 sps:$4 sm:$0xff]  }
 0x9c9   : > { %v5992_v50 = vpop.f32.mrf.mxu1 }
 0x9cb   : > { %v1872_v51 = vpop.f32.mrf.mxu1 }
 0x9cc   : > { %v6193_v52 = vpack.i.bf16 %v5992_v50, %v1872_v51  ;;  %v6287_v50 = vld [vmem:[%s7935_s12 + $0x40] ss:$16 sps:$4 sm:$0xff]   ;;  %v6290_v51 = vld [vmem:[%s7935_s12 + $0x48] ss:$16 sps:$4 sm:$0xff]  }
 0x9ce   : > { %6194 = vrot.lane.b32.xlu0 %v6193_v52, %s7977_s27  ;;  %v6295_v52 = vld [vmem:[%s7935_s12 + $0x24] ss:$16 sps:$4 sm:$0xff]  }
 0xa40   : > { %v6195_v25 = vpop.permute.xlu0 %6194 }
 0xa41   : > { %v6197_v58 = vunpack.i.h.bf16 %v6195_v25  ;;  %v6196_v59 = vunpack.i.l.bf16 %v6195_v25  ;;  %v6302_v25 = vld [vmem:[%s7935_s12 + $0x8] ss:$16 sps:$4 sm:$0xff]  }
 0xa43   : > { %v1911_v0 = vsel %vm1909_vm4, %v1908_v61, %v6197_v58  ;;  %v1910_v2 = vsel %vm1909_vm4, %v1907_v60, %v6196_v59 }
 0xa44   : > { %v1928_v3 = vpack.c.bf16 %v1911_v0, %v1910_v2 }
 0xa46   : > { %6010 = vmatmul.mubr.bf16.vlgmr.msra.gmra.mxu1 %v1928_v3  ;;  %v5290_v3 = vld [vmem:[%s7933_s10] ss:$0 sm:$0xff] }
 0xa47   : > { %2359 = vmatprep.mubr.bf16.mxu1 %v6615_v43 }
 0xb06   : > { %v2011_v4 = vpop.f32.mrf.mxu1 }
 0xb07   : > { %v2018_v63 = vadd.f32 %v2011_v4, %v6778_v13  ;;  %v6259_v13 = vld [vmem:[%s7935_s12 + $0xe4] ss:$16 sps:$4 sm:$0xff]  }
 0xb08   : > { %v6011_v5 = vpop.f32.mrf.mxu1  ;;  %2284 = vmatprep.subr.bf16.mxu0 %v6259_v13  ;;  %v6305_v13 = vld [vmem:[%s7937_s14 + $0x78] sm:$0xff]  }
 0xb09   : > { %v7063_v6 = vadd.f32 %v5289_v62, %v2018_v63  ;;  %2285 = vmatpush1.bf16.msra.mxu0 %v6257_v16  ;;  %v5291_v5 = vld [vmem:[%s7934_s11] ss:$0 sm:$0xff] }
 0xb0a   : > { %v2014_v9 = vpop.f32.mrf.mxu1  ;;  %2286 = vmatprep.subr.bf16.mxu0 %v6265_v33  ;;  %v6316_v33 = vld [vmem:[%s7937_s14 + $0xa8] sm:$0xff]  }
 0xb0b   : > { %v2019_v10 = vadd.f32 %v2014_v9, %v6784_v18  ;;  %2031 = vadd.xlane.f32.xlu1 %v7063_v6  ;;  %v6262_v18 = vld [vmem:[%s7935_s12 + $0xec] ss:$16 sps:$4 sm:$0xff]  }
 0xb0c   : > { %v6012_v11 = vpop.f32.mrf.mxu1  ;;  %2327 = vmatprep.subr.bf16.mxu1 %v6262_v18  ;;  %v6307_v18 = vld [vmem:[%s7937_s14 + $0x38] sm:$0xff]  }
 0xb0d   : > { %v7067_v12 = vadd.f32 %v5289_v62, %v2019_v10  ;;  %2328 = vmatpush1.bf16.msra.mxu1 %v6260_v17  ;;  %2287 = vmatpush1.bf16.msra.mxu0 %v6263_v34  ;;  %v6306_v17 = vld [vmem:[%s7937_s14 + $0xf8] sm:$0xff]   ;;  %v6318_v34 = vld [vmem:[%s7937_s14 + $0xe0] sm:$0xff]  }
 0xb0e   : > { %2329 = vmatprep.subr.bf16.mxu1 %v6268_v30  ;;  %2288 = vmatprep.subr.bf16.mxu0 %v6271_v36  ;;  %v6317_v30 = vld [vmem:[%s7937_s14 + $0x60] sm:$0xff]  }
 0xb0f   : > { %2033 = vadd.xlane.f32.xlu0 %v7067_v12  ;;  %v6320_v36 = vld [vmem:[%s7937_s14 + $0xa0] sm:$0xff]  }
 0xb11   : > { %2330 = vmatpush1.bf16.msra.mxu1 %v6266_v35  ;;  %2289 = vmatpush1.bf16.msra.mxu0 %v6269_v38  ;;  %v6319_v35 = vld [vmem:[%s7937_s14 + $0x20] sm:$0xff]   ;;  %v6322_v38 = vld [vmem:[%s7937_s14 + $0xd8] sm:$0xff]  }
 0xb12   : > { %2331 = vmatprep.subr.bf16.mxu1 %v6274_v37  ;;  %2290 = vmatprep.subr.bf16.mxu0 %v6277_v41  ;;  %v6321_v37 = vld [vmem:[%s7937_s14 + $0x58] sm:$0xff]   ;;  %v6325_v41 = vld [vmem:[%s7937_s14 + $0x50] sm:$0xff]  }
 0xb15   : > { %2332 = vmatpush1.bf16.msra.mxu1 %v6272_v39  ;;  %2291 = vmatpush1.bf16.msra.mxu0 %v6275_v40  ;;  %v6323_v39 = vld [vmem:[%s7937_s14 + $0x18] sm:$0xff]  }
 0xb16   : > { %2333 = vmatprep.subr.bf16.mxu1 %v6280_v42  ;;  %2292 = vmatprep.subr.bf16.mxu0 %v6283_v44  ;;  %v6324_v40 = vld [vmem:[%s7937_s14 + $0x98] sm:$0xff]   ;;  %v6327_v42 = vld [vmem:[%s7937_s14 + $0x10] sm:$0xff]  }
 0xb17   : > { %v6328_v44 = vld [vmem:[%s7937_s14 + $0x90] sm:$0xff]  }
 0xb19   : > { %2334 = vmatpush1.bf16.msra.mxu1 %v6278_v28  ;;  %2293 = vmatpush1.bf16.msra.mxu0 %v6281_v46  ;;  %v6326_v28 = vld [vmem:[%s7937_s14 + $0xd0] sm:$0xff]   ;;  %v6330_v46 = vld [vmem:[%s7937_s14 + $0xc8] sm:$0xff]  }
 0xb1a   : > { %2335 = vmatprep.subr.bf16.mxu1 %v6286_v45  ;;  %2294 = vmatprep.subr.bf16.mxu0 %v6289_v48  ;;  %v6329_v45 = vld [vmem:[%s7937_s14 + $0x48] sm:$0xff]  }
 0xb1b   : > { %v6332_v48 = vld [vmem:[%s7937_s14 + $0x88] sm:$0xff]  }
 0xb1d   : > { %2336 = vmatpush1.bf16.msra.mxu1 %v6284_v47  ;;  %2295 = vmatpush1.bf16.msra.mxu0 %v6287_v50  ;;  %v6331_v47 = vld [vmem:[%s7937_s14 + $0x8] sm:$0xff]   ;;  %v6334_v50 = vld [vmem:[%s7937_s14 + $0xc0] sm:$0xff]  }
 0xb1e   : > { %2337 = vmatprep.subr.bf16.mxu1 %v6292_v49  ;;  %2296 = vmatprep.subr.bf16.mxu0 %v6295_v52  ;;  %v6333_v49 = vld [vmem:[%s7937_s14 + $0x40] sm:$0xff]  }
 0xb1f   : > { %v6336_v52 = vld [vmem:[%s7937_s14 + $0x80] sm:$0xff]  }
 0xb21   : > { %2338 = vmatpush1.bf16.msra.mxu1 %v6290_v51  ;;  %2297 = vmatpush1.bf16.msra.mxu0 %v6293_v54  ;;  %v6335_v51 = vld [vmem:[%s7937_s14] sm:$0xff]   ;;  %v2118_v54 = vsub.s32 3, %v6885_v7 }
 0xb22   : > { %2339 = vmatprep.subr.bf16.mxu1 %v6298_v53  ;;  %2298 = vmatprep.subr.bf16.mxu0 %v6301_v55  ;;  %v2102_v53 = vld [vmem:[%s7936_s13] sm:$0xf] }
 0xb23   : > { %v2115_v55 = vrot.slane %v2102_v53, %v6903_v24 }
 0xb25   : > { %2340 = vmatpush1.bf16.msra.mxu1 %v6296_v26  ;;  %2299 = vmatpush1.bf16.msra.mxu0 %v6299_v14  ;;  %v2107_v26 = vrot.slane %v2102_v53, %v6888_v8 }
 0xb26   : > { %2341 = vmatprep.subr.bf16.mxu1 %v6304_v56  ;;  %5740 = vmatprep.subr.bf16.mxu0 %v6305_v13 }
 0xb29   : > { %2342 = vmatpush1.bf16.msra.mxu1 %v6302_v25  ;;  %v2111_v25 = vrot.slane %v2102_v53, %v6897_v15 }
 0xb2a   : > { %5762 = vmatprep.subr.bf16.mxu1 %v6306_v17 }
 0xb94   : > { %v2032_v19 = vpop.xlane.xlu1 %2031 }
 0xb95   : > { %v2035_v20 = vmul.f32 0.0078125, %v2032_v19  ;;  %v6308_v19 = vld [vmem:[%s7937_s14 + $0xb8] sm:$0xff]  }
 0xb97   : > { %v7083_v21 = vsub.f32 %v7063_v6, %v2035_v20  ;;  %v6309_v20 = vld [vmem:[%s7937_s14 + $0x70] sm:$0xff]  }
 0xb98   : > { %v2034_v22 = vpop.xlane.xlu0 %2033 }
 0xb99   : > { %v2036_v23 = vmul.f32 0.0078125, %v2034_v22  ;;  %v2039_v27 = vmul.f32 %v7083_v21, %v7083_v21  ;;  %v6311_v22 = vld [vmem:[%s7937_s14 + $0x30] sm:$0xff]  }
 0xb9b   : > { %v7088_v31 = vsub.f32 %v7067_v12, %v2036_v23  ;;  %2041 = vadd.xlane.f32.xlu0 %v2039_v27  ;;  %v6312_v23 = vld [vmem:[%s7937_s14 + $0xb0] sm:$0xff]   ;;  %v6313_v27 = vld [vmem:[%s7937_s14 + $0x68] sm:$0xff]  }
 0xb9d   : > { %v2040_v32 = vmul.f32 %v7088_v31, %v7088_v31 }
 0xb9f   : > { %2043 = vadd.xlane.f32.xlu0 %v2040_v32  ;;  %v6315_v32 = vld [vmem:[%s7937_s14 + $0x28] sm:$0xff]  }
 0xc24   : > { %v2042_v29 = vpop.xlane.xlu0 %2041 }
 0xc25   : > { %v2045_v57 = vmul.f32 0.0078125, %v2042_v29  ;;  %v2119_v29 = vrot.slane %v2102_v53, %v2118_v54 }
 0xc27   : > { %v2047_v58 = vadd.f32 1e-05, %v2045_v57 }
 0xc28   : > { %v2044_v59 = vpop.xlane.xlu0 %2043 }
 0xc29   : > { %6517 = vrsqrt.f32 %v2047_v58  ;;  %v2046_v60 = vmul.f32 0.0078125, %v2044_v59 }
 0xc2b   : > { %v2048_v61 = vadd.f32 1e-05, %v2046_v60 }
 0xc2d   : > { %6519 = vrsqrt.f32 %v2048_v61 }
 0xc36   : > { %v6518_v0 = vpop.eup %6517 }
 0xc37   : > { %v2051_v2 = vmul.f32 %v6518_v0, %v7083_v21  ;;  %v6310_v21 = vld [vmem:[%s7937_s14 + $0xf0] sm:$0xff]  }
 0xc39   : > { %v2059_v63 = vmul.f32 %v5290_v3, %v2051_v2 }
 0xc3a   : > { %v6520_v4 = vpop.eup %6519 }
 0xc3b   : > { %v2052_v62 = vmul.f32 %v6520_v4, %v7088_v31  ;;  %v2067_v10 = vadd.f32 %v5291_v5, %v2059_v63  ;;  %v6314_v31 = vld [vmem:[%s7937_s14 + $0xe8] sm:$0xff]  }
 0xc3d   : > { %v2060_v9 = vmul.f32 %v5290_v3, %v2052_v62 }
 0xc3f   : > { %v2068_v11 = vadd.f32 %v5291_v5, %v2060_v9 }
 0xc41   : > { %v2101_v16 = vpack.c.bf16 %v2068_v11, %v2067_v10 }
 0xc43   : > { %2317 = vmatmul.mubr.bf16.vlgmr.msra.gmra.mxu0 %v2101_v16  ;;  %2360 = vmatmul.mubr.bf16.vlgmr.msra.gmra.mxu1 %v2101_v16 }
 0xc44   : > { %5741 = vmatpush3.bf16.msra.mxu0 %v6307_v18  ;;  %5763 = vmatpush3.bf16.msra.mxu1 %v6308_v19 }
 0xc45   : > { %5742 = vmatprep.subr.bf16.mxu0 %v6309_v20  ;;  %5764 = vmatprep.subr.bf16.mxu1 %v6310_v21 }
 0xc48   : > { %5743 = vmatpush3.bf16.msra.mxu0 %v6311_v22  ;;  %5765 = vmatpush3.bf16.msra.mxu1 %v6312_v23 }
 0xc49   : > { %5744 = vmatprep.subr.bf16.mxu0 %v6313_v27  ;;  %5766 = vmatprep.subr.bf16.mxu1 %v6314_v31 }
 0xc4c   : > { %5745 = vmatpush3.bf16.msra.mxu0 %v6315_v32  ;;  %5767 = vmatpush3.bf16.msra.mxu1 %v6316_v33 }
 0xc4d   : > { %5746 = vmatprep.subr.bf16.mxu0 %v6317_v30  ;;  %5768 = vmatprep.subr.bf16.mxu1 %v6318_v34 }
 0xc50   : > { %5747 = vmatpush3.bf16.msra.mxu0 %v6319_v35  ;;  %5769 = vmatpush3.bf16.msra.mxu1 %v6320_v36 }
 0xc51   : > { %5748 = vmatprep.subr.bf16.mxu0 %v6321_v37  ;;  %5770 = vmatprep.subr.bf16.mxu1 %v6322_v38 }
 0xc54   : > { %5749 = vmatpush3.bf16.msra.mxu0 %v6323_v39  ;;  %5771 = vmatpush3.bf16.msra.mxu1 %v6324_v40 }
 0xc55   : > { %5750 = vmatprep.subr.bf16.mxu0 %v6325_v41  ;;  %5772 = vmatprep.subr.bf16.mxu1 %v6326_v28 }
 0xc58   : > { %5751 = vmatpush3.bf16.msra.mxu0 %v6327_v42  ;;  %5773 = vmatpush3.bf16.msra.mxu1 %v6328_v44 }
 0xc59   : > { %5752 = vmatprep.subr.bf16.mxu0 %v6329_v45  ;;  %5774 = vmatprep.subr.bf16.mxu1 %v6330_v46 }
 0xc5c   : > { %5753 = vmatpush3.bf16.msra.mxu0 %v6331_v47  ;;  %5775 = vmatpush3.bf16.msra.mxu1 %v6332_v48 }
 0xc5d   : > { %5754 = vmatprep.subr.bf16.mxu0 %v6333_v49  ;;  %5776 = vmatprep.subr.bf16.mxu1 %v6334_v50 }
 0xc60   : > { %5755 = vmatpush3.bf16.msra.mxu0 %v6335_v51  ;;  %5777 = vmatpush3.bf16.msra.mxu1 %v6336_v52 }
 0xc61   : > { %6013 = vmatprep.subr.bf16.mxu1 %v6613_v1 }
 0xd03   : > { %v2318_v56 = vpop.f32.mrf.mxu0  ;;  %v2361_v14 = vpop.f32.mrf.mxu1 }
 0xd04   : > { %v2319_v57 = vadd.f32 %v2318_v56, %v2107_v26  ;;  %v2362_v58 = vadd.f32 %v2361_v14, %v2115_v55 }
 0xd05   : > { %v2320_v59 = vpop.f32.mrf.mxu0  ;;  %v2363_v60 = vpop.f32.mrf.mxu1 }
 0xd06   : > { %v2378_v61 = vmul.f32 0.70710677, %v2319_v57  ;;  %v2380_v0 = vmul.f32 0.70710677, %v2362_v58  ;;  %v2321_v2 = vadd.f32 %v2320_v59, %v2111_v25  ;;  %v2364_v3 = vadd.f32 %v2363_v60, %v2119_v29 }
 0xd07   : > { %v2322_v4 = vpop.f32.mrf.mxu0  ;;  %v2365_v62 = vpop.f32.mrf.mxu1  ;;  %v2370_v30 = vmul.f32 0.5, %v2319_v57  ;;  %v2372_v51 = vmul.f32 0.5, %v2362_v58 }
 0xd08   : > { %v2323_v63 = vadd.f32 %v2322_v4, %v2107_v26  ;;  %v2366_v5 = vadd.f32 %v2365_v62, %v2115_v55  ;;  %6521 = verf.f32 %v2378_v61  ;;  %v2379_v9 = vmul.f32 0.70710677, %v2321_v2 }
 0xd09   : > { %v2324_v10 = vpop.f32.mrf.mxu0  ;;  %v2367_v11 = vpop.f32.mrf.mxu1  ;;  %6523 = verf.f32 %v2380_v0  ;;  %v2381_v16 = vmul.f32 0.70710677, %v2364_v3  ;;  %v2371_v34 = vmul.f32 0.5, %v2321_v2  ;;  %v2373_v47 = vmul.f32 0.5, %v2364_v3 }
 0xd0a   : > { %v2382_v13 = vmul.f32 0.70710677, %v2323_v63  ;;  %6525 = verf.f32 %v2379_v9  ;;  %v2384_v17 = vmul.f32 0.70710677, %v2366_v5  ;;  %v2325_v18 = vadd.f32 %v2324_v10, %v2111_v25 }
 0xd0b   : > { %v2368_v19 = vadd.f32 %v2367_v11, %v2119_v29  ;;  %6527 = verf.f32 %v2381_v16  ;;  %v2374_v40 = vmul.f32 0.5, %v2323_v63  ;;  %v2376_v44 = vmul.f32 0.5, %v2366_v5  ;;  %v5356_v16 = vld [vmem:[%s7938_s15] ss:$0 sm:$0xff] }
 0xd0c   : > { %6529 = verf.f32 %v2382_v13  ;;  %v2383_v20 = vmul.f32 0.70710677, %v2325_v18  ;;  %v2375_v45 = vmul.f32 0.5, %v2325_v18 }
 0xd0d   : > { %6531 = verf.f32 %v2384_v17  ;;  %v2385_v21 = vmul.f32 0.70710677, %v2368_v19  ;;  %v2377_v49 = vmul.f32 0.5, %v2368_v19 }
 0xd0e   : > { %6533 = verf.f32 %v2383_v20 }
 0xd0f   : > { %6535 = verf.f32 %v2385_v21 }
 0xd15   : > { %v6522_v22 = vpop.eup %6521 }
 0xd16   : > { %v6524_v23 = vpop.eup %6523  ;;  %v2394_v38 = vadd.f32 1.0, %v6522_v22  ;;  %v6337_v22 = vld [vmem:[%s7974_s29 + $0x168] ss:$12 sps:$4 sm:$0xff]  }
 0xd17   : > { %v6526_v27 = vpop.eup %6525  ;;  %v2396_v42 = vadd.f32 1.0, %v6524_v23  ;;  %v6340_v23 = vld [vmem:[%s7974_s29 + $0x170] ss:$12 sps:$4 sm:$0xff]  }
 0xd18   : > { %v6528_v31 = vpop.eup %6527  ;;  %v2395_v35 = vadd.f32 1.0, %v6526_v27  ;;  %v2402_v55 = vmul.f32 %v2394_v38, %v2370_v30  ;;  %v6344_v38 = vld [vmem:[%s7974_s29 + $0x158] ss:$12 sps:$4 sm:$0xff]  }
 0xd19   : > { %v6530_v32 = vpop.eup %6529  ;;  %v2397_v39 = vadd.f32 1.0, %v6528_v31  ;;  %v2404_v25 = vmul.f32 %v2396_v42, %v2372_v51  ;;  %v6351_v42 = vld [vmem:[%s7974_s29 + $0x124] ss:$12 sps:$4 sm:$0xff]   ;;  %v6363_v51 = vld [vmem:[%s7974_s29 + $0xdc] ss:$12 sps:$4 sm:$0xff]  }
 0xd1a   : > { %v6532_v33 = vpop.eup %6531  ;;  %v2398_v36 = vadd.f32 1.0, %v6530_v32  ;;  %v2403_v52 = vmul.f32 %v2395_v35, %v2371_v34 }
 0xd1b   : > { %v6534_v37 = vpop.eup %6533  ;;  %v2400_v41 = vadd.f32 1.0, %v6532_v33  ;;  %v2405_v56 = vmul.f32 %v2397_v39, %v2373_v47  ;;  %v6347_v39 = vld [vmem:[%s7974_s29 + $0x13c] ss:$12 sps:$4 sm:$0xff]  }
 0xd1c   : > { %v6536_v28 = vpop.eup %6535  ;;  %v2399_v46 = vadd.f32 1.0, %v6534_v37  ;;  %v2406_v48 = vmul.f32 %v2398_v36, %v2374_v40  ;;  %v6343_v36 = vld [vmem:[%s7974_s29 + $0x154] ss:$12 sps:$4 sm:$0xff]   ;;  %v6341_v37 = vld [vmem:[%s7974_s29 + $0x150] ss:$12 sps:$4 sm:$0xff]  }
 0xd1d   : > { %v2401_v50 = vadd.f32 1.0, %v6536_v28  ;;  %v2408_v53 = vmul.f32 %v2400_v41, %v2376_v44  ;;  %v6345_v40 = vld [vmem:[%s7974_s29 + $0x138] ss:$12 sps:$4 sm:$0xff]   ;;  %v6348_v41 = vld [vmem:[%s7974_s29 + $0x140] ss:$12 sps:$4 sm:$0xff]  }
 0xd1e   : > { %v2407_v26 = vmul.f32 %v2399_v46, %v2375_v45  ;;  %v2474_v57 = vpack.c.bf16 %v2406_v48, %v2402_v55  ;;  %v6349_v28 = vld [vmem:[%s7974_s29 + $0x120] ss:$12 sps:$4 sm:$0xff]   ;;  %v6352_v44 = vld [vmem:[%s7974_s29 + $0x128] ss:$12 sps:$4 sm:$0xff]   ;;  %v6356_v47 = vld [vmem:[%s7974_s29 + $0x110] ss:$12 sps:$4 sm:$0xff]  }
 0xd1f   : > { %v2409_v14 = vmul.f32 %v2401_v50, %v2377_v49  ;;  %v2476_v60 = vpack.c.bf16 %v2408_v53, %v2404_v25  ;;  %v6355_v45 = vld [vmem:[%s7974_s29 + $0x10c] ss:$12 sps:$4 sm:$0xff]   ;;  %v6353_v46 = vld [vmem:[%s7974_s29 + $0x108] ss:$12 sps:$4 sm:$0xff]   ;;  %v6357_v49 = vld [vmem:[%s7974_s29 + $0xf0] ss:$12 sps:$4 sm:$0xff]  }
 0xd20   : > { %v2475_v29 = vpack.c.bf16 %v2407_v26, %v2403_v52  ;;  %v6359_v48 = vld [vmem:[%s7974_s29 + $0xf4] ss:$12 sps:$4 sm:$0xff]   ;;  %v6360_v50 = vld [vmem:[%s7974_s29 + $0xf8] ss:$12 sps:$4 sm:$0xff]  }
 0xd21   : > { %v2477_v59 = vpack.c.bf16 %v2409_v14, %v2405_v56  ;;  %v6361_v52 = vld [vmem:[%s7974_s29 + $0xd8] ss:$12 sps:$4 sm:$0xff]   ;;  %v6364_v53 = vld [vmem:[%s7974_s29 + $0xe0] ss:$12 sps:$4 sm:$0xff]   ;;  %v6368_v56 = vld [vmem:[%s7974_s29 + $0xc8] ss:$12 sps:$4 sm:$0xff]  }
 0xd22   : > { %2702 = vmatprep.mubr.bf16.mxu0 %v2475_v29  ;;  %v6367_v26 = vld [vmem:[%s7974_s29 + $0xc4] ss:$12 sps:$4 sm:$0xff]   ;;  %v6365_v55 = vld [vmem:[%s7974_s29 + $0xc0] ss:$12 sps:$4 sm:$0xff]  }
 0xd23   : > { %2743 = vmatprep.mubr.bf16.mxu1 %v2477_v59  ;;  %2703 = vmatmul.mubr.bf16.vlgmr.msra.gmra.mxu0 %v2474_v57 }
 0xd24   : > { %2744 = vmatmul.mubr.bf16.vlgmr.msra.gmra.mxu1 %v2476_v60  ;;  %3017 = vmatprep.mubr.bf16.mxu0 %v6615_v43 }
 0xd25   : > { %6029 = vmatprep.mubr.msk.bf16.mxu1 %vm6614_vm0, %v6613_v1  ;;  %6014 = vmatpush3.bf16.msra.mxu1 %v6340_v23 }
 0xd26   : > { %6015 = vmatprep.subr.bf16.mxu1 %v6613_v1 }
 0xd29   : > { %6016 = vmatpush3.bf16.msra.mxu1 %v6344_v38 }
 0xd2a   : > { %6017 = vmatprep.subr.bf16.mxu1 %v6613_v1 }
 0xd2d   : > { %6018 = vmatpush3.bf16.msra.mxu1 %v6348_v41 }
 0xd2e   : > { %6019 = vmatprep.subr.bf16.mxu1 %v6613_v1 }
 0xd31   : > { %6020 = vmatpush3.bf16.msra.mxu1 %v6352_v44 }
 0xd32   : > { %6021 = vmatprep.subr.bf16.mxu1 %v6613_v1 }
 0xd35   : > { %6022 = vmatpush3.bf16.msra.mxu1 %v6356_v47 }
 0xd36   : > { %6023 = vmatprep.subr.bf16.mxu1 %v6613_v1 }
 0xd39   : > { %6024 = vmatpush3.bf16.msra.mxu1 %v6360_v50 }
 0xd3a   : > { %6025 = vmatprep.subr.bf16.mxu1 %v6613_v1 }
 0xd3d   : > { %6026 = vmatpush3.bf16.msra.mxu1 %v6364_v53 }
 0xd3e   : > { %6027 = vmatprep.subr.bf16.mxu1 %v6613_v1 }
 0xd41   : > { %6028 = vmatpush3.bf16.msra.mxu1 %v6368_v56 }
 0xde3   : > { %v5756_v58 = vpop.f32.mrf.mxu0 }
 0xde4   : > { %v5778_v61 = vpop.f32.mrf.mxu1 }
 0xde5   : > { %v5757_v0 = vpop.f32.mrf.mxu0 }
 0xde6   : > { %v5758_v2 = vadd.f32 %v5757_v0, %v5756_v58  ;;  %v5779_v3 = vpop.f32.mrf.mxu1  ;;  %v5359_v0 = vld [vmem:[%s7975_s30 + $0x1] ss:$0 sm:$0xff] }
 0xde7   : > { %v5780_v4 = vadd.f32 %v5779_v3, %v5778_v61  ;;  %v5759_v62 = vpop.f32.mrf.mxu0 }
 0xde8   : > { %v5781_v63 = vpop.f32.mrf.mxu1 }
 0xde9   : > { %v2746_v5 = vadd.f32 %v5780_v4, %v5758_v2  ;;  %v5760_v9 = vpop.f32.mrf.mxu0 }
 0xdea   : > { %v5761_v10 = vadd.f32 %v5760_v9, %v5759_v62  ;;  %v5782_v11 = vpop.f32.mrf.mxu1  ;;  %v5360_v62 = vld [vmem:[%s7976_s1 + $0x1] ss:$0 sm:$0xff] }
 0xdeb   : > { %v2752_v13 = vadd.f32 %v2746_v5, %v7063_v6  ;;  %v5783_v17 = vadd.f32 %v5782_v11, %v5781_v63  ;;  %v6339_v6 = vld [vmem:[%s7974_s29 + $0x16c] ss:$12 sps:$4 sm:$0xff]   ;;  %v5393_v11 = vld [vmem:[%s7930_s7 + $0x3] sm:$0x7] }
 0xdec   : > { %2985 = vmatprep.subr.bf16.mxu0 %v6339_v6 }
 0xded   : > { %v2749_v18 = vadd.f32 %v5783_v17, %v5761_v10  ;;  %v7297_v19 = vadd.f32 %v5356_v16, %v2752_v13  ;;  %2986 = vmatpush1.bf16.msra.mxu0 %v6337_v22 }
 0xdee   : > { %2987 = vmatprep.subr.bf16.mxu0 %v6343_v36 }
 0xdef   : > { %v2753_v20 = vadd.f32 %v2749_v18, %v7067_v12  ;;  %2767 = vadd.xlane.f32.xlu1 %v7297_v19 }
 0xdf1   : > { %v7301_v21 = vadd.f32 %v5356_v16, %v2753_v20  ;;  %2988 = vmatpush1.bf16.msra.mxu0 %v6341_v37  ;;  %v2845_v16 = vrot.slane %v5393_v11, %v6888_v8 }
 0xdf2   : > { %2989 = vmatprep.subr.bf16.mxu0 %v6347_v39 }
 0xdf3   : > { %2769 = vadd.xlane.f32.xlu0 %v7301_v21 }
 0xdf5   : > { %2990 = vmatpush1.bf16.msra.mxu0 %v6345_v40 }
 0xdf6   : > { %2991 = vmatprep.subr.bf16.mxu0 %v6351_v42 }
 0xdf9   : > { %2992 = vmatpush1.bf16.msra.mxu0 %v6349_v28 }
 0xdfa   : > { %2993 = vmatprep.subr.bf16.mxu0 %v6355_v45 }
 0xdfd   : > { %2994 = vmatpush1.bf16.msra.mxu0 %v6353_v46 }
 0xdfe   : > { %2995 = vmatprep.subr.bf16.mxu0 %v6359_v48 }
 0xe01   : > { %2996 = vmatpush1.bf16.msra.mxu0 %v6357_v49 }
 0xe02   : > { %2997 = vmatprep.subr.bf16.mxu0 %v6363_v51 }
 0xe05   : > { %2998 = vmatpush1.bf16.msra.mxu0 %v6361_v52 }
 0xe06   : > { %2999 = vmatprep.subr.bf16.mxu0 %v6367_v26 }
 0xe09   : > { %3000 = vmatpush1.bf16.msra.mxu0 %v6365_v55 }
 0xe78   : > { %v2768_v12 = vpop.xlane.xlu1 %2767 }
 0xe79   : > { %v2771_v27 = vmul.f32 0.0078125, %v2768_v12  ;;  %v2849_v12 = vrot.slane %v5393_v11, %v6897_v15 }
 0xe7b   : > { %v7315_v31 = vsub.f32 %v7297_v19, %v2771_v27 }
 0xe7c   : > { %v2770_v32 = vpop.xlane.xlu0 %2769 }
 0xe7d   : > { %v2772_v33 = vmul.f32 0.0078125, %v2770_v32  ;;  %v2775_v30 = vmul.f32 %v7315_v31, %v7315_v31 }
 0xe7f   : > { %v7320_v34 = vsub.f32 %v7301_v21, %v2772_v33  ;;  %2777 = vadd.xlane.f32.xlu1 %v2775_v30  ;;  %v2853_v30 = vrot.slane %v5393_v11, %v6903_v24 }
 0xe81   : > { %v2776_v35 = vmul.f32 %v7320_v34, %v7320_v34 }
 0xe83   : > { %2779 = vadd.xlane.f32.xlu0 %v2776_v35 }
 0xf08   : > { %v2778_v14 = vpop.xlane.xlu1 %2777 }
 0xf09   : > { %v2781_v25 = vmul.f32 0.0078125, %v2778_v14 }
 0xf0b   : > { %v2783_v29 = vadd.f32 1e-05, %v2781_v25 }
 0xf0c   : > { %v2780_v57 = vpop.xlane.xlu0 %2779 }
 0xf0d   : > { %6537 = vrsqrt.f32 %v2783_v29  ;;  %v2782_v59 = vmul.f32 0.0078125, %v2780_v57 }
 0xf0f   : > { %v2784_v60 = vadd.f32 1e-05, %v2782_v59 }
 0xf11   : > { %6539 = vrsqrt.f32 %v2784_v60 }
 0xf1a   : > { %v6538_v58 = vpop.eup %6537 }
 0xf1b   : > { %v2787_v61 = vmul.f32 %v6538_v58, %v7315_v31 }
 0xf1d   : > { %v2795_v4 = vmul.f32 %v5359_v0, %v2787_v61 }
 0xf1e   : > { %v6540_v2 = vpop.eup %6539 }
 0xf1f   : > { %v2788_v3 = vmul.f32 %v6540_v2, %v7320_v34  ;;  %v2803_v5 = vadd.f32 %v5360_v62, %v2795_v4 }
 0xf21   : > { %v2796_v63 = vmul.f32 %v5359_v0, %v2788_v3 }
 0xf23   : > { %v2804_v9 = vadd.f32 %v5360_v62, %v2796_v63 }
 0xf25   : > { %v2838_v10 = vpack.c.bf16 %v2804_v9, %v2803_v5 }
 0xf27   : > { %3018 = vmatmul.mubr.bf16.vlgmr.msra.gmra.mxu0 %v2838_v10  ;;  %6030 = vmatmul.mubr.bf16.vlgmr.msra.gmra.mxu1 %v2838_v10 }
 0xfe7   : > { %v3019_v13 = vpop.f32.mrf.mxu0  ;;  %v3062_v17 = vpop.f32.mrf.mxu1 }
 0xfe8   : > { %v7405_v18 = vadd.f32 %v3019_v13, %v2845_v16  ;;  %v7428_v36 = vadd.f32 %v3062_v17, %v2853_v30 }
 0xfe9   : > { %v3021_v20 = vpop.f32.mrf.mxu0  ;;  %v6031_v22 = vpop.f32.mrf.mxu1 }
 0xfea   : > { %6037 = vmatprep.mubr.msk.f32.mxu0 %vm1079_vm2, %v7405_v18  ;;  %v7412_v33 = vadd.f32 %v3021_v20, %v2849_v12 }
 0xfeb   : > { %v3023_v6 = vpop.f32.mrf.mxu0  ;;  %v3065_v23 = vpop.f32.mrf.mxu1 }
 0xfec   : > { %v7421_v34 = vadd.f32 %v3065_v23, %v2853_v30  ;;  %v7425_v35 = vadd.f32 %v3023_v6, %v2845_v16 }
 0xfed   : > { %v3025_v27 = vpop.f32.mrf.mxu0  ;;  %v6032_v31 = vpop.f32.mrf.mxu1 }
 0xfee   : > { %v7410_v32 = vadd.f32 %v3025_v27, %v2849_v12 }
 0xff0   : > { %6033 = vmatprep.subr.msk.mxu0 %vm1079_vm2, %v7410_v32 }
 0xff1   : > { %6034 = vmatpush3.xpose.msk.msra.mxu0 %vm1079_vm2, %v7410_v32 }
 0xff2   : > { %6035 = vmatprep.subr.msk.mxu0 %vm1079_vm2, %v7412_v33 }
 0xff5   : > { %6036 = vmatpush3.xpose.msk.msra.mxu0 %vm1079_vm2, %v7412_v33 }
 0xff6   : > { %6040 = vmatprep.subr.mxu0 %v7421_v34 }
 0xff8   : > { %6038 = vmatmul.mubr.msk.f32.vlgmr.msra.gmra.mxu0 %vm1079_vm2, %v7425_v35 }
 0xff9   : > { %6041 = vmatpush3.msra.mxu0 %v7421_v34 }
 0xffa   : > { %6042 = vmatprep.subr.mxu0 %v7428_v36 }
 0xffb   : > { %6043 = vmatpush3.msra.mxu0 %v7428_v36 }
0x10b8   : > { %v6039_v37 = vpop.f32.mrf.mxu0 }
0x10b9   : > { %v3157_v38 = vmul.f32 0.17677669, %v6039_v37 }
0x10ba   : > { %v3147_v39 = vpop.f32.mrf.mxu0 }
0x10bb   : > { %v3156_v40 = vmul.f32 0.17677669, %v3147_v39  ;;  %v3161_v41 = vsel %vm1169_vm3, %v3157_v38, -inf }
0x10bc   : > { %3162 = vmax.xlane.f32.xlu0 %v3161_v41 }
0x10bd   : > { %v3158_v28 = vsel %vm1169_vm3, %v3156_v40, -inf }
0x10be   : > { %3159 = vmax.xlane.f32.xlu1 %v3158_v28 }
0x10cf   : > { %3267 = vrot.lane.b32.xlu1 %v7410_v32, %s7977_s27 }
0x10d3   : > { %3261 = vrot.lane.b32.xlu1 %v7405_v18, %s7977_s27 }
0x1145   : > { %v3163_v42 = vpop.xlane.xlu0 %3162 }
0x1146   : > { %v3165_v44 = vsub.f32 %v3157_v38, %v3163_v42 }
0x1147   : > { %v3160_v45 = vpop.xlane.xlu1 %3159 }
0x1148   : > { %v3168_v46 = vmul.f32 1.442695, %v3165_v44  ;;  %v3164_v47 = vsub.f32 %v3156_v40, %v3160_v45 }
0x114a   : > { %6541 = vpow2.f32 %v3168_v46  ;;  %v3166_v48 = vmul.f32 1.442695, %v3164_v47 }
0x114b   : > { %v3268_v49 = vpop.permute.xlu1 %3267 }
0x114c   : > { %6543 = vpow2.f32 %v3166_v48  ;;  %6047 = vmatprep.subr.msk.mxu0 %vm1079_vm2, %v3268_v49 }
0x114f   : > { %v3262_v26 = vpop.permute.xlu1 %3261 }
0x1157   : > { %v6542_v50 = vpop.eup %6541 }
0x1158   : > { %v3173_v51 = vsel %vm1169_vm3, %v6542_v50, 0.0 }
0x1159   : > { %v6544_v52 = vpop.eup %6543  ;;  %3174 = vadd.xlane.f32.xlu0 %v3173_v51 }
0x115a   : > { %v3170_v53 = vsel %vm1169_vm3, %v6544_v52, 0.0 }
0x115b   : > { %3171 = vadd.xlane.f32.xlu1 %v3170_v53 }
0x116c   : > { %3263 = vrot.lane.b32.xlu1 %v7425_v35, %s7977_s27 }
0x116f   : > { %3265 = vrot.lane.b32.xlu0 %v7412_v33, %s7977_s27 }
0x11e2   : > { %v3175_v55 = vpop.xlane.xlu0 %3174 }
0x11e3   : > { %6545 = vrcp.f32 %v3175_v55 }
0x11e4   : > { %v3172_v56 = vpop.xlane.xlu1 %3171 }
0x11e5   : > { %6547 = vrcp.f32 %v3172_v56 }
0x11e6   : > { %v3266_v59 = vpop.permute.xlu0 %3265 }
0x11e8   : > { %v3264_v60 = vpop.permute.xlu1 %3263 }
0x11f0   : > { %v6546_v14 = vpop.eup %6545 }
0x11f1   : > { %v3179_v57 = vmul.f32 %v6546_v14, %v6542_v50 }
0x11f2   : > { %v6548_v25 = vpop.eup %6547 }
0x11f3   : > { %v3177_v29 = vmul.f32 %v6548_v25, %v6544_v52 }
0x11f5   : > { %6044 = vmatprep.mubr.msk.f32.mxu0 %vm1169_vm3, %v3177_v29 }
0x11f6   : > { %6045 = vmatmul.mubr.msk.f32.vlgmr.msra.gmra.mxu0 %vm1169_vm3, %v3179_v57 }
0x11f7   : > { %6048 = vmatpush3.xpose.msk.msra.mxu0 %vm1079_vm2, %v3268_v49  ;;  %6051 = vmatprep.mubr.msk.f32.mxu0 %vm1079_vm2, %v3262_v26 }
0x11f8   : > { %6049 = vmatprep.subr.msk.mxu0 %vm1079_vm2, %v3266_v59 }
0x11fb   : > { %6050 = vmatpush3.xpose.msk.msra.mxu0 %vm1079_vm2, %v3266_v59 }
0x11fe   : > { %6052 = vmatmul.mubr.msk.f32.vlgmr.msra.gmra.mxu0 %vm1079_vm2, %v3264_v60 }
0x12b6   : > { %v7455_v58 = vpop.f32.mrf.mxu0 }
0x12b8   : > { %v7457_v61 = vpop.f32.mrf.mxu0 }
0x12be   : > { %v6053_v0 = vpop.f32.mrf.mxu0 }
0x12bf   : > { %v3353_v2 = vmul.f32 0.17677669, %v6053_v0 }
0x12c0   : > { %v3343_v3 = vpop.f32.mrf.mxu0 }
0x12c1   : > { %v3352_v4 = vmul.f32 0.17677669, %v3343_v3  ;;  %v3357_v62 = vsel %vm1169_vm3, %v3353_v2, -inf }
0x12c2   : > { %3358 = vmax.xlane.f32.xlu0 %v3357_v62 }
0x12c3   : > { %v3354_v63 = vsel %vm1169_vm3, %v3352_v4, -inf }
0x12c4   : > { %3355 = vmax.xlane.f32.xlu1 %v3354_v63 }
0x12d5   : > { %3380 = vrot.lane.b32.xlu1 %v7421_v34, %s7977_s27 }
0x12d9   : > { %3471 = vrot.lane.b32.xlu1 %v7410_v32, %s7978_s23 }
0x12dd   : > { %3469 = vrot.lane.b32.xlu1 %v7412_v33, %s7978_s23 }
0x12e1   : > { %3673 = vrot.lane.b32.xlu1 %v7410_v32, %s7979_s3 }
0x12e5   : > { %3467 = vrot.lane.b32.xlu1 %v7425_v35, %s7978_s23 }
0x12e9   : > { %3667 = vrot.lane.b32.xlu1 %v7405_v18, %s7979_s3 }
0x134b   : > { %v3359_v5 = vpop.xlane.xlu0 %3358 }
0x134c   : > { %v3361_v9 = vsub.f32 %v3353_v2, %v3359_v5 }
0x134d   : > { %v3356_v10 = vpop.xlane.xlu1 %3355 }
0x134e   : > { %v3364_v11 = vmul.f32 1.442695, %v3361_v9  ;;  %v3360_v16 = vsub.f32 %v3352_v4, %v3356_v10 }
0x1350   : > { %6549 = vpow2.f32 %v3364_v11  ;;  %v3362_v13 = vmul.f32 1.442695, %v3360_v16 }
0x1351   : > { %v3381_v17 = vpop.permute.xlu1 %3380 }
0x1352   : > { %6551 = vpow2.f32 %v3362_v13  ;;  %6054 = vmatprep.subr.mxu0 %v3381_v17 }
0x1353   : > { %6055 = vmatpush3.msra.mxu0 %v3381_v17 }
0x1355   : > { %v3472_v20 = vpop.permute.xlu1 %3471 }
0x1359   : > { %v3470_v22 = vpop.permute.xlu1 %3469 }
0x135d   : > { %v6550_v6 = vpop.eup %6549  ;;  %v3674_v23 = vpop.permute.xlu1 %3673 }
0x135e   : > { %6075 = vmatprep.subr.msk.mxu1 %vm1079_vm2, %v3674_v23  ;;  %v3369_v12 = vsel %vm1169_vm3, %v6550_v6, 0.0 }
0x135f   : > { %v6552_v27 = vpop.eup %6551  ;;  %3370 = vadd.xlane.f32.xlu0 %v3369_v12  ;;  %6076 = vmatpush3.xpose.msk.msra.mxu1 %vm1079_vm2, %v3674_v23 }
0x1360   : > { %v3366_v32 = vsel %vm1169_vm3, %v6552_v27, 0.0 }
0x1361   : > { %v3468_v31 = vpop.permute.xlu1 %3467 }
0x1363   : > { %3367 = vadd.xlane.f32.xlu0 %v3366_v32 }
0x1365   : > { %v3668_v30 = vpop.permute.xlu1 %3667 }
0x1366   : > { %6079 = vmatprep.mubr.msk.f32.mxu1 %vm1079_vm2, %v3668_v30 }
0x1379   : > { %3378 = vrot.lane.b32.xlu0 %v7428_v36, %s7977_s27 }
0x137d   : > { %3465 = vrot.lane.b32.xlu0 %v7405_v18, %s7978_s23 }
0x1381   : > { %3671 = vrot.lane.b32.xlu0 %v7412_v33, %s7979_s3 }
0x1385   : > { %3669 = vrot.lane.b32.xlu0 %v7425_v35, %s7979_s3 }
0x13e8   : > { %v3371_v37 = vpop.xlane.xlu0 %3370 }
0x13e9   : > { %6553 = vrcp.f32 %v3371_v37 }
0x13ec   : > { %v3368_v38 = vpop.xlane.xlu0 %3367 }
0x13ed   : > { %6555 = vrcp.f32 %v3368_v38 }
0x13f0   : > { %v3379_v39 = vpop.permute.xlu0 %3378 }
0x13f1   : > { %6056 = vmatprep.subr.mxu0 %v3379_v39 }
0x13f2   : > { %6057 = vmatpush3.msra.mxu0 %v3379_v39 }
0x13f3   : > { %6061 = vmatprep.subr.msk.mxu0 %vm1079_vm2, %v3472_v20 }
0x13f4   : > { %v3466_v40 = vpop.permute.xlu0 %3465 }
0x13f6   : > { %v6554_v28 = vpop.eup %6553 }
0x13f7   : > { %v3375_v42 = vmul.f32 %v6554_v28, %v6550_v6 }
0x13f8   : > { %v3672_v41 = vpop.permute.xlu0 %3671 }
0x13f9   : > { %6077 = vmatprep.subr.msk.mxu1 %vm1079_vm2, %v3672_v41 }
0x13fa   : > { %v6556_v18 = vpop.eup %6555  ;;  %6078 = vmatpush3.xpose.msk.msra.mxu1 %vm1079_vm2, %v3672_v41 }
0x13fb   : > { %v3373_v33 = vmul.f32 %v6556_v18, %v6552_v27  ;;  %6089 = vmatprep.subr.bf16.mxu1 %v6613_v1 }
0x13fc   : > { %v3670_v35 = vpop.permute.xlu0 %3669 }
0x13fd   : > { %6058 = vmatprep.mubr.msk.f32.mxu0 %vm1169_vm3, %v3373_v33  ;;  %6080 = vmatmul.mubr.msk.f32.vlgmr.msra.gmra.mxu1 %vm1079_vm2, %v3670_v35  ;;  %v6369_v35 = vld [vmem:[%s7931_s8 + $0x78] sm:$0xff]  }
0x13fe   : > { %6059 = vmatmul.mubr.msk.f32.vlgmr.msra.gmra.mxu0 %vm1169_vm3, %v3375_v42  ;;  %6105 = vmatprep.mubr.msk.bf16.mxu1 %vm6614_vm0, %v6613_v1  ;;  %v6370_v42 = vld [vmem:[%s7931_s8 + $0x70] sm:$0xff]  }
0x13ff   : > { %6062 = vmatpush3.xpose.msk.msra.mxu0 %vm1079_vm2, %v3472_v20  ;;  %6065 = vmatprep.mubr.msk.f32.mxu0 %vm1079_vm2, %v3466_v40 }
0x1400   : > { %6063 = vmatprep.subr.msk.mxu0 %vm1079_vm2, %v3470_v22  ;;  %6090 = vmatpush3.bf16.msra.mxu1 %v6369_v35  ;;  %v6392_v35 = vld [vmem:[%s7935_s12 + $0x1a8] ss:$16 sps:$4 sm:$0xff]  }
0x1401   : > { %6091 = vmatprep.subr.bf16.mxu1 %v6613_v1 }
0x1403   : > { %6064 = vmatpush3.xpose.msk.msra.mxu0 %vm1079_vm2, %v3470_v22 }
0x1404   : > { %6092 = vmatpush3.bf16.msra.mxu1 %v6370_v42  ;;  %v6395_v42 = vld [vmem:[%s7935_s12 + $0x180] ss:$16 sps:$4 sm:$0xff]  }
0x1405   : > { %6093 = vmatprep.subr.bf16.mxu1 %v6613_v1 }
0x1406   : > { %6066 = vmatmul.mubr.msk.f32.vlgmr.msra.gmra.mxu0 %vm1079_vm2, %v3468_v31 }
0x14bd   : > { %v6081_v47 = vpop.f32.mrf.mxu1 }
0x14be   : > { %v6060_v44 = vpop.f32.mrf.mxu0  ;;  %v3759_v56 = vmul.f32 0.17677669, %v6081_v47  ;;  %v6374_v47 = vld [vmem:[%s7931_s8 + $0x50] sm:$0xff]  }
0x14bf   : > { %v3749_v48 = vpop.f32.mrf.mxu1 }
0x14c0   : > { %v3456_v45 = vpop.f32.mrf.mxu0  ;;  %v3758_v52 = vmul.f32 0.17677669, %v3749_v48  ;;  %v3763_v25 = vsel %vm1169_vm3, %v3759_v56, -inf  ;;  %v6375_v48 = vld [vmem:[%s7931_s8 + $0x48] sm:$0xff]  }
0x14c1   : > { %v6198_v46 = vpack.i.bf16 %v6060_v44, %v3456_v45  ;;  %v6371_v44 = vld [vmem:[%s7931_s8 + $0x68] sm:$0xff]   ;;  %v6372_v45 = vld [vmem:[%s7931_s8 + $0x60] sm:$0xff]  }
0x14c2   : > { %v3760_v14 = vsel %vm1169_vm3, %v3758_v52, -inf  ;;  %6094 = vmatpush3.bf16.msra.mxu1 %v6371_v44  ;;  %v6397_v44 = vld [vmem:[%s7935_s12 + $0x184] ss:$16 sps:$4 sm:$0xff]  }
0x14c3   : > { %6095 = vmatprep.subr.bf16.mxu1 %v6613_v1 }
0x14c6   : > { %v6067_v49 = vpop.f32.mrf.mxu0  ;;  %6096 = vmatpush3.bf16.msra.mxu1 %v6372_v45  ;;  %v6398_v45 = vld [vmem:[%s7935_s12 + $0x188] ss:$16 sps:$4 sm:$0xff]  }
0x14c7   : > { %v3557_v50 = vmul.f32 0.17677669, %v6067_v49  ;;  %6097 = vmatprep.subr.bf16.mxu1 %v6613_v1  ;;  %v6376_v49 = vld [vmem:[%s7931_s8 + $0x40] sm:$0xff]  }
0x14c8   : > { %v3547_v51 = vpop.f32.mrf.mxu0 }
0x14c9   : > { %v3556_v53 = vmul.f32 0.17677669, %v3547_v51  ;;  %v3561_v26 = vsel %vm1169_vm3, %v3557_v50, -inf }
0x14ca   : > { %3562 = vmax.xlane.f32.xlu0 %v3561_v26 }
0x14cb   : > { %v3558_v55 = vsel %vm1169_vm3, %v3556_v53, -inf }
0x14cc   : > { %3559 = vmax.xlane.f32.xlu1 %v3558_v55 }
0x14ce   : > { %3761 = vmax.xlane.f32.xlu0 %v3760_v14 }
0x14d2   : > { %3764 = vmax.xlane.f32.xlu0 %v3763_v25 }
0x1553   : > { %v3563_v29 = vpop.xlane.xlu0 %3562 }
0x1554   : > { %v3565_v60 = vsub.f32 %v3557_v50, %v3563_v29 }
0x1555   : > { %v3560_v13 = vpop.xlane.xlu1 %3559 }
0x1556   : > { %v3568_v4 = vmul.f32 1.442695, %v3565_v60  ;;  %v3564_v17 = vsub.f32 %v3556_v53, %v3560_v13 }
0x1557   : > { %v3762_v57 = vpop.xlane.xlu0 %3761 }
0x1558   : > { %v3766_v59 = vsub.f32 %v3758_v52, %v3762_v57  ;;  %v3566_v20 = vmul.f32 1.442695, %v3564_v17 }
0x155a   : > { %v3768_v0 = vmul.f32 1.442695, %v3766_v59 }
0x155b   : > { %v3765_v2 = vpop.xlane.xlu0 %3764 }
0x155c   : > { %6557 = vpow2.f32 %v3768_v0  ;;  %v3767_v3 = vsub.f32 %v3759_v56, %v3765_v2 }
0x155e   : > { %v3770_v62 = vmul.f32 1.442695, %v3767_v3 }
0x1560   : > { %6559 = vpow2.f32 %v3770_v62 }
0x1561   : > { %6561 = vpow2.f32 %v3568_v4 }
0x1562   : > { %6563 = vpow2.f32 %v3566_v20 }
0x1569   : > { %v6558_v63 = vpop.eup %6557 }
0x156a   : > { %v3772_v5 = vsel %vm1169_vm3, %v6558_v63, 0.0 }
0x156b   : > { %3773 = vadd.xlane.f32.xlu1 %v3772_v5 }
0x156d   : > { %v6560_v9 = vpop.eup %6559 }
0x156e   : > { %v3775_v10 = vsel %vm1169_vm3, %v6560_v9, 0.0  ;;  %v6562_v11 = vpop.eup %6561 }
0x156f   : > { %3776 = vadd.xlane.f32.xlu0 %v3775_v10  ;;  %v3573_v16 = vsel %vm1169_vm3, %v6562_v11, 0.0  ;;  %v6564_v22 = vpop.eup %6563 }
0x1570   : > { %v3570_v6 = vsel %vm1169_vm3, %v6564_v22, 0.0 }
0x1573   : > { %3574 = vadd.xlane.f32.xlu0 %v3573_v16 }
0x157c   : > { %3582 = vrot.lane.b32.xlu1 %v7421_v34, %s7978_s23 }
0x1580   : > { %3784 = vrot.lane.b32.xlu1 %v7421_v34, %s7979_s3 }
0x1589   : > { %3580 = vrot.lane.b32.xlu0 %v7428_v36, %s7978_s23 }
0x15a4   : > { %3571 = vadd.xlane.f32.xlu1 %v3570_v6 }
0x15b5   : > { %3782 = vrot.lane.b32.xlu1 %v7428_v36, %s7979_s3 }
0x15b9   : > { %6199 = vrot.lane.b32.xlu1 %v6198_v46, %s7979_s3  ;;  %v6373_v46 = vld [vmem:[%s7931_s8 + $0x58] sm:$0xff]  }
0x15ba   : > { %6098 = vmatpush3.bf16.msra.mxu1 %v6373_v46  ;;  %v6400_v46 = vld [vmem:[%s7935_s12 + $0x18c] ss:$16 sps:$4 sm:$0xff]  }
0x15bb   : > { %6099 = vmatprep.subr.bf16.mxu1 %v6613_v1 }
0x15be   : > { %6100 = vmatpush3.bf16.msra.mxu1 %v6374_v47  ;;  %v6403_v47 = vld [vmem:[%s7935_s12 + $0x164] ss:$16 sps:$4 sm:$0xff]  }
0x15bf   : > { %6101 = vmatprep.subr.bf16.mxu1 %v6613_v1 }
0x15c2   : > { %6102 = vmatpush3.bf16.msra.mxu1 %v6375_v48  ;;  %v6406_v48 = vld [vmem:[%s7935_s12 + $0x16c] ss:$16 sps:$4 sm:$0xff]  }
0x15c3   : > { %6103 = vmatprep.subr.bf16.mxu1 %v6613_v1 }
0x15c6   : > { %6104 = vmatpush3.bf16.msra.mxu1 %v6376_v49  ;;  %v6401_v49 = vld [vmem:[%s7935_s12 + $0x160] ss:$16 sps:$4 sm:$0xff]  }
0x15f4   : > { %v3774_v23 = vpop.xlane.xlu1 %3773 }
0x15f5   : > { %6565 = vrcp.f32 %v3774_v23  ;;  %v6380_v23 = vld [vmem:[%s7935_s12 + $0x1e8] ss:$16 sps:$4 sm:$0xff]  }
0x15f8   : > { %v3777_v12 = vpop.xlane.xlu0 %3776  ;;  %v3583_v27 = vpop.permute.xlu1 %3582 }
0x15f9   : > { %6068 = vmatprep.subr.mxu0 %v3583_v27 }
0x15fa   : > { %6069 = vmatpush3.msra.mxu0 %v3583_v27 }
0x15fc   : > { %v3575_v34 = vpop.xlane.xlu0 %3574  ;;  %v3785_v32 = vpop.permute.xlu1 %3784 }
0x15fd   : > { %6567 = vrcp.f32 %v3575_v34 }
0x1600   : > { %v3581_v31 = vpop.permute.xlu0 %3580 }
0x1601   : > { %6070 = vmatprep.subr.mxu0 %v3581_v31 }
0x1602   : > { %6071 = vmatpush3.msra.mxu0 %v3581_v31  ;;  %v6566_v37 = vpop.eup %6565 }
0x1603   : > { %6082 = vmatprep.subr.mxu0 %v3785_v32  ;;  %v3779_v28 = vmul.f32 %v6566_v37, %v6558_v63 }
0x160a   : > { %v6568_v36 = vpop.eup %6567 }
0x160b   : > { %v3579_v40 = vmul.f32 %v6568_v36, %v6562_v11 }
0x162d   : > { %v3572_v30 = vpop.xlane.xlu1 %3571 }
0x162e   : > { %6569 = vrcp.f32 %v3572_v30 }
0x162f   : > { %6571 = vrcp.f32 %v3777_v12 }
0x1631   : > { %v3783_v18 = vpop.permute.xlu1 %3782 }
0x1635   : > { %v6200_v56 = vpop.permute.xlu1 %6199 }
0x1636   : > { %v6202_v25 = vunpack.i.h.bf16 %v6200_v56  ;;  %v6201_v29 = vunpack.i.l.bf16 %v6200_v56  ;;  %v6418_v56 = vld [vmem:[%s7935_s12 + $0x12c] ss:$16 sps:$4 sm:$0xff]  }
0x1638   : > { %v3894_v0 = vsel %vm1079_vm2, %v7455_v58, %v6202_v25  ;;  %v3893_v2 = vsel %vm1079_vm2, %v7457_v61, %v6201_v29  ;;  %v5467_v58 = vld [vmem:[%s7932_s9 + $0x1] ss:$0 sm:$0xff]  ;;  %v6416_v25 = vld [vmem:[%s7935_s12 + $0x128] ss:$16 sps:$4 sm:$0xff]   ;;  %v6421_v29 = vld [vmem:[%s7935_s12 + $0x104] ss:$16 sps:$4 sm:$0xff]  }
0x163b   : > { %v6570_v38 = vpop.eup %6569 }
0x163c   : > { %v3577_v39 = vmul.f32 %v6570_v38, %v6564_v22  ;;  %v6572_v41 = vpop.eup %6571  ;;  %v6385_v38 = vld [vmem:[%s7935_s12 + $0x1c4] ss:$16 sps:$4 sm:$0xff]  }
0x163d   : > { %v3781_v33 = vmul.f32 %v6572_v41, %v6560_v9  ;;  %v6386_v41 = vld [vmem:[%s7935_s12 + $0x1c8] ss:$16 sps:$4 sm:$0xff]  }
0x163e   : > { %6072 = vmatprep.mubr.msk.f32.mxu0 %vm1169_vm3, %v3577_v39  ;;  %v6388_v39 = vld [vmem:[%s7935_s12 + $0x1cc] ss:$16 sps:$4 sm:$0xff]  }
0x163f   : > { %6073 = vmatmul.mubr.msk.f32.vlgmr.msra.gmra.mxu0 %vm1169_vm3, %v3579_v40  ;;  %v6383_v40 = vld [vmem:[%s7935_s12 + $0x1c0] ss:$16 sps:$4 sm:$0xff]  }
0x1640   : > { %6083 = vmatpush3.msra.mxu0 %v3785_v32  ;;  %6086 = vmatprep.mubr.msk.f32.mxu0 %vm1169_vm3, %v3779_v28  ;;  %v6391_v28 = vld [vmem:[%s7935_s12 + $0x1a4] ss:$16 sps:$4 sm:$0xff]  }
0x1641   : > { %6084 = vmatprep.subr.mxu0 %v3783_v18 }
0x1642   : > { %6085 = vmatpush3.msra.mxu0 %v3783_v18  ;;  %v6394_v18 = vld [vmem:[%s7935_s12 + $0x1ac] ss:$16 sps:$4 sm:$0xff]  }
0x1643   : > { %6087 = vmatmul.mubr.msk.f32.vlgmr.msra.gmra.mxu0 %vm1169_vm3, %v3781_v33  ;;  %v6389_v33 = vld [vmem:[%s7935_s12 + $0x1a0] ss:$16 sps:$4 sm:$0xff]  }
0x1644   : > { %4309 = vmatprep.mubr.bf16.mxu0 %v6615_v43 }
0x16ff   : > { %v6074_v50 = vpop.f32.mrf.mxu0 }
0x1701   : > { %v3658_v51 = vpop.f32.mrf.mxu0 }
0x1702   : > { %v6203_v52 = vpack.i.bf16 %v6074_v50, %v3658_v51  ;;  %v6404_v50 = vld [vmem:[%s7935_s12 + $0x168] ss:$16 sps:$4 sm:$0xff]   ;;  %v6409_v51 = vld [vmem:[%s7935_s12 + $0x144] ss:$16 sps:$4 sm:$0xff]  }
0x1703   : > { %v6088_v53 = vpop.f32.mrf.mxu0 }
0x1704   : > { %6204 = vrot.lane.b32.xlu0 %v6203_v52, %s7978_s23  ;;  %v6412_v52 = vld [vmem:[%s7935_s12 + $0x14c] ss:$16 sps:$4 sm:$0xff]  }
0x1705   : > { %v3860_v26 = vpop.f32.mrf.mxu0 }
0x1706   : > { %v6208_v55 = vpack.i.bf16 %v6088_v53, %v3860_v26  ;;  %v6407_v53 = vld [vmem:[%s7935_s12 + $0x140] ss:$16 sps:$4 sm:$0xff]   ;;  %v6410_v26 = vld [vmem:[%s7935_s12 + $0x148] ss:$16 sps:$4 sm:$0xff]  }
0x1708   : > { %6209 = vrot.lane.b32.xlu1 %v6208_v55, %s7977_s27  ;;  %v6415_v55 = vld [vmem:[%s7935_s12 + $0x124] ss:$16 sps:$4 sm:$0xff]  }
0x1776   : > { %v6205_v14 = vpop.permute.xlu0 %6204 }
0x1777   : > { %v6207_v57 = vunpack.i.h.bf16 %v6205_v14  ;;  %v6206_v59 = vunpack.i.l.bf16 %v6205_v14  ;;  %v6413_v14 = vld [vmem:[%s7935_s12 + $0x120] ss:$16 sps:$4 sm:$0xff]  }
0x1779   : > { %v3895_v62 = vsel %vm727_vm1, %v3893_v2, %v6206_v59  ;;  %v3896_v63 = vsel %vm727_vm1, %v3894_v0, %v6207_v57  ;;  %v6424_v57 = vld [vmem:[%s7935_s12 + $0x10c] ss:$16 sps:$4 sm:$0xff]   ;;  %v6419_v59 = vld [vmem:[%s7935_s12 + $0x100] ss:$16 sps:$4 sm:$0xff]  }
0x177a   : > { %v6210_v60 = vpop.permute.xlu1 %6209 }
0x177b   : > { %v6212_v3 = vunpack.i.h.bf16 %v6210_v60  ;;  %v6211_v4 = vunpack.i.l.bf16 %v6210_v60  ;;  %v6422_v60 = vld [vmem:[%s7935_s12 + $0x108] ss:$16 sps:$4 sm:$0xff]  }
0x177d   : > { %v3897_v5 = vsel %vm1909_vm4, %v3895_v62, %v6211_v4  ;;  %v3898_v9 = vsel %vm1909_vm4, %v3896_v63, %v6212_v3 }
0x177e   : > { %v3916_v10 = vpack.c.bf16 %v3898_v9, %v3897_v5 }
0x1780   : > { %6106 = vmatmul.mubr.bf16.vlgmr.msra.gmra.mxu1 %v3916_v10  ;;  %v5470_v10 = vld [vmem:[%s7933_s10 + $0x1] ss:$0 sm:$0xff] }
0x1781   : > { %4352 = vmatprep.mubr.bf16.mxu1 %v6615_v43  ;;  %v6377_v43 = vld [vmem:[%s7935_s12 + $0x1e0] ss:$16 sps:$4 sm:$0xff]  }
0x1840   : > { %v3999_v11 = vpop.f32.mrf.mxu1 }
0x1841   : > { %v4006_v61 = vadd.f32 %v3999_v11, %v7297_v19  ;;  %v6379_v19 = vld [vmem:[%s7935_s12 + $0x1e4] ss:$16 sps:$4 sm:$0xff]  }
0x1842   : > { %v6107_v16 = vpop.f32.mrf.mxu1  ;;  %4277 = vmatprep.subr.bf16.mxu0 %v6379_v19  ;;  %v6425_v19 = vld [vmem:[%s7937_s14 + $0x178] sm:$0xff]  }
0x1843   : > { %v7568_v13 = vadd.f32 %v5467_v58, %v4006_v61  ;;  %4278 = vmatpush1.bf16.msra.mxu0 %v6377_v43  ;;  %v5471_v16 = vld [vmem:[%s7934_s11 + $0x1] ss:$0 sm:$0xff] }
0x1844   : > { %v4002_v17 = vpop.f32.mrf.mxu1  ;;  %4279 = vmatprep.subr.bf16.mxu0 %v6385_v38  ;;  %v6436_v38 = vld [vmem:[%s7937_s14 + $0x1a8] sm:$0xff]  }
0x1845   : > { %v4007_v20 = vadd.f32 %v4002_v17, %v7301_v21  ;;  %4022 = vadd.xlane.f32.xlu0 %v7568_v13  ;;  %v6382_v21 = vld [vmem:[%s7935_s12 + $0x1ec] ss:$16 sps:$4 sm:$0xff]  }
0x1846   : > { %v6108_v22 = vpop.f32.mrf.mxu1  ;;  %4320 = vmatprep.subr.bf16.mxu1 %v6382_v21  ;;  %v6427_v21 = vld [vmem:[%s7937_s14 + $0x138] sm:$0xff]  }
0x1847   : > { %v7572_v6 = vadd.f32 %v5467_v58, %v4007_v20  ;;  %4321 = vmatpush1.bf16.msra.mxu1 %v6380_v23  ;;  %4280 = vmatpush1.bf16.msra.mxu0 %v6383_v40  ;;  %v6426_v23 = vld [vmem:[%s7937_s14 + $0x1f8] sm:$0xff]   ;;  %v6438_v40 = vld [vmem:[%s7937_s14 + $0x1e0] sm:$0xff]  }
0x1848   : > { %4322 = vmatprep.subr.bf16.mxu1 %v6388_v39  ;;  %4281 = vmatprep.subr.bf16.mxu0 %v6391_v28  ;;  %v6437_v39 = vld [vmem:[%s7937_s14 + $0x160] sm:$0xff]  }
0x1849   : > { %4024 = vadd.xlane.f32.xlu1 %v7572_v6  ;;  %v6440_v28 = vld [vmem:[%s7937_s14 + $0x1a0] sm:$0xff]  }
0x184b   : > { %4323 = vmatpush1.bf16.msra.mxu1 %v6386_v41  ;;  %4282 = vmatpush1.bf16.msra.mxu0 %v6389_v33  ;;  %v6439_v41 = vld [vmem:[%s7937_s14 + $0x120] sm:$0xff]   ;;  %v6442_v33 = vld [vmem:[%s7937_s14 + $0x1d8] sm:$0xff]  }
0x184c   : > { %4324 = vmatprep.subr.bf16.mxu1 %v6394_v18  ;;  %4283 = vmatprep.subr.bf16.mxu0 %v6397_v44  ;;  %v6441_v18 = vld [vmem:[%s7937_s14 + $0x158] sm:$0xff]   ;;  %v6445_v44 = vld [vmem:[%s7937_s14 + $0x150] sm:$0xff]  }
0x184f   : > { %4325 = vmatpush1.bf16.msra.mxu1 %v6392_v35  ;;  %4284 = vmatpush1.bf16.msra.mxu0 %v6395_v42  ;;  %v6443_v35 = vld [vmem:[%s7937_s14 + $0x118] sm:$0xff]  }
0x1850   : > { %4326 = vmatprep.subr.bf16.mxu1 %v6400_v46  ;;  %4285 = vmatprep.subr.bf16.mxu0 %v6403_v47  ;;  %v6444_v42 = vld [vmem:[%s7937_s14 + $0x198] sm:$0xff]   ;;  %v6447_v46 = vld [vmem:[%s7937_s14 + $0x110] sm:$0xff]  }
0x1851   : > { %v6448_v47 = vld [vmem:[%s7937_s14 + $0x190] sm:$0xff]  }
0x1853   : > { %4327 = vmatpush1.bf16.msra.mxu1 %v6398_v45  ;;  %4286 = vmatpush1.bf16.msra.mxu0 %v6401_v49  ;;  %v6446_v45 = vld [vmem:[%s7937_s14 + $0x1d0] sm:$0xff]   ;;  %v6450_v49 = vld [vmem:[%s7937_s14 + $0x1c8] sm:$0xff]  }
0x1854   : > { %4328 = vmatprep.subr.bf16.mxu1 %v6406_v48  ;;  %4287 = vmatprep.subr.bf16.mxu0 %v6409_v51  ;;  %v6449_v48 = vld [vmem:[%s7937_s14 + $0x148] sm:$0xff]  }
0x1855   : > { %v6452_v51 = vld [vmem:[%s7937_s14 + $0x188] sm:$0xff]  }
0x1857   : > { %4329 = vmatpush1.bf16.msra.mxu1 %v6404_v50  ;;  %4288 = vmatpush1.bf16.msra.mxu0 %v6407_v53  ;;  %v6451_v50 = vld [vmem:[%s7937_s14 + $0x108] sm:$0xff]   ;;  %v6454_v53 = vld [vmem:[%s7937_s14 + $0x1c0] sm:$0xff]  }
0x1858   : > { %4330 = vmatprep.subr.bf16.mxu1 %v6412_v52  ;;  %4289 = vmatprep.subr.bf16.mxu0 %v6415_v55  ;;  %v6453_v52 = vld [vmem:[%s7937_s14 + $0x140] sm:$0xff]  }
0x1859   : > { %v6456_v55 = vld [vmem:[%s7937_s14 + $0x180] sm:$0xff]  }
0x185b   : > { %4331 = vmatpush1.bf16.msra.mxu1 %v6410_v26  ;;  %4290 = vmatpush1.bf16.msra.mxu0 %v6413_v14  ;;  %v6455_v26 = vld [vmem:[%s7937_s14 + $0x100] sm:$0xff]  }
0x185c   : > { %4332 = vmatprep.subr.bf16.mxu1 %v6418_v56  ;;  %4291 = vmatprep.subr.bf16.mxu0 %v6421_v29  ;;  %v5504_v56 = vld [vmem:[%s7936_s13 + $0x4] sm:$0xf] }
0x185d   : > { %v4100_v14 = vrot.slane %v5504_v56, %v6888_v8 }
0x185f   : > { %4333 = vmatpush1.bf16.msra.mxu1 %v6416_v25  ;;  %4292 = vmatpush1.bf16.msra.mxu0 %v6419_v59  ;;  %v4108_v25 = vrot.slane %v5504_v56, %v6903_v24  ;;  %v4104_v59 = vrot.slane %v5504_v56, %v6897_v15 }
0x1860   : > { %4334 = vmatprep.subr.bf16.mxu1 %v6424_v57  ;;  %5834 = vmatprep.subr.bf16.mxu0 %v6425_v19 }
0x1863   : > { %4335 = vmatpush1.bf16.msra.mxu1 %v6422_v60  ;;  %v4112_v60 = vrot.slane %v5504_v56, %v2118_v54 }
0x1864   : > { %5856 = vmatprep.subr.bf16.mxu1 %v6426_v23 }
0x18ce   : > { %v4023_v12 = vpop.xlane.xlu0 %4022 }
0x18cf   : > { %v4026_v27 = vmul.f32 0.0078125, %v4023_v12  ;;  %v6428_v12 = vld [vmem:[%s7937_s14 + $0x1b8] sm:$0xff]  }
0x18d1   : > { %v7588_v34 = vsub.f32 %v7568_v13, %v4026_v27  ;;  %v6429_v27 = vld [vmem:[%s7937_s14 + $0x170] sm:$0xff]  }
0x18d2   : > { %v4025_v31 = vpop.xlane.xlu1 %4024 }
0x18d3   : > { %v4027_v32 = vmul.f32 0.0078125, %v4025_v31  ;;  %v4030_v30 = vmul.f32 %v7588_v34, %v7588_v34  ;;  %v6431_v31 = vld [vmem:[%s7937_s14 + $0x130] sm:$0xff]  }
0x18d5   : > { %v7593_v37 = vsub.f32 %v7572_v6, %v4027_v32  ;;  %4032 = vadd.xlane.f32.xlu0 %v4030_v30  ;;  %v6432_v32 = vld [vmem:[%s7937_s14 + $0x1b0] sm:$0xff]   ;;  %v6433_v30 = vld [vmem:[%s7937_s14 + $0x168] sm:$0xff]  }
0x18d7   : > { %v4031_v36 = vmul.f32 %v7593_v37, %v7593_v37 }
0x18d9   : > { %4034 = vadd.xlane.f32.xlu0 %v4031_v36  ;;  %v6435_v36 = vld [vmem:[%s7937_s14 + $0x128] sm:$0xff]  }
0x195e   : > { %v4033_v0 = vpop.xlane.xlu0 %4032 }
0x195f   : > { %v4036_v2 = vmul.f32 0.0078125, %v4033_v0 }
0x1961   : > { %v4038_v3 = vadd.f32 1e-05, %v4036_v2 }
0x1962   : > { %v4035_v4 = vpop.xlane.xlu0 %4034 }
0x1963   : > { %6573 = vrsqrt.f32 %v4038_v3  ;;  %v4037_v62 = vmul.f32 0.0078125, %v4035_v4 }
0x1965   : > { %v4039_v63 = vadd.f32 1e-05, %v4037_v62 }
0x1967   : > { %6575 = vrsqrt.f32 %v4039_v63 }
0x1970   : > { %v6574_v5 = vpop.eup %6573 }
0x1971   : > { %v4042_v9 = vmul.f32 %v6574_v5, %v7588_v34  ;;  %v6430_v34 = vld [vmem:[%s7937_s14 + $0x1f0] sm:$0xff]  }
0x1973   : > { %v4050_v61 = vmul.f32 %v5470_v10, %v4042_v9 }
0x1974   : > { %v6576_v11 = vpop.eup %6575 }
0x1975   : > { %v4043_v58 = vmul.f32 %v6576_v11, %v7593_v37  ;;  %v4058_v20 = vadd.f32 %v5471_v16, %v4050_v61  ;;  %v6434_v37 = vld [vmem:[%s7937_s14 + $0x1e8] sm:$0xff]  }
0x1977   : > { %v4051_v17 = vmul.f32 %v5470_v10, %v4043_v58 }
0x1979   : > { %v4059_v22 = vadd.f32 %v5471_v16, %v4051_v17 }
0x197b   : > { %v4093_v43 = vpack.c.bf16 %v4059_v22, %v4058_v20 }
0x197d   : > { %4310 = vmatmul.mubr.bf16.vlgmr.msra.gmra.mxu0 %v4093_v43  ;;  %4353 = vmatmul.mubr.bf16.vlgmr.msra.gmra.mxu1 %v4093_v43 }
0x197e   : > { %5835 = vmatpush3.bf16.msra.mxu0 %v6427_v21  ;;  %5857 = vmatpush3.bf16.msra.mxu1 %v6428_v12 }
0x197f   : > { %5836 = vmatprep.subr.bf16.mxu0 %v6429_v27  ;;  %5858 = vmatprep.subr.bf16.mxu1 %v6430_v34 }
0x1982   : > { %5837 = vmatpush3.bf16.msra.mxu0 %v6431_v31  ;;  %5859 = vmatpush3.bf16.msra.mxu1 %v6432_v32 }
0x1983   : > { %5838 = vmatprep.subr.bf16.mxu0 %v6433_v30  ;;  %5860 = vmatprep.subr.bf16.mxu1 %v6434_v37 }
0x1986   : > { %5839 = vmatpush3.bf16.msra.mxu0 %v6435_v36  ;;  %5861 = vmatpush3.bf16.msra.mxu1 %v6436_v38 }
0x1987   : > { %5840 = vmatprep.subr.bf16.mxu0 %v6437_v39  ;;  %5862 = vmatprep.subr.bf16.mxu1 %v6438_v40 }
0x198a   : > { %5841 = vmatpush3.bf16.msra.mxu0 %v6439_v41  ;;  %5863 = vmatpush3.bf16.msra.mxu1 %v6440_v28 }
0x198b   : > { %5842 = vmatprep.subr.bf16.mxu0 %v6441_v18  ;;  %5864 = vmatprep.subr.bf16.mxu1 %v6442_v33 }
0x198e   : > { %5843 = vmatpush3.bf16.msra.mxu0 %v6443_v35  ;;  %5865 = vmatpush3.bf16.msra.mxu1 %v6444_v42 }
0x198f   : > { %5844 = vmatprep.subr.bf16.mxu0 %v6445_v44  ;;  %5866 = vmatprep.subr.bf16.mxu1 %v6446_v45 }
0x1992   : > { %5845 = vmatpush3.bf16.msra.mxu0 %v6447_v46  ;;  %5867 = vmatpush3.bf16.msra.mxu1 %v6448_v47 }
0x1993   : > { %5846 = vmatprep.subr.bf16.mxu0 %v6449_v48  ;;  %5868 = vmatprep.subr.bf16.mxu1 %v6450_v49 }
0x1996   : > { %5847 = vmatpush3.bf16.msra.mxu0 %v6451_v50  ;;  %5869 = vmatpush3.bf16.msra.mxu1 %v6452_v51 }
0x1997   : > { %5848 = vmatprep.subr.bf16.mxu0 %v6453_v52  ;;  %5870 = vmatprep.subr.bf16.mxu1 %v6454_v53 }
0x199a   : > { %5849 = vmatpush3.bf16.msra.mxu0 %v6455_v26  ;;  %5871 = vmatpush3.bf16.msra.mxu1 %v6456_v55 }
0x199b   : > { %6109 = vmatprep.subr.bf16.mxu0 %v6613_v1  ;;  %6129 = vmatprep.subr.bf16.mxu1 %v6613_v1 }
0x1a3d   : > { %v4311_v29 = vpop.f32.mrf.mxu0  ;;  %v4354_v57 = vpop.f32.mrf.mxu1 }
0x1a3e   : > { %v4312_v0 = vadd.f32 %v4311_v29, %v4100_v14  ;;  %v4355_v2 = vadd.f32 %v4354_v57, %v4108_v25 }
0x1a3f   : > { %v4313_v3 = vpop.f32.mrf.mxu0  ;;  %v4356_v4 = vpop.f32.mrf.mxu1 }
0x1a40   : > { %v4371_v62 = vmul.f32 0.70710677, %v4312_v0  ;;  %v4373_v63 = vmul.f32 0.70710677, %v4355_v2  ;;  %v4314_v5 = vadd.f32 %v4313_v3, %v4104_v59  ;;  %v4357_v9 = vadd.f32 %v4356_v4, %v4112_v60 }
0x1a41   : > { %v4315_v10 = vpop.f32.mrf.mxu0  ;;  %v4358_v11 = vpop.f32.mrf.mxu1  ;;  %v4363_v31 = vmul.f32 0.5, %v4312_v0  ;;  %v4365_v48 = vmul.f32 0.5, %v4355_v2 }
0x1a42   : > { %v4316_v8 = vadd.f32 %v4315_v10, %v4100_v14  ;;  %v4359_v58 = vadd.f32 %v4358_v11, %v4108_v25  ;;  %6577 = verf.f32 %v4371_v62  ;;  %v4372_v24 = vmul.f32 0.70710677, %v4314_v5  ;;  %v5634_v11 = vld [vmem:[%s7938_s15 + $0x1] ss:$0 sm:$0xff] }
0x1a43   : > { %v4317_v61 = vpop.f32.mrf.mxu0  ;;  %v4360_v16 = vpop.f32.mrf.mxu1  ;;  %6579 = verf.f32 %v4373_v63  ;;  %v4374_v15 = vmul.f32 0.70710677, %v4357_v9  ;;  %v4364_v32 = vmul.f32 0.5, %v4314_v5  ;;  %v4366_v44 = vmul.f32 0.5, %v4357_v9 }
0x1a44   : > { %v4375_v7 = vmul.f32 0.70710677, %v4316_v8  ;;  %6581 = verf.f32 %v4372_v24  ;;  %v4377_v54 = vmul.f32 0.70710677, %v4359_v58  ;;  %v4318_v17 = vadd.f32 %v4317_v61, %v4104_v59 }
0x1a45   : > { %v4361_v20 = vadd.f32 %v4360_v16, %v4112_v60  ;;  %6583 = verf.f32 %v4374_v15  ;;  %v4367_v40 = vmul.f32 0.5, %v4316_v8  ;;  %v4369_v33 = vmul.f32 0.5, %v4359_v58 }
0x1a46   : > { %6585 = verf.f32 %v4375_v7  ;;  %v4376_v22 = vmul.f32 0.70710677, %v4318_v17  ;;  %v4368_v35 = vmul.f32 0.5, %v4318_v17  ;;  %v6457_v7 = vld [vmem:[%s7941_s18 + $0x38] sm:$0xff]  }
0x1a47   : > { %6587 = verf.f32 %v4377_v54  ;;  %v4378_v43 = vmul.f32 0.70710677, %v4361_v20  ;;  %v4370_v46 = vmul.f32 0.5, %v4361_v20 }
0x1a48   : > { %6589 = verf.f32 %v4376_v22 }
0x1a49   : > { %6591 = verf.f32 %v4378_v43 }
0x1a4f   : > { %v6578_v19 = vpop.eup %6577 }
0x1a50   : > { %v6580_v23 = vpop.eup %6579  ;;  %v4387_v38 = vadd.f32 1.0, %v6578_v19 }
0x1a51   : > { %v6582_v21 = vpop.eup %6581  ;;  %v4389_v18 = vadd.f32 1.0, %v6580_v23 }
0x1a52   : > { %v6584_v12 = vpop.eup %6583  ;;  %v4388_v30 = vadd.f32 1.0, %v6582_v21  ;;  %v4395_v52 = vmul.f32 %v4387_v38, %v4363_v31  ;;  %v6459_v21 = vld [vmem:[%s7941_s18 + $0x28] sm:$0xff]  }
0x1a53   : > { %v6586_v27 = vpop.eup %6585  ;;  %v4390_v39 = vadd.f32 1.0, %v6584_v12  ;;  %v4397_v55 = vmul.f32 %v4389_v18, %v4365_v48  ;;  %v6460_v12 = vld [vmem:[%s7941_s18 + $0x20] sm:$0xff]   ;;  %v6463_v31 = vld [vmem:[%s7941_s18 + $0x8] sm:$0xff]  }
0x1a54   : > { %v6588_v34 = vpop.eup %6587  ;;  %v4391_v37 = vadd.f32 1.0, %v6586_v27  ;;  %v4396_v49 = vmul.f32 %v4388_v30, %v4364_v32  ;;  %v6461_v27 = vld [vmem:[%s7941_s18 + $0x18] sm:$0xff]   ;;  %v6464_v32 = vld [vmem:[%s7941_s18] sm:$0xff]  }
0x1a55   : > { %v6590_v36 = vpop.eup %6589  ;;  %v4393_v41 = vadd.f32 1.0, %v6588_v34  ;;  %v4398_v53 = vmul.f32 %v4390_v39, %v4366_v44  ;;  %v6462_v34 = vld [vmem:[%s7941_s18 + $0x10] sm:$0xff]   ;;  %v6465_v30 = vld [vmem:[%s7941_s18 + $0x78] sm:$0xff]  }
0x1a56   : > { %v6592_v28 = vpop.eup %6591  ;;  %v4392_v42 = vadd.f32 1.0, %v6590_v36  ;;  %v4399_v45 = vmul.f32 %v4391_v37, %v4367_v40 }
0x1a57   : > { %v4394_v47 = vadd.f32 1.0, %v6592_v28  ;;  %v4401_v50 = vmul.f32 %v4393_v41, %v4369_v33  ;;  %v5635_v33 = vld [vmem:[%s7939_s16] ss:$0 sm:$0xff] }
0x1a58   : > { %v4400_v51 = vmul.f32 %v4392_v42, %v4368_v35  ;;  %v4468_v14 = vpack.c.bf16 %v4399_v45, %v4395_v52  ;;  %v5636_v45 = vld [vmem:[%s7940_s17] ss:$0 sm:$0xff] }
0x1a59   : > { %v4402_v26 = vmul.f32 %v4394_v47, %v4370_v46  ;;  %v4470_v29 = vpack.c.bf16 %v4401_v50, %v4397_v55  ;;  %v6466_v50 = vld [vmem:[%s7941_s18 + $0x70] sm:$0xff]   ;;  %v6468_v52 = vld [vmem:[%s7941_s18 + $0x60] sm:$0xff]   ;;  %v6471_v55 = vld [vmem:[%s7941_s18 + $0x48] sm:$0xff]  }
0x1a5a   : > { %v4469_v56 = vpack.c.bf16 %v4400_v51, %v4396_v49  ;;  %v6467_v51 = vld [vmem:[%s7941_s18 + $0x68] sm:$0xff]  }
0x1a5b   : > { %v4471_v25 = vpack.c.bf16 %v4402_v26, %v4398_v53  ;;  %v6469_v53 = vld [vmem:[%s7941_s18 + $0x58] sm:$0xff]   ;;  %v6470_v26 = vld [vmem:[%s7941_s18 + $0x50] sm:$0xff]  }
0x1a5c   : > { %4696 = vmatprep.mubr.bf16.mxu0 %v4469_v56  ;;  %v6472_v56 = vld [vmem:[%s7941_s18 + $0x40] sm:$0xff]  }
0x1a5d   : > { %4737 = vmatprep.mubr.bf16.mxu1 %v4471_v25  ;;  %4697 = vmatmul.mubr.bf16.vlgmr.msra.gmra.mxu0 %v4468_v14  ;;  %v6473_v14 = vld [vmem:[%s7943_s20 + $0x38] sm:$0xff]   ;;  %v5637_v25 = vld [vmem:[%s7942_s19] ss:$0 sm:$0xff] }
0x1a5e   : > { %4738 = vmatmul.mubr.bf16.vlgmr.msra.gmra.mxu1 %v4470_v29  ;;  %6125 = vmatprep.mubr.msk.bf16.mxu0 %vm6614_vm0, %v6613_v1 }
0x1a5f   : > { %6145 = vmatprep.mubr.msk.bf16.mxu1 %vm6614_vm0, %v6613_v1  ;;  %6110 = vmatpush3.bf16.msra.mxu0 %v6457_v7  ;;  %v6477_v7 = vld [vmem:[%s7943_s20 + $0x18] sm:$0xff]  }
0x1a60   : > { %6111 = vmatprep.subr.bf16.mxu0 %v6613_v1  ;;  %6130 = vmatpush3.bf16.msra.mxu1 %v6465_v30 }
0x1a61   : > { %6131 = vmatprep.subr.bf16.mxu1 %v6613_v1 }
0x1a64   : > { %6132 = vmatpush3.bf16.msra.mxu1 %v6466_v50 }
0x1a65   : > { %6133 = vmatprep.subr.bf16.mxu1 %v6613_v1 }
0x1a68   : > { %6134 = vmatpush3.bf16.msra.mxu1 %v6467_v51 }
0x1a69   : > { %6135 = vmatprep.subr.bf16.mxu1 %v6613_v1 }
0x1a6c   : > { %6136 = vmatpush3.bf16.msra.mxu1 %v6468_v52 }
0x1a6d   : > { %6137 = vmatprep.subr.bf16.mxu1 %v6613_v1 }
0x1a70   : > { %6138 = vmatpush3.bf16.msra.mxu1 %v6469_v53 }
0x1a71   : > { %6139 = vmatprep.subr.bf16.mxu1 %v6613_v1 }
0x1a74   : > { %6140 = vmatpush3.bf16.msra.mxu1 %v6470_v26 }
0x1a75   : > { %6141 = vmatprep.subr.bf16.mxu1 %v6613_v1 }
0x1a78   : > { %6142 = vmatpush3.bf16.msra.mxu1 %v6471_v55 }
0x1a79   : > { %6143 = vmatprep.subr.bf16.mxu1 %v6613_v1 }
0x1a7c   : > { %6144 = vmatpush3.bf16.msra.mxu1 %v6472_v56 }
0x1b1d   : > { %v5850_v57 = vpop.f32.mrf.mxu0 }
0x1b1e   : > { %v5872_v59 = vpop.f32.mrf.mxu1 }
0x1b1f   : > { %v5851_v60 = vpop.f32.mrf.mxu0 }
0x1b20   : > { %v5852_v0 = vadd.f32 %v5851_v60, %v5850_v57  ;;  %v5873_v2 = vpop.f32.mrf.mxu1 }
0x1b21   : > { %v5874_v3 = vadd.f32 %v5873_v2, %v5872_v59  ;;  %v5853_v4 = vpop.f32.mrf.mxu0 }
0x1b22   : > { %v5875_v62 = vpop.f32.mrf.mxu1 }
0x1b23   : > { %v4740_v63 = vadd.f32 %v5874_v3, %v5852_v0  ;;  %v5854_v5 = vpop.f32.mrf.mxu0 }
0x1b24   : > { %v5855_v9 = vadd.f32 %v5854_v5, %v5853_v4  ;;  %v5876_v10 = vpop.f32.mrf.mxu1 }
0x1b25   : > { %v5877_v8 = vadd.f32 %v5876_v10, %v5875_v62  ;;  %v4746_v58 = vadd.f32 %v4740_v63, %v7568_v13 }
0x1b27   : > { %v4743_v24 = vadd.f32 %v5877_v8, %v5855_v9  ;;  %v4756_v61 = vadd.f32 %v5634_v11, %v4746_v58 }
0x1b29   : > { %4760 = vadd.xlane.f32.xlu0 %v4756_v61  ;;  %v4747_v16 = vadd.f32 %v4743_v24, %v7572_v6  ;;  %v6458_v6 = vld [vmem:[%s7941_s18 + $0x30] sm:$0xff]  }
0x1b2a   : > { %6112 = vmatpush3.bf16.msra.mxu0 %v6458_v6 }
0x1b2b   : > { %v4757_v15 = vadd.f32 %v5634_v11, %v4747_v16  ;;  %6113 = vmatprep.subr.bf16.mxu0 %v6613_v1  ;;  %v6475_v16 = vld [vmem:[%s7943_s20 + $0x28] sm:$0xff]  }
0x1b2d   : > { %4762 = vadd.xlane.f32.xlu1 %v4757_v15 }
0x1b2e   : > { %6114 = vmatpush3.bf16.msra.mxu0 %v6459_v21 }
0x1b2f   : > { %6115 = vmatprep.subr.bf16.mxu0 %v6613_v1 }
0x1b32   : > { %6116 = vmatpush3.bf16.msra.mxu0 %v6460_v12 }
0x1b33   : > { %6117 = vmatprep.subr.bf16.mxu0 %v6613_v1 }
0x1b36   : > { %6118 = vmatpush3.bf16.msra.mxu0 %v6461_v27 }
0x1b37   : > { %6119 = vmatprep.subr.bf16.mxu0 %v6613_v1 }
0x1b3a   : > { %6120 = vmatpush3.bf16.msra.mxu0 %v6462_v34 }
0x1b3b   : > { %6121 = vmatprep.subr.bf16.mxu0 %v6613_v1 }
0x1b3e   : > { %6122 = vmatpush3.bf16.msra.mxu0 %v6463_v31 }
0x1b3f   : > { %6123 = vmatprep.subr.bf16.mxu0 %v6613_v1 }
0x1b42   : > { %6124 = vmatpush3.bf16.msra.mxu0 %v6464_v32 }
0x1b43   : > { %6149 = vmatprep.subr.bf16.mxu0 %v6613_v1 }
0x1bb2   : > { %v4761_v54 = vpop.xlane.xlu0 %4760 }
0x1bb3   : > { %v4764_v17 = vmul.f32 0.0078125, %v4761_v54  ;;  %v6478_v54 = vld [vmem:[%s7943_s20 + $0x10] sm:$0xff]  }
0x1bb5   : > { %v4766_v20 = vsub.f32 %v4756_v61, %v4764_v17  ;;  %v6474_v61 = vld [vmem:[%s7943_s20 + $0x30] sm:$0xff]   ;;  %v6479_v17 = vld [vmem:[%s7943_s20 + $0x8] sm:$0xff]  }
0x1bb6   : > { %v4763_v22 = vpop.xlane.xlu1 %4762 }
0x1bb7   : > { %v4765_v43 = vmul.f32 0.0078125, %v4763_v22  ;;  %v4768_v13 = vmul.f32 %v4766_v20, %v4766_v20  ;;  %v5663_v22 = vld [vmem:[%s7942_s19 + $0x1] ss:$0 sm:$0xff] }
0x1bb9   : > { %v4767_v19 = vsub.f32 %v4757_v15, %v4765_v43  ;;  %4770 = vadd.xlane.f32.xlu0 %v4768_v13  ;;  %v6476_v15 = vld [vmem:[%s7943_s20 + $0x20] sm:$0xff]  }
0x1bbb   : > { %v4769_v23 = vmul.f32 %v4767_v19, %v4767_v19 }
0x1bbd   : > { %4772 = vadd.xlane.f32.xlu1 %v4769_v23 }
0x1c42   : > { %v4771_v37 = vpop.xlane.xlu0 %4770 }
0x1c43   : > { %v4774_v36 = vmul.f32 0.0078125, %v4771_v37 }
0x1c45   : > { %v4776_v38 = vadd.f32 1e-05, %v4774_v36 }
0x1c46   : > { %v4773_v39 = vpop.xlane.xlu1 %4772 }
0x1c47   : > { %6593 = vrsqrt.f32 %v4776_v38  ;;  %v4775_v40 = vmul.f32 0.0078125, %v4773_v39 }
0x1c49   : > { %v4777_v41 = vadd.f32 1e-05, %v4775_v40  ;;  %v5672_v40 = vld [vmem:[%s7944_s21] ss:$0 sm:$0xff] }
0x1c4b   : > { %6595 = vrsqrt.f32 %v4777_v41 }
0x1c54   : > { %v6594_v28 = vpop.eup %6593 }
0x1c55   : > { %v4780_v18 = vmul.f32 %v6594_v28, %v4766_v20  ;;  %v6480_v20 = vld [vmem:[%s7943_s20] sm:$0xff]  }
0x1c57   : > { %v4788_v44 = vmul.f32 %v5635_v33, %v4780_v18 }
0x1c58   : > { %v6596_v35 = vpop.eup %6595 }
0x1c59   : > { %v4781_v42 = vmul.f32 %v6596_v35, %v4767_v19  ;;  %v4796_v47 = vadd.f32 %v5636_v45, %v4788_v44 }
0x1c5b   : > { %v4789_v46 = vmul.f32 %v5635_v33, %v4781_v42 }
0x1c5d   : > { %v4797_v48 = vadd.f32 %v5636_v45, %v4789_v46 }
0x1c5f   : > { %v4814_v49 = vpack.c.bf16 %v4797_v48, %v4796_v47 }
0x1c61   : > { %6126 = vmatmul.mubr.bf16.vlgmr.msra.gmra.mxu0 %v4814_v49 }
0x1c62   : > { %6165 = vmatprep.mubr.msk.bf16.mxu0 %vm6614_vm0, %v6613_v1  ;;  %6150 = vmatpush3.bf16.msra.mxu0 %v6473_v14 }
0x1c63   : > { %6151 = vmatprep.subr.bf16.mxu0 %v6613_v1 }
0x1c66   : > { %6152 = vmatpush3.bf16.msra.mxu0 %v6474_v61 }
0x1c67   : > { %6153 = vmatprep.subr.bf16.mxu0 %v6613_v1 }
0x1c6a   : > { %6154 = vmatpush3.bf16.msra.mxu0 %v6475_v16 }
0x1c6b   : > { %6155 = vmatprep.subr.bf16.mxu0 %v6613_v1 }
0x1c6e   : > { %6156 = vmatpush3.bf16.msra.mxu0 %v6476_v15 }
0x1c6f   : > { %6157 = vmatprep.subr.bf16.mxu0 %v6613_v1 }
0x1c72   : > { %6158 = vmatpush3.bf16.msra.mxu0 %v6477_v7 }
0x1c73   : > { %6159 = vmatprep.subr.bf16.mxu0 %v6613_v1 }
0x1c76   : > { %6160 = vmatpush3.bf16.msra.mxu0 %v6478_v54 }
0x1c77   : > { %6161 = vmatprep.subr.bf16.mxu0 %v6613_v1 }
0x1c7a   : > { %6162 = vmatpush3.bf16.msra.mxu0 %v6479_v17 }
0x1c7b   : > { %6163 = vmatprep.subr.bf16.mxu0 %v6613_v1 }
0x1c7e   : > { %6164 = vmatpush3.bf16.msra.mxu0 %v6480_v20 }
0x1d21   : > { %v4904_v29 = vpop.f32.mrf.mxu0 }
0x1d22   : > { %v4905_v57 = vadd.f32 %v5637_v25, %v4904_v29 }
0x1d23   : > { %v6127_v59 = vpop.f32.mrf.mxu0 }
0x1d24   : > { %v4913_v60 = vmul.f32 0.70710677, %v4905_v57  ;;  %v4911_v9 = vmul.f32 0.5, %v4905_v57 }
0x1d25   : > { %v4907_v0 = vpop.f32.mrf.mxu0 }
0x1d26   : > { %6597 = verf.f32 %v4913_v60  ;;  %v4908_v2 = vadd.f32 %v5637_v25, %v4907_v0 }
0x1d27   : > { %v6128_v3 = vpop.f32.mrf.mxu0 }
0x1d28   : > { %v4914_v4 = vmul.f32 0.70710677, %v4908_v2  ;;  %v4912_v10 = vmul.f32 0.5, %v4908_v2 }
0x1d2a   : > { %6599 = verf.f32 %v4914_v4 }
0x1d33   : > { %v6598_v62 = vpop.eup %6597 }
0x1d34   : > { %v4917_v63 = vadd.f32 1.0, %v6598_v62 }
0x1d36   : > { %v4919_v8 = vmul.f32 %v4917_v63, %v4911_v9 }
0x1d37   : > { %v6600_v5 = vpop.eup %6599 }
0x1d38   : > { %v4918_v11 = vadd.f32 1.0, %v6600_v5 }
0x1d3a   : > { %v4920_v58 = vmul.f32 %v4918_v11, %v4912_v10 }
0x1d3c   : > { %v4938_v24 = vpack.c.bf16 %v4920_v58, %v4919_v8 }
0x1d3e   : > { %6146 = vmatmul.mubr.bf16.vlgmr.msra.gmra.mxu1 %v4938_v24 }
0x1dfe   : > { %v5029_v43 = vpop.f32.mrf.mxu1 }
0x1dff   : > { %v5030_v13 = vadd.f32 %v5663_v22, %v5029_v43 }
0x1e00   : > { %v6147_v19 = vpop.f32.mrf.mxu1 }
0x1e01   : > { %v5038_v23 = vmul.f32 0.70710677, %v5030_v13  ;;  %v5036_v32 = vmul.f32 0.5, %v5030_v13 }
0x1e02   : > { %v5032_v6 = vpop.f32.mrf.mxu1 }
0x1e03   : > { %6601 = verf.f32 %v5038_v23  ;;  %v5033_v21 = vadd.f32 %v5663_v22, %v5032_v6 }
0x1e04   : > { %v6148_v12 = vpop.f32.mrf.mxu1 }
0x1e05   : > { %v5039_v27 = vmul.f32 0.70710677, %v5033_v21  ;;  %v5037_v30 = vmul.f32 0.5, %v5033_v21 }
0x1e07   : > { %6603 = verf.f32 %v5039_v27 }
0x1e10   : > { %v6602_v1 = vpop.eup %6601 }
0x1e11   : > { %v5042_v34 = vadd.f32 1.0, %v6602_v1 }
0x1e13   : > { %v5044_v36 = vmul.f32 %v5042_v34, %v5036_v32 }
0x1e14   : > { %v6604_v31 = vpop.eup %6603 }
0x1e15   : > { %v5043_v37 = vadd.f32 1.0, %v6604_v31 }
0x1e17   : > { %v5045_v38 = vmul.f32 %v5043_v37, %v5037_v30 }
0x1e19   : > { %v5062_v39 = vpack.c.bf16 %v5045_v38, %v5044_v36 }
0x1e1b   : > { %6166 = vmatmul.mubr.bf16.vlgmr.msra.gmra.mxu0 %v5062_v39 }
0x1edb   : > { %v5152_v41 = vpop.f32.mrf.mxu0 }
0x1edc   : > { %v5153_v28 = vadd.f32 %v5672_v40, %v5152_v41 }
0x1edd   : > { %v6167_v18 = vpop.f32.mrf.mxu0 }
0x1ede   : > { %5159 = vst [vmem:[%s683_s2] sm:$0xff] %v5153_v28 }
0x1edf   : > { %v5155_v33 = vpop.f32.mrf.mxu0 }
0x1ee0   : > { %v5156_v35 = vadd.f32 %v5672_v40, %v5155_v33 }
0x1ee1   : > { %v6168_v42 = vpop.f32.mrf.mxu0 }
0x1ee2   : > { %5160 = vst [vmem:[%s683_s2 + $0x8] sm:$0xff] %v5156_v35 }
0x1ee3 PF: > { %s7982_s5 = sld [smem:[#allocation2_spill]] }
0x1ee9   : > { %s32_s3 = sadd.s32 1, %s7982_s5  }
0x1eea   : > { %p29_p4 = scmp.ge.s32.totalorder %s32_s3, 4  }
0x1eec   :  { %31 = sbr.rel (!%p29_p4) target bundleno = 9 (0x9), region = 152 }

</bundles_post_ra>
